<compile_context>
chip_gen: v5e
topology: v5e:2x2
jax: 0.10.0
libtpu: 0.0.40
codegen_flags: <defaults>
</compile_context>

<pallas_src>
import jax
import jax.numpy as jnp
from jax.experimental import pallas as pl
from jax.experimental.pallas import tpu as pltpu

HID = 16      # hid_channel of RC_1D
LANES = 128   # vreg lane width; batch*num_node rows live on lanes


# ------------------------------ fused kernel ---------------------------------
def _shift_prev(h):
    # position l sees position l-1 (replicate clamp at l=0); 128-lane blocks
    if h.shape[1] == LANES:
        return h
    return jnp.concatenate([h[:, :LANES], h[:, :-LANES]], axis=1)


def _shift_next(h):
    # position l sees position l+1 (replicate clamp at l=L-1)
    if h.shape[1] == LANES:
        return h
    return jnp.concatenate([h[:, LANES:], h[:, -LANES:]], axis=1)


def only_rc_kernel(xcf_ref, xfc_ref,
                   w1s_ref, b1s_ref, w2s_ref, b2s_ref, w3s_ref, b3s_ref,
                   w4s_ref, b4s_ref,
                   ua_ref, ub_ref, hb1_ref, v_ref, hb2_ref,
                   out_ref):
    def conv_k3(h, wcat, b):
        # taps concatenated on the contraction axis -> one 48-deep MXU matmul
        hcat = jnp.concatenate([_shift_prev(h), h, _shift_next(h)], axis=0)
        return jnp.dot(wcat, hcat, preferred_element_type=jnp.float32) + b

    def rc_block(x, i):
        # x: (1, L*LANES) -> (1, L*LANES)
        h = w1s_ref[i] * x + b1s_ref[i]                              # conv1 1->16
        h = jnp.maximum(conv_k3(h, w2s_ref[i], b2s_ref[i]) + h, 0.0)  # relu(conv2+x)
        h = jnp.maximum(conv_k3(h, w3s_ref[i], b3s_ref[i]) + h, 0.0)  # relu(conv3+x)
        return (jnp.dot(w4s_ref[i], h, preferred_element_type=jnp.float32)
                + b4s_ref[i])                                         # conv4 16->1

    a = rc_block(rc_block(xcf_ref[...], 0), 1)   # (1, F*LANES) chan_freq branch
    b = rc_block(rc_block(xfc_ref[...], 2), 3)   # (1, C*LANES) freq_chan branch

    # node-mean + concat + first Linear folded into host-built matrices ua/ub
    hh = (jnp.dot(a, ua_ref[...], preferred_element_type=jnp.float32)
          + jnp.dot(b, ub_ref[...], preferred_element_type=jnp.float32)
          + hb1_ref[...])                                             # (1, B*16)
    hh = jnp.maximum(hh, 0.0)
    out_ref[...] = (jnp.dot(hh, v_ref[...], preferred_element_type=jnp.float32)
                    + hb2_ref[...])                  # (1, 128), first 2B lanes valid


# ------------------------------ host wrapper ----------------------------------
def _pack_rows(xrows):
    """(N, L) independent rows -> (1, L*LANES); flat lane index = l*LANES + n."""
    n, length = xrows.shape
    xt = jnp.transpose(xrows)                              # (L, N)
    xt = jnp.pad(xt, ((0, 0), (0, LANES - n)))             # pad rows onto lanes
    return xt.reshape(1, length * LANES)


def _prep_block(p):
    # (3, HID, HID) [tap, out, in] -> (HID, 3*HID) with taps on contraction axis
    wcat2 = jnp.transpose(p["w2"], (1, 0, 2)).reshape(HID, 3 * HID)
    wcat3 = jnp.transpose(p["w3"], (1, 0, 2)).reshape(HID, 3 * HID)
    return (p["w1"], p["b1"], wcat2, p["b2"], wcat3, p["b3"],
            jnp.transpose(p["w4"]), p["b4"])


def only_rc_forward(x, params):
    """x: (batch, num_channels, num_frequencies) float32 -> (batch, 2)."""
    B, C, F = x.shape
    if B * C > LANES or B * F > LANES:
        # TODO(synk): tile the row (lane) dimension with a grid when batch*node > 128.
        raise NotImplementedError("batch*num_node must fit in 128 lanes")

    x = x.astype(jnp.float32)
    xcf = _pack_rows(x.reshape(B * C, F))                                # rows=(b,chan)
    xfc = _pack_rows(jnp.transpose(x, (0, 2, 1)).reshape(B * F, C))      # rows=(b,freq)

    blocks = [params["cf1"], params["cf2"], params["fc1"], params["fc2"]]
    prepped = [_prep_block(p) for p in blocks]
    stacked = [jnp.stack([pp[k] for pp in prepped]) for k in range(8)]

    hp = params["head"]
    hh = hp["w1a"].shape[1]                                  # head hidden width (16)
    n_idx = jnp.arange(LANES)[:, None]
    b_idx = jnp.arange(B)[None, :]
    # mean-over-nodes + Linear baked into one matrix per branch
    ind_a = ((n_idx // C == b_idx) & (n_idx < B * C)).astype(jnp.float32) / C
    ind_b = ((n_idx // F == b_idx) & (n_idx < B * F)).astype(jnp.float32) / F
    ua = jnp.einsum("fj,nb->fnbj", hp["w1a"], ind_a).reshape(F * LANES, B * hh)
    ub = jnp.einsum("cj,nb->cnbj", hp["w1b"], ind_b).reshape(C * LANES, B * hh)
    hb1 = jnp.tile(hp["b1"], (1, B))                                     # (1, B*16)
    v = jnp.kron(jnp.eye(B, dtype=jnp.float32), hp["w2"])                # (B*16, B*2)
    v = jnp.pad(v, ((0, 0), (0, LANES - 2 * B)))                         # lane-dense out
    hb2 = jnp.pad(jnp.tile(hp["b2"], (1, B)), ((0, 0), (0, LANES - 2 * B)))

    vmem = pl.BlockSpec(memory_space=pltpu.MemorySpace.VMEM)
    out = pl.pallas_call(
        only_rc_kernel,
        in_specs=[vmem] * 15,
        out_specs=vmem,
        out_shape=jax.ShapeDtypeStruct((1, LANES), jnp.float32),
    )(xcf, xfc, *stacked, ua, ub, hb1, v, hb2)
    return out[0, :2 * B].reshape(B, 2)


# ------------------------------- params ---------------------------------------
def init_rc1d(key):
    ks = jax.random.split(key, 8)
    s = 0.2
    return dict(
        w1=s * jax.random.normal(ks[0], (HID, 1), jnp.float32),
        b1=s * jax.random.normal(ks[1], (HID, 1), jnp.float32),
        w2=s * jax.random.normal(ks[2], (3, HID, HID), jnp.float32),  # [tap, out, in]
        b2=s * jax.random.normal(ks[3], (HID, 1), jnp.float32),
        w3=s * jax.random.normal(ks[4], (3, HID, HID), jnp.float32),
        b3=s * jax.random.normal(ks[5], (HID, 1), jnp.float32),
        w4=s * jax.random.normal(ks[6], (HID, 1), jnp.float32),
        b4=s * jax.random.normal(ks[7], (1, 1), jnp.float32),
    )


def init_head(key, num_channels, num_frequencies):
    ks = jax.random.split(key, 4)
    s = 0.2
    return dict(
        w1a=s * jax.random.normal(ks[0], (num_frequencies, 16), jnp.float32),
        w1b=s * jax.random.normal(ks[1], (num_channels, 16), jnp.float32),
        b1=s * jax.random.normal(ks[2], (1, 16), jnp.float32),
        w2=s * jax.random.normal(ks[3], (16, 2), jnp.float32),
        b2=jnp.zeros((1, 2), jnp.float32),
    )


# ------------------------ pure-JAX reference (checks) --------------------------
def rc1d_ref(x3d, p):
    B, Nn, L = x3d.shape
    x = x3d.reshape(B * Nn, L)
    h = x[:, None, :] * p["w1"].reshape(1, HID, 1) + p["b1"].reshape(1, HID, 1)

    def conv3(h, w, b):
        hp = jnp.pad(h, ((0, 0), (0, 0), (1, 1)), mode="edge")
        out = sum(jnp.einsum("oc,ncl->nol", w[k], hp[:, :, k:k + L]) for k in range(3))
        return out + b.reshape(1, HID, 1)

    h = jax.nn.relu(conv3(h, p["w2"], p["b2"]) + h)
    h = jax.nn.relu(conv3(h, p["w3"], p["b3"]) + h)
    o = jnp.einsum("c,ncl->nl", p["w4"][:, 0], h) + p["b4"][0, 0]
    return o.reshape(B, Nn, L)


def only_rc_ref(x, params):
    a = rc1d_ref(rc1d_ref(x, params["cf1"]), params["cf2"])
    xt = jnp.transpose(x, (0, 2, 1))
    b = rc1d_ref(rc1d_ref(xt, params["fc1"]), params["fc2"])
    m1 = jnp.mean(a, axis=1)
    m2 = jnp.mean(b, axis=1)
    hp = params["head"]
    h = jax.nn.relu(m1 @ hp["w1a"] + m2 @ hp["w1b"] + hp["b1"])
    return h @ hp["w2"] + hp["b2"]


if __name__ == "__main__":
    key = jax.random.PRNGKey(0)
    kx, k1, k2, k3, k4, kh = jax.random.split(key, 6)
    B, C, F = 2, 6, 8   # batch, num_channels, num_frequencies
    x = jax.random.normal(kx, (B, C, F), jnp.float32)
    params = dict(
        cf1=init_rc1d(k1), cf2=init_rc1d(k2),
        fc1=init_rc1d(k3), fc2=init_rc1d(k4),
        head=init_head(kh, C, F),
    )
    fwd = jax.jit(only_rc_forward)
    out = jax.block_until_ready(fwd(x, params))
    assert out.shape == (B, 2)
    ref = only_rc_ref(x, params)
    if not jnp.allclose(out, ref, atol=1e-4, rtol=1e-4):
        raise AssertionError("Pallas output mismatch vs pure-JAX reference")
    print("KERNEL_OK")
</pallas_src>

<mosaic_0001>
module attributes {stable_mosaic.version = 11 : i64} {
  func.func @only_rc_kernel(%arg0: memref<1x1024xf32, #tpu.memory_space<vmem>>, %arg1: memref<1x768xf32, #tpu.memory_space<vmem>>, %arg2: memref<4x16x1xf32, #tpu.memory_space<vmem>>, %arg3: memref<4x16x1xf32, #tpu.memory_space<vmem>>, %arg4: memref<4x16x48xf32, #tpu.memory_space<vmem>>, %arg5: memref<4x16x1xf32, #tpu.memory_space<vmem>>, %arg6: memref<4x16x48xf32, #tpu.memory_space<vmem>>, %arg7: memref<4x16x1xf32, #tpu.memory_space<vmem>>, %arg8: memref<4x1x16xf32, #tpu.memory_space<vmem>>, %arg9: memref<4x1x1xf32, #tpu.memory_space<vmem>>, %arg10: memref<1024x32xf32, #tpu.memory_space<vmem>>, %arg11: memref<768x32xf32, #tpu.memory_space<vmem>>, %arg12: memref<1x32xf32, #tpu.memory_space<vmem>>, %arg13: memref<32x128xf32, #tpu.memory_space<vmem>>, %arg14: memref<1x128xf32, #tpu.memory_space<vmem>>, %arg15: memref<1x128xf32, #tpu.memory_space<vmem>>) attributes {dimension_semantics = [], scalar_prefetch = 0 : i64, scratch_operands = 0 : i64, tpu.core_type = #tpu.core_type<tc>} {
    %c0 = arith.constant 0 : index
    %c0_0 = arith.constant 0 : index
    %0 = vector.load %arg0[%c0, %c0_0] : memref<1x1024xf32, #tpu.memory_space<vmem>>, vector<1x1024xf32>
    %c0_1 = arith.constant 0 : index
    %c0_2 = arith.constant 0 : index
    %c0_3 = arith.constant 0 : index
    %1 = vector.load %arg2[%c0_1, %c0_2, %c0_3] : memref<4x16x1xf32, #tpu.memory_space<vmem>>, vector<1x16x1xf32>
    %2 = vector.shape_cast %1 : vector<1x16x1xf32> to vector<16x1xf32>
    %3 = vector.broadcast %2 : vector<16x1xf32> to vector<16x1024xf32>
    %4 = vector.broadcast %0 : vector<1x1024xf32> to vector<16x1024xf32>
    %5 = arith.mulf %3, %4 : vector<16x1024xf32>
    %c0_4 = arith.constant 0 : index
    %c0_5 = arith.constant 0 : index
    %c0_6 = arith.constant 0 : index
    %6 = vector.load %arg3[%c0_4, %c0_5, %c0_6] : memref<4x16x1xf32, #tpu.memory_space<vmem>>, vector<1x16x1xf32>
    %7 = vector.shape_cast %6 : vector<1x16x1xf32> to vector<16x1xf32>
    %8 = vector.broadcast %7 : vector<16x1xf32> to vector<16x1024xf32>
    %9 = arith.addf %5, %8 : vector<16x1024xf32>
    %c0_7 = arith.constant 0 : index
    %c0_8 = arith.constant 0 : index
    %c0_9 = arith.constant 0 : index
    %10 = vector.load %arg4[%c0_7, %c0_8, %c0_9] : memref<4x16x48xf32, #tpu.memory_space<vmem>>, vector<1x16x48xf32>
    %11 = vector.shape_cast %10 : vector<1x16x48xf32> to vector<16x48xf32>
    %c0_10 = arith.constant 0 : index
    %c0_11 = arith.constant 0 : index
    %c0_12 = arith.constant 0 : index
    %12 = vector.load %arg5[%c0_10, %c0_11, %c0_12] : memref<4x16x1xf32, #tpu.memory_space<vmem>>, vector<1x16x1xf32>
    %13 = vector.shape_cast %12 : vector<1x16x1xf32> to vector<16x1xf32>
    %14 = vector.extract_strided_slice %9 {offsets = [0, 0], sizes = [16, 128], strides = [1, 1]} : vector<16x1024xf32> to vector<16x128xf32>
    %15 = vector.extract_strided_slice %9 {offsets = [0, 0], sizes = [16, 896], strides = [1, 1]} : vector<16x1024xf32> to vector<16x896xf32>
    %16 = tpu.concatenate %14, %15 in 1 : vector<16x128xf32>, vector<16x896xf32> -> vector<16x1024xf32>
    %17 = vector.extract_strided_slice %9 {offsets = [0, 128], sizes = [16, 896], strides = [1, 1]} : vector<16x1024xf32> to vector<16x896xf32>
    %18 = vector.extract_strided_slice %9 {offsets = [0, 896], sizes = [16, 128], strides = [1, 1]} : vector<16x1024xf32> to vector<16x128xf32>
    %19 = tpu.concatenate %17, %18 in 1 : vector<16x896xf32>, vector<16x128xf32> -> vector<16x1024xf32>
    %20 = tpu.concatenate %16, %9, %19 in 0 : vector<16x1024xf32>, vector<16x1024xf32>, vector<16x1024xf32> -> vector<48x1024xf32>
    %cst = arith.constant dense<0.000000e+00> : vector<16x1024xf32>
    %21 = tpu.matmul %11, %20, %cst {dimension_numbers = #tpu.dot_dimension_numbers<[1], [0], [0], [1], [0, 0, 1, 1], [], []>} : vector<16x48xf32>, vector<48x1024xf32>, vector<16x1024xf32> -> vector<16x1024xf32>
    %22 = vector.broadcast %13 : vector<16x1xf32> to vector<16x1024xf32>
    %23 = arith.addf %21, %22 : vector<16x1024xf32>
    %24 = arith.addf %23, %9 : vector<16x1024xf32>
    %cst_13 = arith.constant 0.000000e+00 : f32
    %25 = vector.broadcast %cst_13 : f32 to vector<16x1024xf32>
    %26 = arith.maximumf %24, %25 : vector<16x1024xf32>
    %c0_14 = arith.constant 0 : index
    %c0_15 = arith.constant 0 : index
    %c0_16 = arith.constant 0 : index
    %27 = vector.load %arg6[%c0_14, %c0_15, %c0_16] : memref<4x16x48xf32, #tpu.memory_space<vmem>>, vector<1x16x48xf32>
    %28 = vector.shape_cast %27 : vector<1x16x48xf32> to vector<16x48xf32>
    %c0_17 = arith.constant 0 : index
    %c0_18 = arith.constant 0 : index
    %c0_19 = arith.constant 0 : index
    %29 = vector.load %arg7[%c0_17, %c0_18, %c0_19] : memref<4x16x1xf32, #tpu.memory_space<vmem>>, vector<1x16x1xf32>
    %30 = vector.shape_cast %29 : vector<1x16x1xf32> to vector<16x1xf32>
    %31 = vector.extract_strided_slice %26 {offsets = [0, 0], sizes = [16, 128], strides = [1, 1]} : vector<16x1024xf32> to vector<16x128xf32>
    %32 = vector.extract_strided_slice %26 {offsets = [0, 0], sizes = [16, 896], strides = [1, 1]} : vector<16x1024xf32> to vector<16x896xf32>
    %33 = tpu.concatenate %31, %32 in 1 : vector<16x128xf32>, vector<16x896xf32> -> vector<16x1024xf32>
    %34 = vector.extract_strided_slice %26 {offsets = [0, 128], sizes = [16, 896], strides = [1, 1]} : vector<16x1024xf32> to vector<16x896xf32>
    %35 = vector.extract_strided_slice %26 {offsets = [0, 896], sizes = [16, 128], strides = [1, 1]} : vector<16x1024xf32> to vector<16x128xf32>
    %36 = tpu.concatenate %34, %35 in 1 : vector<16x896xf32>, vector<16x128xf32> -> vector<16x1024xf32>
    %37 = tpu.concatenate %33, %26, %36 in 0 : vector<16x1024xf32>, vector<16x1024xf32>, vector<16x1024xf32> -> vector<48x1024xf32>
    %cst_20 = arith.constant dense<0.000000e+00> : vector<16x1024xf32>
    %38 = tpu.matmul %28, %37, %cst_20 {dimension_numbers = #tpu.dot_dimension_numbers<[1], [0], [0], [1], [0, 0, 1, 1], [], []>} : vector<16x48xf32>, vector<48x1024xf32>, vector<16x1024xf32> -> vector<16x1024xf32>
    %39 = vector.broadcast %30 : vector<16x1xf32> to vector<16x1024xf32>
    %40 = arith.addf %38, %39 : vector<16x1024xf32>
    %41 = arith.addf %40, %26 : vector<16x1024xf32>
    %cst_21 = arith.constant 0.000000e+00 : f32
    %42 = vector.broadcast %cst_21 : f32 to vector<16x1024xf32>
    %43 = arith.maximumf %41, %42 : vector<16x1024xf32>
    %c0_22 = arith.constant 0 : index
    %c0_23 = arith.constant 0 : index
    %c0_24 = arith.constant 0 : index
    %44 = vector.load %arg8[%c0_22, %c0_23, %c0_24] : memref<4x1x16xf32, #tpu.memory_space<vmem>>, vector<1x1x16xf32>
    %45 = vector.shape_cast %44 : vector<1x1x16xf32> to vector<1x16xf32>
    %cst_25 = arith.constant dense<0.000000e+00> : vector<1x1024xf32>
    %46 = tpu.matmul %45, %43, %cst_25 {dimension_numbers = #tpu.dot_dimension_numbers<[1], [0], [0], [1], [0, 0, 1, 1], [], []>} : vector<1x16xf32>, vector<16x1024xf32>, vector<1x1024xf32> -> vector<1x1024xf32>
    %c0_26 = arith.constant 0 : index
    %c0_27 = arith.constant 0 : index
    %c0_28 = arith.constant 0 : index
    %47 = vector.load %arg9[%c0_26, %c0_27, %c0_28] : memref<4x1x1xf32, #tpu.memory_space<vmem>>, vector<1x1x1xf32>
    %48 = vector.shape_cast %47 : vector<1x1x1xf32> to vector<1x1xf32>
    %49 = vector.broadcast %48 : vector<1x1xf32> to vector<1x1024xf32>
    %50 = arith.addf %46, %49 : vector<1x1024xf32>
    %c1 = arith.constant 1 : index
    %c0_29 = arith.constant 0 : index
    %c0_30 = arith.constant 0 : index
    %51 = vector.load %arg2[%c1, %c0_29, %c0_30] : memref<4x16x1xf32, #tpu.memory_space<vmem>>, vector<1x16x1xf32>
    %52 = vector.shape_cast %51 : vector<1x16x1xf32> to vector<16x1xf32>
    %53 = vector.broadcast %52 : vector<16x1xf32> to vector<16x1024xf32>
    %54 = vector.broadcast %50 : vector<1x1024xf32> to vector<16x1024xf32>
    %55 = arith.mulf %53, %54 : vector<16x1024xf32>
    %c1_31 = arith.constant 1 : index
    %c0_32 = arith.constant 0 : index
    %c0_33 = arith.constant 0 : index
    %56 = vector.load %arg3[%c1_31, %c0_32, %c0_33] : memref<4x16x1xf32, #tpu.memory_space<vmem>>, vector<1x16x1xf32>
    %57 = vector.shape_cast %56 : vector<1x16x1xf32> to vector<16x1xf32>
    %58 = vector.broadcast %57 : vector<16x1xf32> to vector<16x1024xf32>
    %59 = arith.addf %55, %58 : vector<16x1024xf32>
    %c1_34 = arith.constant 1 : index
    %c0_35 = arith.constant 0 : index
    %c0_36 = arith.constant 0 : index
    %60 = vector.load %arg4[%c1_34, %c0_35, %c0_36] : memref<4x16x48xf32, #tpu.memory_space<vmem>>, vector<1x16x48xf32>
    %61 = vector.shape_cast %60 : vector<1x16x48xf32> to vector<16x48xf32>
    %c1_37 = arith.constant 1 : index
    %c0_38 = arith.constant 0 : index
    %c0_39 = arith.constant 0 : index
    %62 = vector.load %arg5[%c1_37, %c0_38, %c0_39] : memref<4x16x1xf32, #tpu.memory_space<vmem>>, vector<1x16x1xf32>
    %63 = vector.shape_cast %62 : vector<1x16x1xf32> to vector<16x1xf32>
    %64 = vector.extract_strided_slice %59 {offsets = [0, 0], sizes = [16, 128], strides = [1, 1]} : vector<16x1024xf32> to vector<16x128xf32>
    %65 = vector.extract_strided_slice %59 {offsets = [0, 0], sizes = [16, 896], strides = [1, 1]} : vector<16x1024xf32> to vector<16x896xf32>
    %66 = tpu.concatenate %64, %65 in 1 : vector<16x128xf32>, vector<16x896xf32> -> vector<16x1024xf32>
    %67 = vector.extract_strided_slice %59 {offsets = [0, 128], sizes = [16, 896], strides = [1, 1]} : vector<16x1024xf32> to vector<16x896xf32>
    %68 = vector.extract_strided_slice %59 {offsets = [0, 896], sizes = [16, 128], strides = [1, 1]} : vector<16x1024xf32> to vector<16x128xf32>
    %69 = tpu.concatenate %67, %68 in 1 : vector<16x896xf32>, vector<16x128xf32> -> vector<16x1024xf32>
    %70 = tpu.concatenate %66, %59, %69 in 0 : vector<16x1024xf32>, vector<16x1024xf32>, vector<16x1024xf32> -> vector<48x1024xf32>
    %cst_40 = arith.constant dense<0.000000e+00> : vector<16x1024xf32>
    %71 = tpu.matmul %61, %70, %cst_40 {dimension_numbers = #tpu.dot_dimension_numbers<[1], [0], [0], [1], [0, 0, 1, 1], [], []>} : vector<16x48xf32>, vector<48x1024xf32>, vector<16x1024xf32> -> vector<16x1024xf32>
    %72 = vector.broadcast %63 : vector<16x1xf32> to vector<16x1024xf32>
    %73 = arith.addf %71, %72 : vector<16x1024xf32>
    %74 = arith.addf %73, %59 : vector<16x1024xf32>
    %cst_41 = arith.constant 0.000000e+00 : f32
    %75 = vector.broadcast %cst_41 : f32 to vector<16x1024xf32>
    %76 = arith.maximumf %74, %75 : vector<16x1024xf32>
    %c1_42 = arith.constant 1 : index
    %c0_43 = arith.constant 0 : index
    %c0_44 = arith.constant 0 : index
    %77 = vector.load %arg6[%c1_42, %c0_43, %c0_44] : memref<4x16x48xf32, #tpu.memory_space<vmem>>, vector<1x16x48xf32>
    %78 = vector.shape_cast %77 : vector<1x16x48xf32> to vector<16x48xf32>
    %c1_45 = arith.constant 1 : index
    %c0_46 = arith.constant 0 : index
    %c0_47 = arith.constant 0 : index
    %79 = vector.load %arg7[%c1_45, %c0_46, %c0_47] : memref<4x16x1xf32, #tpu.memory_space<vmem>>, vector<1x16x1xf32>
    %80 = vector.shape_cast %79 : vector<1x16x1xf32> to vector<16x1xf32>
    %81 = vector.extract_strided_slice %76 {offsets = [0, 0], sizes = [16, 128], strides = [1, 1]} : vector<16x1024xf32> to vector<16x128xf32>
    %82 = vector.extract_strided_slice %76 {offsets = [0, 0], sizes = [16, 896], strides = [1, 1]} : vector<16x1024xf32> to vector<16x896xf32>
    %83 = tpu.concatenate %81, %82 in 1 : vector<16x128xf32>, vector<16x896xf32> -> vector<16x1024xf32>
    %84 = vector.extract_strided_slice %76 {offsets = [0, 128], sizes = [16, 896], strides = [1, 1]} : vector<16x1024xf32> to vector<16x896xf32>
    %85 = vector.extract_strided_slice %76 {offsets = [0, 896], sizes = [16, 128], strides = [1, 1]} : vector<16x1024xf32> to vector<16x128xf32>
    %86 = tpu.concatenate %84, %85 in 1 : vector<16x896xf32>, vector<16x128xf32> -> vector<16x1024xf32>
    %87 = tpu.concatenate %83, %76, %86 in 0 : vector<16x1024xf32>, vector<16x1024xf32>, vector<16x1024xf32> -> vector<48x1024xf32>
    %cst_48 = arith.constant dense<0.000000e+00> : vector<16x1024xf32>
    %88 = tpu.matmul %78, %87, %cst_48 {dimension_numbers = #tpu.dot_dimension_numbers<[1], [0], [0], [1], [0, 0, 1, 1], [], []>} : vector<16x48xf32>, vector<48x1024xf32>, vector<16x1024xf32> -> vector<16x1024xf32>
    %89 = vector.broadcast %80 : vector<16x1xf32> to vector<16x1024xf32>
    %90 = arith.addf %88, %89 : vector<16x1024xf32>
    %91 = arith.addf %90, %76 : vector<16x1024xf32>
    %cst_49 = arith.constant 0.000000e+00 : f32
    %92 = vector.broadcast %cst_49 : f32 to vector<16x1024xf32>
    %93 = arith.maximumf %91, %92 : vector<16x1024xf32>
    %c1_50 = arith.constant 1 : index
    %c0_51 = arith.constant 0 : index
    %c0_52 = arith.constant 0 : index
    %94 = vector.load %arg8[%c1_50, %c0_51, %c0_52] : memref<4x1x16xf32, #tpu.memory_space<vmem>>, vector<1x1x16xf32>
    %95 = vector.shape_cast %94 : vector<1x1x16xf32> to vector<1x16xf32>
    %cst_53 = arith.constant dense<0.000000e+00> : vector<1x1024xf32>
    %96 = tpu.matmul %95, %93, %cst_53 {dimension_numbers = #tpu.dot_dimension_numbers<[1], [0], [0], [1], [0, 0, 1, 1], [], []>} : vector<1x16xf32>, vector<16x1024xf32>, vector<1x1024xf32> -> vector<1x1024xf32>
    %c1_54 = arith.constant 1 : index
    %c0_55 = arith.constant 0 : index
    %c0_56 = arith.constant 0 : index
    %97 = vector.load %arg9[%c1_54, %c0_55, %c0_56] : memref<4x1x1xf32, #tpu.memory_space<vmem>>, vector<1x1x1xf32>
    %98 = vector.shape_cast %97 : vector<1x1x1xf32> to vector<1x1xf32>
    %99 = vector.broadcast %98 : vector<1x1xf32> to vector<1x1024xf32>
    %100 = arith.addf %96, %99 : vector<1x1024xf32>
    %c0_57 = arith.constant 0 : index
    %c0_58 = arith.constant 0 : index
    %101 = vector.load %arg1[%c0_57, %c0_58] : memref<1x768xf32, #tpu.memory_space<vmem>>, vector<1x768xf32>
    %c2 = arith.constant 2 : index
    %c0_59 = arith.constant 0 : index
    %c0_60 = arith.constant 0 : index
    %102 = vector.load %arg2[%c2, %c0_59, %c0_60] : memref<4x16x1xf32, #tpu.memory_space<vmem>>, vector<1x16x1xf32>
    %103 = vector.shape_cast %102 : vector<1x16x1xf32> to vector<16x1xf32>
    %104 = vector.broadcast %103 : vector<16x1xf32> to vector<16x768xf32>
    %105 = vector.broadcast %101 : vector<1x768xf32> to vector<16x768xf32>
    %106 = arith.mulf %104, %105 : vector<16x768xf32>
    %c2_61 = arith.constant 2 : index
    %c0_62 = arith.constant 0 : index
    %c0_63 = arith.constant 0 : index
    %107 = vector.load %arg3[%c2_61, %c0_62, %c0_63] : memref<4x16x1xf32, #tpu.memory_space<vmem>>, vector<1x16x1xf32>
    %108 = vector.shape_cast %107 : vector<1x16x1xf32> to vector<16x1xf32>
    %109 = vector.broadcast %108 : vector<16x1xf32> to vector<16x768xf32>
    %110 = arith.addf %106, %109 : vector<16x768xf32>
    %c2_64 = arith.constant 2 : index
    %c0_65 = arith.constant 0 : index
    %c0_66 = arith.constant 0 : index
    %111 = vector.load %arg4[%c2_64, %c0_65, %c0_66] : memref<4x16x48xf32, #tpu.memory_space<vmem>>, vector<1x16x48xf32>
    %112 = vector.shape_cast %111 : vector<1x16x48xf32> to vector<16x48xf32>
    %c2_67 = arith.constant 2 : index
    %c0_68 = arith.constant 0 : index
    %c0_69 = arith.constant 0 : index
    %113 = vector.load %arg5[%c2_67, %c0_68, %c0_69] : memref<4x16x1xf32, #tpu.memory_space<vmem>>, vector<1x16x1xf32>
    %114 = vector.shape_cast %113 : vector<1x16x1xf32> to vector<16x1xf32>
    %115 = vector.extract_strided_slice %110 {offsets = [0, 0], sizes = [16, 128], strides = [1, 1]} : vector<16x768xf32> to vector<16x128xf32>
    %116 = vector.extract_strided_slice %110 {offsets = [0, 0], sizes = [16, 640], strides = [1, 1]} : vector<16x768xf32> to vector<16x640xf32>
    %117 = tpu.concatenate %115, %116 in 1 : vector<16x128xf32>, vector<16x640xf32> -> vector<16x768xf32>
    %118 = vector.extract_strided_slice %110 {offsets = [0, 128], sizes = [16, 640], strides = [1, 1]} : vector<16x768xf32> to vector<16x640xf32>
    %119 = vector.extract_strided_slice %110 {offsets = [0, 640], sizes = [16, 128], strides = [1, 1]} : vector<16x768xf32> to vector<16x128xf32>
    %120 = tpu.concatenate %118, %119 in 1 : vector<16x640xf32>, vector<16x128xf32> -> vector<16x768xf32>
    %121 = tpu.concatenate %117, %110, %120 in 0 : vector<16x768xf32>, vector<16x768xf32>, vector<16x768xf32> -> vector<48x768xf32>
    %cst_70 = arith.constant dense<0.000000e+00> : vector<16x768xf32>
    %122 = tpu.matmul %112, %121, %cst_70 {dimension_numbers = #tpu.dot_dimension_numbers<[1], [0], [0], [1], [0, 0, 1, 1], [], []>} : vector<16x48xf32>, vector<48x768xf32>, vector<16x768xf32> -> vector<16x768xf32>
    %123 = vector.broadcast %114 : vector<16x1xf32> to vector<16x768xf32>
    %124 = arith.addf %122, %123 : vector<16x768xf32>
    %125 = arith.addf %124, %110 : vector<16x768xf32>
    %cst_71 = arith.constant 0.000000e+00 : f32
    %126 = vector.broadcast %cst_71 : f32 to vector<16x768xf32>
    %127 = arith.maximumf %125, %126 : vector<16x768xf32>
    %c2_72 = arith.constant 2 : index
    %c0_73 = arith.constant 0 : index
    %c0_74 = arith.constant 0 : index
    %128 = vector.load %arg6[%c2_72, %c0_73, %c0_74] : memref<4x16x48xf32, #tpu.memory_space<vmem>>, vector<1x16x48xf32>
    %129 = vector.shape_cast %128 : vector<1x16x48xf32> to vector<16x48xf32>
    %c2_75 = arith.constant 2 : index
    %c0_76 = arith.constant 0 : index
    %c0_77 = arith.constant 0 : index
    %130 = vector.load %arg7[%c2_75, %c0_76, %c0_77] : memref<4x16x1xf32, #tpu.memory_space<vmem>>, vector<1x16x1xf32>
    %131 = vector.shape_cast %130 : vector<1x16x1xf32> to vector<16x1xf32>
    %132 = vector.extract_strided_slice %127 {offsets = [0, 0], sizes = [16, 128], strides = [1, 1]} : vector<16x768xf32> to vector<16x128xf32>
    %133 = vector.extract_strided_slice %127 {offsets = [0, 0], sizes = [16, 640], strides = [1, 1]} : vector<16x768xf32> to vector<16x640xf32>
    %134 = tpu.concatenate %132, %133 in 1 : vector<16x128xf32>, vector<16x640xf32> -> vector<16x768xf32>
    %135 = vector.extract_strided_slice %127 {offsets = [0, 128], sizes = [16, 640], strides = [1, 1]} : vector<16x768xf32> to vector<16x640xf32>
    %136 = vector.extract_strided_slice %127 {offsets = [0, 640], sizes = [16, 128], strides = [1, 1]} : vector<16x768xf32> to vector<16x128xf32>
    %137 = tpu.concatenate %135, %136 in 1 : vector<16x640xf32>, vector<16x128xf32> -> vector<16x768xf32>
    %138 = tpu.concatenate %134, %127, %137 in 0 : vector<16x768xf32>, vector<16x768xf32>, vector<16x768xf32> -> vector<48x768xf32>
    %cst_78 = arith.constant dense<0.000000e+00> : vector<16x768xf32>
    %139 = tpu.matmul %129, %138, %cst_78 {dimension_numbers = #tpu.dot_dimension_numbers<[1], [0], [0], [1], [0, 0, 1, 1], [], []>} : vector<16x48xf32>, vector<48x768xf32>, vector<16x768xf32> -> vector<16x768xf32>
    %140 = vector.broadcast %131 : vector<16x1xf32> to vector<16x768xf32>
    %141 = arith.addf %139, %140 : vector<16x768xf32>
    %142 = arith.addf %141, %127 : vector<16x768xf32>
    %cst_79 = arith.constant 0.000000e+00 : f32
    %143 = vector.broadcast %cst_79 : f32 to vector<16x768xf32>
    %144 = arith.maximumf %142, %143 : vector<16x768xf32>
    %c2_80 = arith.constant 2 : index
    %c0_81 = arith.constant 0 : index
    %c0_82 = arith.constant 0 : index
    %145 = vector.load %arg8[%c2_80, %c0_81, %c0_82] : memref<4x1x16xf32, #tpu.memory_space<vmem>>, vector<1x1x16xf32>
    %146 = vector.shape_cast %145 : vector<1x1x16xf32> to vector<1x16xf32>
    %cst_83 = arith.constant dense<0.000000e+00> : vector<1x768xf32>
    %147 = tpu.matmul %146, %144, %cst_83 {dimension_numbers = #tpu.dot_dimension_numbers<[1], [0], [0], [1], [0, 0, 1, 1], [], []>} : vector<1x16xf32>, vector<16x768xf32>, vector<1x768xf32> -> vector<1x768xf32>
    %c2_84 = arith.constant 2 : index
    %c0_85 = arith.constant 0 : index
    %c0_86 = arith.constant 0 : index
    %148 = vector.load %arg9[%c2_84, %c0_85, %c0_86] : memref<4x1x1xf32, #tpu.memory_space<vmem>>, vector<1x1x1xf32>
    %149 = vector.shape_cast %148 : vector<1x1x1xf32> to vector<1x1xf32>
    %150 = vector.broadcast %149 : vector<1x1xf32> to vector<1x768xf32>
    %151 = arith.addf %147, %150 : vector<1x768xf32>
    %c3 = arith.constant 3 : index
    %c0_87 = arith.constant 0 : index
    %c0_88 = arith.constant 0 : index
    %152 = vector.load %arg2[%c3, %c0_87, %c0_88] : memref<4x16x1xf32, #tpu.memory_space<vmem>>, vector<1x16x1xf32>
    %153 = vector.shape_cast %152 : vector<1x16x1xf32> to vector<16x1xf32>
    %154 = vector.broadcast %153 : vector<16x1xf32> to vector<16x768xf32>
    %155 = vector.broadcast %151 : vector<1x768xf32> to vector<16x768xf32>
    %156 = arith.mulf %154, %155 : vector<16x768xf32>
    %c3_89 = arith.constant 3 : index
    %c0_90 = arith.constant 0 : index
    %c0_91 = arith.constant 0 : index
    %157 = vector.load %arg3[%c3_89, %c0_90, %c0_91] : memref<4x16x1xf32, #tpu.memory_space<vmem>>, vector<1x16x1xf32>
    %158 = vector.shape_cast %157 : vector<1x16x1xf32> to vector<16x1xf32>
    %159 = vector.broadcast %158 : vector<16x1xf32> to vector<16x768xf32>
    %160 = arith.addf %156, %159 : vector<16x768xf32>
    %c3_92 = arith.constant 3 : index
    %c0_93 = arith.constant 0 : index
    %c0_94 = arith.constant 0 : index
    %161 = vector.load %arg4[%c3_92, %c0_93, %c0_94] : memref<4x16x48xf32, #tpu.memory_space<vmem>>, vector<1x16x48xf32>
    %162 = vector.shape_cast %161 : vector<1x16x48xf32> to vector<16x48xf32>
    %c3_95 = arith.constant 3 : index
    %c0_96 = arith.constant 0 : index
    %c0_97 = arith.constant 0 : index
    %163 = vector.load %arg5[%c3_95, %c0_96, %c0_97] : memref<4x16x1xf32, #tpu.memory_space<vmem>>, vector<1x16x1xf32>
    %164 = vector.shape_cast %163 : vector<1x16x1xf32> to vector<16x1xf32>
    %165 = vector.extract_strided_slice %160 {offsets = [0, 0], sizes = [16, 128], strides = [1, 1]} : vector<16x768xf32> to vector<16x128xf32>
    %166 = vector.extract_strided_slice %160 {offsets = [0, 0], sizes = [16, 640], strides = [1, 1]} : vector<16x768xf32> to vector<16x640xf32>
    %167 = tpu.concatenate %165, %166 in 1 : vector<16x128xf32>, vector<16x640xf32> -> vector<16x768xf32>
    %168 = vector.extract_strided_slice %160 {offsets = [0, 128], sizes = [16, 640], strides = [1, 1]} : vector<16x768xf32> to vector<16x640xf32>
    %169 = vector.extract_strided_slice %160 {offsets = [0, 640], sizes = [16, 128], strides = [1, 1]} : vector<16x768xf32> to vector<16x128xf32>
    %170 = tpu.concatenate %168, %169 in 1 : vector<16x640xf32>, vector<16x128xf32> -> vector<16x768xf32>
    %171 = tpu.concatenate %167, %160, %170 in 0 : vector<16x768xf32>, vector<16x768xf32>, vector<16x768xf32> -> vector<48x768xf32>
    %cst_98 = arith.constant dense<0.000000e+00> : vector<16x768xf32>
    %172 = tpu.matmul %162, %171, %cst_98 {dimension_numbers = #tpu.dot_dimension_numbers<[1], [0], [0], [1], [0, 0, 1, 1], [], []>} : vector<16x48xf32>, vector<48x768xf32>, vector<16x768xf32> -> vector<16x768xf32>
    %173 = vector.broadcast %164 : vector<16x1xf32> to vector<16x768xf32>
    %174 = arith.addf %172, %173 : vector<16x768xf32>
    %175 = arith.addf %174, %160 : vector<16x768xf32>
    %cst_99 = arith.constant 0.000000e+00 : f32
    %176 = vector.broadcast %cst_99 : f32 to vector<16x768xf32>
    %177 = arith.maximumf %175, %176 : vector<16x768xf32>
    %c3_100 = arith.constant 3 : index
    %c0_101 = arith.constant 0 : index
    %c0_102 = arith.constant 0 : index
    %178 = vector.load %arg6[%c3_100, %c0_101, %c0_102] : memref<4x16x48xf32, #tpu.memory_space<vmem>>, vector<1x16x48xf32>
    %179 = vector.shape_cast %178 : vector<1x16x48xf32> to vector<16x48xf32>
    %c3_103 = arith.constant 3 : index
    %c0_104 = arith.constant 0 : index
    %c0_105 = arith.constant 0 : index
    %180 = vector.load %arg7[%c3_103, %c0_104, %c0_105] : memref<4x16x1xf32, #tpu.memory_space<vmem>>, vector<1x16x1xf32>
    %181 = vector.shape_cast %180 : vector<1x16x1xf32> to vector<16x1xf32>
    %182 = vector.extract_strided_slice %177 {offsets = [0, 0], sizes = [16, 128], strides = [1, 1]} : vector<16x768xf32> to vector<16x128xf32>
    %183 = vector.extract_strided_slice %177 {offsets = [0, 0], sizes = [16, 640], strides = [1, 1]} : vector<16x768xf32> to vector<16x640xf32>
    %184 = tpu.concatenate %182, %183 in 1 : vector<16x128xf32>, vector<16x640xf32> -> vector<16x768xf32>
    %185 = vector.extract_strided_slice %177 {offsets = [0, 128], sizes = [16, 640], strides = [1, 1]} : vector<16x768xf32> to vector<16x640xf32>
    %186 = vector.extract_strided_slice %177 {offsets = [0, 640], sizes = [16, 128], strides = [1, 1]} : vector<16x768xf32> to vector<16x128xf32>
    %187 = tpu.concatenate %185, %186 in 1 : vector<16x640xf32>, vector<16x128xf32> -> vector<16x768xf32>
    %188 = tpu.concatenate %184, %177, %187 in 0 : vector<16x768xf32>, vector<16x768xf32>, vector<16x768xf32> -> vector<48x768xf32>
    %cst_106 = arith.constant dense<0.000000e+00> : vector<16x768xf32>
    %189 = tpu.matmul %179, %188, %cst_106 {dimension_numbers = #tpu.dot_dimension_numbers<[1], [0], [0], [1], [0, 0, 1, 1], [], []>} : vector<16x48xf32>, vector<48x768xf32>, vector<16x768xf32> -> vector<16x768xf32>
    %190 = vector.broadcast %181 : vector<16x1xf32> to vector<16x768xf32>
    %191 = arith.addf %189, %190 : vector<16x768xf32>
    %192 = arith.addf %191, %177 : vector<16x768xf32>
    %cst_107 = arith.constant 0.000000e+00 : f32
    %193 = vector.broadcast %cst_107 : f32 to vector<16x768xf32>
    %194 = arith.maximumf %192, %193 : vector<16x768xf32>
    %c3_108 = arith.constant 3 : index
    %c0_109 = arith.constant 0 : index
    %c0_110 = arith.constant 0 : index
    %195 = vector.load %arg8[%c3_108, %c0_109, %c0_110] : memref<4x1x16xf32, #tpu.memory_space<vmem>>, vector<1x1x16xf32>
    %196 = vector.shape_cast %195 : vector<1x1x16xf32> to vector<1x16xf32>
    %cst_111 = arith.constant dense<0.000000e+00> : vector<1x768xf32>
    %197 = tpu.matmul %196, %194, %cst_111 {dimension_numbers = #tpu.dot_dimension_numbers<[1], [0], [0], [1], [0, 0, 1, 1], [], []>} : vector<1x16xf32>, vector<16x768xf32>, vector<1x768xf32> -> vector<1x768xf32>
    %c3_112 = arith.constant 3 : index
    %c0_113 = arith.constant 0 : index
    %c0_114 = arith.constant 0 : index
    %198 = vector.load %arg9[%c3_112, %c0_113, %c0_114] : memref<4x1x1xf32, #tpu.memory_space<vmem>>, vector<1x1x1xf32>
    %199 = vector.shape_cast %198 : vector<1x1x1xf32> to vector<1x1xf32>
    %200 = vector.broadcast %199 : vector<1x1xf32> to vector<1x768xf32>
    %201 = arith.addf %197, %200 : vector<1x768xf32>
    %c0_115 = arith.constant 0 : index
    %c0_116 = arith.constant 0 : index
    %202 = vector.load %arg10[%c0_115, %c0_116] : memref<1024x32xf32, #tpu.memory_space<vmem>>, vector<1024x32xf32>
    %cst_117 = arith.constant dense<0.000000e+00> : vector<1x32xf32>
    %203 = tpu.matmul %100, %202, %cst_117 {dimension_numbers = #tpu.dot_dimension_numbers<[1], [0], [0], [1], [0, 0, 1, 1], [], []>} : vector<1x1024xf32>, vector<1024x32xf32>, vector<1x32xf32> -> vector<1x32xf32>
    %c0_118 = arith.constant 0 : index
    %c0_119 = arith.constant 0 : index
    %204 = vector.load %arg11[%c0_118, %c0_119] : memref<768x32xf32, #tpu.memory_space<vmem>>, vector<768x32xf32>
    %cst_120 = arith.constant dense<0.000000e+00> : vector<1x32xf32>
    %205 = tpu.matmul %201, %204, %cst_120 {dimension_numbers = #tpu.dot_dimension_numbers<[1], [0], [0], [1], [0, 0, 1, 1], [], []>} : vector<1x768xf32>, vector<768x32xf32>, vector<1x32xf32> -> vector<1x32xf32>
    %206 = arith.addf %203, %205 : vector<1x32xf32>
    %c0_121 = arith.constant 0 : index
    %c0_122 = arith.constant 0 : index
    %207 = vector.load %arg12[%c0_121, %c0_122] : memref<1x32xf32, #tpu.memory_space<vmem>>, vector<1x32xf32>
    %208 = arith.addf %206, %207 : vector<1x32xf32>
    %cst_123 = arith.constant 0.000000e+00 : f32
    %209 = vector.broadcast %cst_123 : f32 to vector<1x32xf32>
    %210 = arith.maximumf %208, %209 : vector<1x32xf32>
    %c0_124 = arith.constant 0 : index
    %c0_125 = arith.constant 0 : index
    %211 = vector.load %arg13[%c0_124, %c0_125] : memref<32x128xf32, #tpu.memory_space<vmem>>, vector<32x128xf32>
    %cst_126 = arith.constant dense<0.000000e+00> : vector<1x128xf32>
    %212 = tpu.matmul %210, %211, %cst_126 {dimension_numbers = #tpu.dot_dimension_numbers<[1], [0], [0], [1], [0, 0, 1, 1], [], []>} : vector<1x32xf32>, vector<32x128xf32>, vector<1x128xf32> -> vector<1x128xf32>
    %c0_127 = arith.constant 0 : index
    %c0_128 = arith.constant 0 : index
    %213 = vector.load %arg14[%c0_127, %c0_128] : memref<1x128xf32, #tpu.memory_space<vmem>>, vector<1x128xf32>
    %214 = arith.addf %212, %213 : vector<1x128xf32>
    %c0_129 = arith.constant 0 : index
    %c0_130 = arith.constant 0 : index
    %215 = vector.load %arg15[%c0_129, %c0_130] : memref<1x128xf32, #tpu.memory_space<vmem>>, vector<1x128xf32>
    tpu.vector_store %arg15[%c0_129, %c0_130], %214 {strides = array<i32>} : memref<1x128xf32, #tpu.memory_space<vmem>>, vector<1x128xf32>,
    return
  }
}

</mosaic_0001>

<bundles_post_ra>
// kernel: squeeze.1
= control target key start
LH: loop header
LB: loop body
LE: loop exit
PB: predicated region body
PF: predicated region fallthrough
CT: control target
= control target key end

     0   :  { %s80_s0 = inlined_call_operand.vmem [shape: f32[4], index: 0, kind: input, shape index: {}]   ;;  %s81_s1 = inlined_call_operand.hbm [shape: f32[2,2], index: 1, kind: output, shape index: {}]  }
   0x1   :  { %v5_v0 = vld [vmem:[%s80_s0] sm:$0x1] }
   0x2   :  { %2 = vsyncpa [#allocation1], 0  ;;  %6 = vst [vmem:[#allocation3] sm:$0x1] %v5_v0  ;;  %vm8_vm0 = vcmask 15360   ;;  %s62_s0 = smov 126  }
   0x3   :  { %s63_s8 = smov [#allocation0]   ;;  %s27_s1 = sshll.u32 %s81_s1, 4  ;;  %s28_s1 = int_to_ptr.hbm [resolvable:$true] %s27_s1 }
   0x4   :  { %s25_s9 = sshll.u32 %s63_s8, 4  ;;  %s26_s9 = int_to_ptr.vmem [resolvable:$true] %s25_s9 }
   0x9   :  { %v10_v1 = vld [vmem:[#allocation3] sm:$0x1]  }
   0xa   :  { %v7_v2 = vld [vmem:[#allocation3] sm:$0x1]   ;;  %11 = vrot.lane.b32.xlu0 %v10_v1, %s62_s0 }
   0xb   :  { %9 = vst.msk [vmem:[#allocation2] sm:$0x1] %vm8_vm0, %v7_v2  }
  0x7c   :  { %v12_v3 = vpop.permute.xlu0 %11  }
  0x7d   :  { %15 = vst.msk [vmem:[#allocation2 + $0x1] sm:$0x1] %vm8_vm0, %v12_v3  }
  0x84   :  { %v18_v4 = vld [vmem:[#allocation2] sm:$0x3] }
  0x85   :  { %21 = vst [vmem:[#allocation0] sm:$0x3] %v18_v4 }
  0x86   :  { %30 = dma.vmem_to_hbm [thread:$0]  %s26_s9, 32, %s28_s1, [#allocation1]  }
  0x87   :  { %60 = dma.done.wait [#allocation1], 32  }
  0x88   :  { %61 = vsyncadd [#allocation1], 4294967264 }
  0x89   :  { %33 = vsyncpa [#allocation1], 1 }

// kernel: only_rc_forward.1
= control target key start
LH: loop header
LB: loop body
LE: loop exit
PB: predicated region body
PF: predicated region fallthrough
CT: control target
= control target key end

     0   :  { %v3334_v0 = vmov 0   ;;  %vm138_vm0 = vcmask 392192   ;;  %vm605_vm1 = vcmask 130048   ;;  %vm3118_vm2 = vcmask 261120   ;;  %s5412_s3 = inlined_call_operand.vmem [shape: f32[4,16,1], index: 3, kind: input, shape index: {}]   ;;  %s5413_s2 = inlined_call_operand.vmem [shape: f32[4,16,1], index: 2, kind: input, shape index: {}]   ;;  %s5414_s5 = inlined_call_operand.vmem [shape: f32[4,16,1], index: 5, kind: input, shape index: {}]   ;;  %s5415_s7 = inlined_call_operand.vmem [shape: f32[4,16,1], index: 7, kind: input, shape index: {}]   ;;  %s5416_s9 = inlined_call_operand.vmem [shape: f32[4,1,1], index: 9, kind: input, shape index: {}]   ;;  %s5417_s0 = inlined_call_operand.vmem [shape: f32[1,1024], index: 0, kind: input, shape index: {}]   ;;  %s5418_s4 = inlined_call_operand.vmem [shape: f32[4,16,48], index: 4, kind: input, shape index: {}]   ;;  %s5419_s6 = inlined_call_operand.vmem [shape: f32[4,16,48], index: 6, kind: input, shape index: {}]   ;;  %s5420_s8 = inlined_call_operand.vmem [shape: f32[4,1,16], index: 8, kind: input, shape index: {}]   ;;  %s5421_s1 = inlined_call_operand.vmem [shape: f32[1,768], index: 1, kind: input, shape index: {}]   ;;  %s5422_s11 = inlined_call_operand.vmem [shape: f32[768,32], index: 11, kind: input, shape index: {}]   ;;  %s5423_s10 = inlined_call_operand.vmem [shape: f32[1024,32], index: 10, kind: input, shape index: {}]   ;;  %s5424_s13 = inlined_call_operand.vmem [shape: f32[32,128], index: 13, kind: input, shape index: {}]   ;;  %s5425_s12 = inlined_call_operand.vmem [shape: f32[1,32], index: 12, kind: input, shape index: {}]   ;;  %s5426_s14 = inlined_call_operand.vmem [shape: f32[1,128], index: 14, kind: input, shape index: {}]   ;;  %s5427_s15 = inlined_call_operand.vmem [shape: f32[1,128], index: 15, kind: output, shape index: {}]  }
   0x1   :  { %3332 = vset.pattern.permute.xlu1 %v3334_v0  ;;  %3331 = vset.pattern.permute.xlu0 %v3334_v0  ;;  %v97_v1 = vld [vmem:[%s5412_s3 + $0x8] sm:$0xff]  ;;  %v96_v4 = vld [vmem:[%s5412_s3] sm:$0xff]  ;;  %v3187_v10 = vld [vmem:[%s5413_s2 + $0x10] sm:$0xff] }
   0x2   :  { %v52_v2 = vld [vmem:[%s5413_s2 + $0x8] sm:$0xff]  ;;  %105 = vperm.xlu1 %3332, %v97_v1   ;;  %3333 = vset.pattern.permute.xlu2 %v3334_v0  ;;  %v51_v5 = vld [vmem:[%s5413_s2] sm:$0xff]  ;;  %v3188_v11 = vld [vmem:[%s5413_s2 + $0x18] sm:$0xff] }
   0x3   :  { %60 = vperm.xlu0 %3331, %v52_v2   ;;  %v127_v3 = vld [vmem:[%s5414_s5 + $0x8] sm:$0xff]  ;;  %v126_v6 = vld [vmem:[%s5414_s5] sm:$0xff]  ;;  %v3190_v12 = vld [vmem:[%s5412_s3 + $0x18] sm:$0xff] }
   0x4   :  { %135 = vperm.xlu2 %3333, %v127_v3   ;;  %v363_v7 = vld [vmem:[%s5415_s7] sm:$0xff]  ;;  %v364_v8 = vld [vmem:[%s5415_s7 + $0x8] sm:$0xff]  ;;  %v3194_v13 = vld [vmem:[%s5414_s5 + $0x18] sm:$0xff] }
   0x5   :  { %v598_v9 = vld [vmem:[%s5416_s9] sm:$0x1]  ;;  %v3189_v14 = vld [vmem:[%s5412_s3 + $0x10] sm:$0xff]  ;;  %v3214_v17 = vld [vmem:[%s5415_s7 + $0x18] sm:$0xff] }
   0x6   :  { %v3193_v15 = vld [vmem:[%s5414_s5 + $0x10] sm:$0xff]  ;;  %v3242_v18 = vld [vmem:[%s5413_s2 + $0x28] sm:$0xff]  ;;  %v3241_v20 = vld [vmem:[%s5413_s2 + $0x20] sm:$0xff] }
   0x7   :  { %v3213_v16 = vld [vmem:[%s5415_s7 + $0x10] sm:$0xff]  ;;  %v3244_v19 = vld [vmem:[%s5412_s3 + $0x28] sm:$0xff]  ;;  %v3243_v21 = vld [vmem:[%s5412_s3 + $0x20] sm:$0xff] }
   0x8   :  { %v3247_v22 = vld [vmem:[%s5414_s5 + $0x20] sm:$0xff]  ;;  %v3248_v23 = vld [vmem:[%s5414_s5 + $0x28] sm:$0xff]  ;;  %v3288_v26 = vld [vmem:[%s5412_s3 + $0x38] sm:$0xff] }
   0x9   :  { %v3278_v24 = vld [vmem:[%s5416_s9 + $0x2] sm:$0x1]  ;;  %v3285_v27 = vld [vmem:[%s5413_s2 + $0x30] sm:$0xff]  ;;  %v3292_v29 = vld [vmem:[%s5414_s5 + $0x38] sm:$0xff] }
   0xa   :  { %100 = vperm.xlu1 %3332, %v96_v4   ;;  %v3263_v25 = vld [vmem:[%s5415_s7 + $0x20] sm:$0xff]  ;;  %v3291_v28 = vld [vmem:[%s5414_s5 + $0x30] sm:$0xff] }
   0xb   :  { %55 = vperm.xlu0 %3331, %v51_v5   ;;  %v3322_v30 = vld [vmem:[%s5416_s9 + $0x3] sm:$0x1]  ;;  %v3307_v31 = vld [vmem:[%s5415_s7 + $0x30] sm:$0xff] }
   0xc   :  { %130 = vperm.xlu2 %3333, %v126_v6   ;;  %v3511_v32 = vld [vmem:[%s5417_s0] sm:$0xff] }
   0xd   :  { %v65_v33 = vperm.slane %v3511_v32, 1  ;;  %v66_v34 = vperm.slane %v3511_v32, 2  ;;  %v67_v35 = vperm.slane %v3511_v32, 3  ;;  %v69_v36 = vperm.slane %v3511_v32, 5  ;;  %v124_v6 = vld [vmem:[%s5418_s4] sm:$0xff] }
   0xe   :  { %v64_v47 = vperm.slane %v3511_v32, 0  ;;  %v68_v48 = vperm.slane %v3511_v32, 4  ;;  %v70_v2 = vperm.slane %v3511_v32, 6  ;;  %v71_v4 = vperm.slane %v3511_v32, 7 }
  0x12   :  { %367 = vperm.xlu1 %3332, %v363_v7  }
  0x13   :  { %372 = vperm.xlu0 %3331, %v364_v8  }
  0x14   :  { %601 = vperm.xlu2 %3333, %v598_v9  }
  0x1a   :  { %774 = vperm.xlu1 %3332, %v3187_v10  }
  0x1b   :  { %779 = vperm.xlu0 %3331, %v3188_v11  }
  0x1c   :  { %816 = vperm.xlu2 %3333, %v3190_v12   ;;  %v3264_v12 = vld [vmem:[%s5415_s7 + $0x28] sm:$0xff] }
  0x22   :  { %848 = vperm.xlu1 %3332, %v3194_v13  }
  0x23   :  { %811 = vperm.xlu0 %3331, %v3189_v14  }
  0x24   :  { %843 = vperm.xlu2 %3333, %v3193_v15   ;;  %v125_v15 = vld [vmem:[%s5418_s4 + $0x8] sm:$0xff] }
  0x2a   :  { %1081 = vperm.xlu1 %3332, %v3213_v16   ;;  %v3286_v16 = vld [vmem:[%s5413_s2 + $0x38] sm:$0xff] }
  0x2b   :  { %1086 = vperm.xlu0 %3331, %v3214_v17   ;;  %v3287_v17 = vld [vmem:[%s5412_s3 + $0x30] sm:$0xff] }
  0x2c   :  { %1495 = vperm.xlu2 %3333, %v3242_v18   ;;  %v3308_v18 = vld [vmem:[%s5415_s7 + $0x38] sm:$0xff] }
  0x32   :  { %1533 = vperm.xlu1 %3332, %v3244_v19   ;;  %v3232_v19 = vld [vmem:[%s5416_s9 + $0x1] sm:$0x1] }
  0x33   :  { %1490 = vperm.xlu0 %3331, %v3241_v20  }
  0x34   :  { %1528 = vperm.xlu2 %3333, %v3243_v21  }
  0x3a   :  { %1556 = vperm.xlu1 %3332, %v3247_v22  }
  0x3b   :  { %1561 = vperm.xlu0 %3331, %v3248_v23  }
  0x3c   :  { %1745 = vperm.xlu2 %3333, %v3264_v12  }
  0x42   :  { %1922 = vperm.xlu1 %3332, %v3278_v24  }
  0x43   :  { %1740 = vperm.xlu0 %3331, %v3263_v25  }
  0x44   :  { %2059 = vperm.xlu2 %3333, %v3286_v16  }
  0x4a   :  { %2090 = vperm.xlu1 %3332, %v3288_v26  }
  0x4b   :  { %2054 = vperm.xlu0 %3331, %v3285_v27  }
  0x4c   :  { %2085 = vperm.xlu2 %3333, %v3287_v17  }
  0x52   :  { %2113 = vperm.xlu1 %3332, %v3291_v28  }
  0x53   :  { %2118 = vperm.xlu0 %3331, %v3292_v29  }
  0x54   :  { %2302 = vperm.xlu2 %3333, %v3308_v18  }
  0x5a   :  { %2479 = vperm.xlu1 %3332, %v3322_v30  }
  0x5b   :  { %2297 = vperm.xlu0 %3331, %v3307_v31  }
  0x5c   :  { %1317 = vperm.xlu2 %3333, %v3232_v19  }
  0x5e   :  { %v3648_v20 = vpop.permute.xlu2 %135 }
  0x66   :  { %v3650_v24 = vpop.permute.xlu2 %130 }
  0x74   :  { %v3517_v37 = vpop.permute.xlu1 %105 }
  0x75   :  { %v61_v38 = vpop.permute.xlu0 %60 }
  0x76   :  { %v89_v39 = vmul.f32 %v65_v33, %v61_v38  ;;  %v90_v40 = vmul.f32 %v66_v34, %v61_v38  ;;  %v91_v41 = vmul.f32 %v67_v35, %v61_v38  ;;  %v93_v42 = vmul.f32 %v69_v36, %v61_v38 }
  0x77   :  { %v88_v50 = vmul.f32 %v64_v47, %v61_v38  ;;  %v92_v56 = vmul.f32 %v68_v48, %v61_v38  ;;  %v94_v5 = vmul.f32 %v70_v2, %v61_v38  ;;  %v95_v7 = vmul.f32 %v71_v4, %v61_v38 }
  0x78   :  { %v3520_v43 = vadd.f32 %v3517_v37, %v89_v39  ;;  %v3523_v44 = vadd.f32 %v3517_v37, %v90_v40  ;;  %v3526_v45 = vadd.f32 %v3517_v37, %v91_v41  ;;  %v3529_v46 = vadd.f32 %v3517_v37, %v93_v42 }
  0x79   :  { %v3548_v63 = vadd.f32 %v3517_v37, %v88_v50  ;;  %v3553_v0 = vadd.f32 %v3517_v37, %v92_v56  ;;  %v3583_v10 = vadd.f32 %v3517_v37, %v94_v5  ;;  %v3588_v11 = vadd.f32 %v3517_v37, %v95_v7 }
  0x7a   :  { %155 = vmatpush.msra.mxu3 %v3520_v43  ;;  %178 = vmatpush.msra.mxu1 %v3523_v44 }
  0x7b   :  { %201 = vmatpush.msra.mxu2 %v3526_v45  ;;  %247 = vmatpush.msra.mxu0 %v3529_v46 }
  0x7c   :  { %v101_v55 = vpop.permute.xlu1 %100 }
  0x7d   :  { %v56_v49 = vpop.permute.xlu0 %55 }
  0x7e   :  { %v81_v51 = vmul.f32 %v65_v33, %v56_v49  ;;  %v82_v52 = vmul.f32 %v66_v34, %v56_v49  ;;  %v83_v53 = vmul.f32 %v67_v35, %v56_v49  ;;  %v85_v54 = vmul.f32 %v69_v36, %v56_v49 }
  0x7f   :  { %v80_v57 = vmul.f32 %v64_v47, %v56_v49  ;;  %v84_v62 = vmul.f32 %v68_v48, %v56_v49  ;;  %v86_v8 = vmul.f32 %v70_v2, %v56_v49  ;;  %v87_v9 = vmul.f32 %v71_v4, %v56_v49 }
  0x80   :  { %v3537_v58 = vadd.f32 %v101_v55, %v81_v51  ;;  %v3539_v59 = vadd.f32 %v101_v55, %v82_v52  ;;  %v3541_v60 = vadd.f32 %v101_v55, %v83_v53  ;;  %v3543_v61 = vadd.f32 %v101_v55, %v85_v54 }
  0x81   :  { %v3557_v1 = vadd.f32 %v101_v55, %v80_v57  ;;  %v3562_v3 = vadd.f32 %v101_v55, %v84_v62  ;;  %v3595_v13 = vadd.f32 %v101_v55, %v86_v8  ;;  %v3599_v14 = vadd.f32 %v101_v55, %v87_v9 }
  0x82   :  { %156 = vmatpush.msra.mxu3 %v3537_v58  ;;  %179 = vmatpush.msra.mxu1 %v3539_v59 }
  0x83   :  { %202 = vmatpush.msra.mxu2 %v3541_v60  ;;  %248 = vmatpush.msra.mxu0 %v3543_v61 }
  0x84   :  { %157 = vmatpush.msra.mxu3 %v3548_v63  ;;  %180 = vmatpush.msra.mxu1 %v3520_v43 }
  0x85   :  { %203 = vmatpush.msra.mxu2 %v3523_v44  ;;  %249 = vmatpush.msra.mxu0 %v3553_v0 }
  0x86   :  { %158 = vmatpush.msra.mxu3 %v3557_v1  ;;  %181 = vmatpush.msra.mxu1 %v3537_v58 }
  0x87   :  { %204 = vmatpush.msra.mxu2 %v3539_v59  ;;  %250 = vmatpush.msra.mxu0 %v3562_v3 }
  0x88   :  { %159 = vmatpush.msra.mxu3 %v3548_v63  ;;  %182 = vmatpush.msra.mxu1 %v3548_v63 }
  0x89   :  { %205 = vmatpush.msra.mxu2 %v3520_v43  ;;  %251 = vmatpush.msra.mxu0 %v3526_v45 }
  0x8a   :  { %160 = vmatpush.msra.mxu3 %v3557_v1  ;;  %183 = vmatpush.msra.mxu1 %v3557_v1 }
  0x8b   :  { %206 = vmatpush.msra.mxu2 %v3537_v58  ;;  %252 = vmatpush.msra.mxu0 %v3541_v60 }
  0x8c   :  { %3147 = vmatmul.msk.f32.vlgmr.msra.gmra.mxu3 %vm138_vm0, %v124_v6  ;;  %3149 = vmatmul.msk.f32.vlgmr.msra.gmra.mxu1 %vm138_vm0, %v124_v6 }
  0x8d   :  { %3151 = vmatmul.msk.f32.vlgmr.msra.gmra.mxu2 %vm138_vm0, %v124_v6  ;;  %224 = vmatpush.msrb.mxu3 %v3553_v0 }
  0x8e   :  { %3155 = vmatmul.msk.f32.vlgmr.msra.gmra.mxu0 %vm138_vm0, %v124_v6  ;;  %270 = vmatpush.msrb.mxu1 %v3583_v10 }
  0x8f   :  { %293 = vmatpush.msrb.mxu2 %v3588_v11  ;;  %225 = vmatpush.msrb.mxu3 %v3562_v3 }
  0x90   :  { %271 = vmatpush.msrb.mxu1 %v3595_v13 }
  0x91   :  { %294 = vmatpush.msrb.mxu2 %v3599_v14  ;;  %226 = vmatpush.msrb.mxu3 %v3526_v45 }
  0x92   :  { %272 = vmatpush.msrb.mxu1 %v3529_v46 }
  0x93   :  { %295 = vmatpush.msrb.mxu2 %v3583_v10  ;;  %227 = vmatpush.msrb.mxu3 %v3541_v60 }
  0x94   :  { %273 = vmatpush.msrb.mxu1 %v3543_v61  ;;  %3148 = vmatmul.msk.f32.gmra.mxu3 %vm138_vm0, %v125_v15 }
  0x95   :  { %296 = vmatpush.msrb.mxu2 %v3595_v13  ;;  %3150 = vmatmul.msk.f32.gmra.mxu1 %vm138_vm0, %v125_v15 }
  0x96   :  { %3152 = vmatmul.msk.f32.gmra.mxu2 %vm138_vm0, %v125_v15  ;;  %228 = vmatpush.msrb.mxu3 %v3523_v44 }
  0x97   :  { %3156 = vmatmul.msk.f32.gmra.mxu0 %vm138_vm0, %v125_v15  ;;  %274 = vmatpush.msrb.mxu1 %v3553_v0 }
  0x98   :  { %297 = vmatpush.msrb.mxu2 %v3529_v46  ;;  %229 = vmatpush.msrb.mxu3 %v3539_v59 }
  0x99   :  { %275 = vmatpush.msrb.mxu1 %v3562_v3 }
  0x9a   :  { %316 = vmatpush.msra.mxu3 %v3588_v11  ;;  %298 = vmatpush.msrb.mxu2 %v3543_v61 }
  0x9c   :  { %317 = vmatpush.msra.mxu3 %v3599_v14 }
  0x9d   :  { %3153 = vmatmul.msk.f32.vlgmr.msrb.gmra.mxu3 %vm138_vm0, %v124_v6  ;;  %3157 = vmatmul.msk.f32.vlgmr.msrb.gmra.mxu1 %vm138_vm0, %v124_v6 }
  0x9e   :  { %318 = vmatpush.msra.mxu3 %v3588_v11  ;;  %3159 = vmatmul.msk.f32.vlgmr.msrb.gmra.mxu2 %vm138_vm0, %v124_v6 }
  0xa0   :  { %319 = vmatpush.msra.mxu3 %v3599_v14 }
  0xa2   :  { %320 = vmatpush.msra.mxu3 %v3583_v10 }
  0xa4   :  { %321 = vmatpush.msra.mxu3 %v3595_v13 }
  0xa5   :  { %3154 = vmatmul.msk.f32.gmra.mxu3 %vm138_vm0, %v125_v15  ;;  %3158 = vmatmul.msk.f32.gmra.mxu1 %vm138_vm0, %v125_v15 }
  0xa6   :  { %3160 = vmatmul.msk.f32.gmra.mxu2 %vm138_vm0, %v125_v15 }
  0xad   :  { %3161 = vmatmul.msk.f32.vlgmr.msra.gmra.mxu3 %vm138_vm0, %v124_v6 }
  0xb5   :  { %3162 = vmatmul.msk.f32.gmra.mxu3 %vm138_vm0, %v125_v15  ;;  %v362_v15 = vld [vmem:[%s5419_s6 + $0x8] sm:$0xff] }
 0x109   :  { %v185_v21 = vpop.f32.mrf.mxu1 }
 0x10a   :  { %v186_v26 = vadd.f32 %v185_v21, %v3650_v24 }
 0x10b   :  { %v254_v22 = vpop.f32.mrf.mxu0 }
 0x10c   :  { %v255_v28 = vadd.f32 %v254_v22, %v3650_v24  ;;  %v330_v31 = vadd.f32 %v186_v26, %v3537_v58 }
 0x10e   :  { %v333_v35 = vadd.f32 %v255_v28, %v3562_v3  ;;  %v3665_v41 = vmax.f32 %v330_v31, 0.0  ;;  %v3799_v28 = vpop.permute.xlu0 %372 }
 0x10f   :  { %v162_v23 = vpop.f32.mrf.mxu3 }
 0x110   :  { %v208_v25 = vpop.f32.mrf.mxu2  ;;  %v163_v34 = vadd.f32 %v162_v23, %v3650_v24  ;;  %v3673_v51 = vmax.f32 %v333_v35, 0.0 }
 0x111   :  { %v209_v39 = vadd.f32 %v208_v25, %v3650_v24 }
 0x112   :  { %v188_v27 = vpop.f32.mrf.mxu1  ;;  %v329_v47 = vadd.f32 %v163_v34, %v3557_v1 }
 0x113   :  { %v189_v29 = vadd.f32 %v188_v27, %v3648_v20  ;;  %v331_v52 = vadd.f32 %v209_v39, %v3539_v59  ;;  %v3809_v39 = vld [vmem:[%s5420_s8] sm:$0x1] }
 0x114   :  { %v257_v30 = vpop.f32.mrf.mxu0  ;;  %v3682_v55 = vmax.f32 %v329_v47, 0.0 }
 0x115   :  { %v338_v32 = vadd.f32 %v189_v29, %v3520_v43  ;;  %v258_v33 = vadd.f32 %v257_v30, %v3648_v20  ;;  %v3687_v58 = vmax.f32 %v331_v52, 0.0 }
 0x117   :  { %v3660_v36 = vmax.f32 %v338_v32, 0.0  ;;  %v341_v37 = vadd.f32 %v258_v33, %v3553_v0  ;;  %v165_v38 = vpop.f32.mrf.mxu3 }
 0x118   :  { %v166_v40 = vadd.f32 %v165_v38, %v3648_v20 }
 0x119   :  { %v3667_v42 = vmax.f32 %v341_v37, 0.0  ;;  %v211_v43 = vpop.f32.mrf.mxu2  ;;  %391 = vmatpush.msrb.mxu0 %v3660_v36 }
 0x11a   :  { %v337_v48 = vadd.f32 %v166_v40, %v3548_v63  ;;  %v212_v49 = vadd.f32 %v211_v43, %v3648_v20  ;;  %v277_v50 = vpop.f32.mrf.mxu1  ;;  %v3697_v63 = vld [vmem:[%s5419_s6] sm:$0xff] }
 0x11b   :  { %460 = vmatpush.msrb.mxu3 %v3667_v42  ;;  %392 = vmatpush.msrb.mxu0 %v3665_v41  ;;  %v278_v59 = vadd.f32 %v277_v50, %v3650_v24 }
 0x11c   :  { %v3678_v53 = vmax.f32 %v337_v48, 0.0  ;;  %v339_v54 = vadd.f32 %v212_v49, %v3523_v44 }
 0x11d   :  { %461 = vmatpush.msrb.mxu3 %v3673_v51  ;;  %v334_v1 = vadd.f32 %v278_v59, %v3543_v61 }
 0x11e   :  { %v3684_v56 = vmax.f32 %v339_v54, 0.0  ;;  %393 = vmatpush.msrb.mxu0 %v3678_v53 }
 0x11f   :  { %v3713_v8 = vmax.f32 %v334_v1, 0.0 }
 0x120   :  { %v231_v57 = vpop.f32.mrf.mxu3  ;;  %414 = vmatpush.msra.mxu1 %v3684_v56  ;;  %394 = vmatpush.msrb.mxu0 %v3682_v55 }
 0x121   :  { %v300_v62 = vpop.f32.mrf.mxu2  ;;  %v232_v3 = vadd.f32 %v231_v57, %v3650_v24 }
 0x122   :  { %415 = vmatpush.msra.mxu1 %v3687_v58  ;;  %v280_v44 = vpop.f32.mrf.mxu1  ;;  %395 = vmatpush.msrb.mxu0 %v3678_v53  ;;  %v301_v6 = vadd.f32 %v300_v62, %v3650_v24 }
 0x123   :  { %v281_v0 = vadd.f32 %v280_v44, %v3648_v20 }
 0x124   :  { %416 = vmatpush.msra.mxu1 %v3660_v36  ;;  %396 = vmatpush.msrb.mxu0 %v3682_v55  ;;  %v335_v16 = vadd.f32 %v301_v6, %v3595_v13 }
 0x125   :  { %v342_v2 = vadd.f32 %v281_v0, %v3529_v46  ;;  %3163 = vmatmul.msk.f32.vlgmr.msrb.gmra.mxu0 %vm138_vm0, %v3697_v63  ;;  %v332_v46 = vadd.f32 %v232_v3, %v3541_v60 }
 0x126   :  { %417 = vmatpush.msra.mxu1 %v3665_v41  ;;  %v3739_v13 = vmax.f32 %v335_v16, 0.0 }
 0x127   :  { %v3708_v4 = vmax.f32 %v342_v2, 0.0 }
 0x128   :  { %v234_v5 = vpop.f32.mrf.mxu3  ;;  %418 = vmatpush.msra.mxu1 %v3678_v53 }
 0x129   :  { %v235_v7 = vadd.f32 %v234_v5, %v3648_v20  ;;  %v303_v61 = vpop.f32.mrf.mxu2  ;;  %483 = vmatpush.msra.mxu0 %v3708_v4 }
 0x12a   :  { %v304_v12 = vadd.f32 %v303_v61, %v3648_v20  ;;  %419 = vmatpush.msra.mxu1 %v3682_v55 }
 0x12b   :  { %v340_v9 = vadd.f32 %v235_v7, %v3526_v45  ;;  %3165 = vmatmul.msk.f32.vlgmr.msra.gmra.mxu1 %vm138_vm0, %v3697_v63  ;;  %484 = vmatpush.msra.mxu0 %v3713_v8  ;;  %v3731_v45 = vmax.f32 %v332_v46, 0.0 }
 0x12c   :  { %v343_v60 = vadd.f32 %v304_v12, %v3583_v10 }
 0x12d   :  { %v3727_v17 = vmax.f32 %v340_v9, 0.0  ;;  %485 = vmatpush.msra.mxu0 %v3667_v42 }
 0x12e   :  { %v3733_v18 = vmax.f32 %v343_v60, 0.0  ;;  %3164 = vmatmul.msk.f32.gmra.mxu0 %vm138_vm0, %v362_v15 }
 0x12f   :  { %437 = vmatpush.msra.mxu2 %v3727_v17  ;;  %462 = vmatpush.msrb.mxu3 %v3727_v17 }
 0x130   :  { %486 = vmatpush.msra.mxu0 %v3673_v51  ;;  %v323_v19 = vpop.f32.mrf.mxu3  ;;  %506 = vmatpush.msrb.mxu1 %v3733_v18 }
 0x131   :  { %438 = vmatpush.msra.mxu2 %v3731_v45  ;;  %463 = vmatpush.msrb.mxu3 %v3731_v45  ;;  %v324_v10 = vadd.f32 %v323_v19, %v3650_v24 }
 0x132   :  { %487 = vmatpush.msra.mxu0 %v3727_v17  ;;  %507 = vmatpush.msrb.mxu1 %v3739_v13 }
 0x133   :  { %439 = vmatpush.msra.mxu2 %v3684_v56  ;;  %3166 = vmatmul.msk.f32.gmra.mxu1 %vm138_vm0, %v362_v15  ;;  %v336_v23 = vadd.f32 %v324_v10, %v3599_v14 }
 0x134   :  { %464 = vmatpush.msrb.mxu3 %v3684_v56  ;;  %488 = vmatpush.msra.mxu0 %v3731_v45 }
 0x135   :  { %508 = vmatpush.msrb.mxu1 %v3708_v4  ;;  %440 = vmatpush.msra.mxu2 %v3687_v58  ;;  %v3772_v26 = vmax.f32 %v336_v23, 0.0 }
 0x136   :  { %465 = vmatpush.msrb.mxu3 %v3687_v58  ;;  %3171 = vmatmul.msk.f32.vlgmr.msra.gmra.mxu0 %vm138_vm0, %v3697_v63 }
 0x137   :  { %509 = vmatpush.msrb.mxu1 %v3713_v8  ;;  %3169 = vmatmul.msk.f32.vlgmr.msrb.gmra.mxu3 %vm138_vm0, %v3697_v63 }
 0x138   :  { %441 = vmatpush.msra.mxu2 %v3660_v36  ;;  %v326_v21 = vpop.f32.mrf.mxu3 }
 0x139   :  { %510 = vmatpush.msrb.mxu1 %v3667_v42  ;;  %v327_v22 = vadd.f32 %v326_v21, %v3648_v20  ;;  %v3796_v20 = vpop.permute.xlu1 %367 }
 0x13a   :  { %442 = vmatpush.msra.mxu2 %v3665_v41 }
 0x13b   :  { %v344_v24 = vadd.f32 %v327_v22, %v3588_v11  ;;  %511 = vmatpush.msrb.mxu1 %v3673_v51  ;;  %3167 = vmatmul.msk.f32.vlgmr.msra.gmra.mxu2 %vm138_vm0, %v3697_v63 }
 0x13c   :  { %3173 = vmatmul.msk.f32.vlgmr.msrb.gmra.mxu1 %vm138_vm0, %v3697_v63 }
 0x13d   :  { %v3770_v25 = vmax.f32 %v344_v24, 0.0 }
 0x13e   :  { %3172 = vmatmul.msk.f32.gmra.mxu0 %vm138_vm0, %v362_v15 }
 0x13f   :  { %3170 = vmatmul.msk.f32.gmra.mxu3 %vm138_vm0, %v362_v15  ;;  %529 = vmatpush.msrb.mxu2 %v3770_v25 }
 0x140   :  { %552 = vmatpush.msra.mxu3 %v3770_v25 }
 0x141   :  { %530 = vmatpush.msrb.mxu2 %v3772_v26 }
 0x142   :  { %553 = vmatpush.msra.mxu3 %v3772_v26 }
 0x143   :  { %3168 = vmatmul.msk.f32.gmra.mxu2 %vm138_vm0, %v362_v15 }
 0x144   :  { %3174 = vmatmul.msk.f32.gmra.mxu1 %vm138_vm0, %v362_v15  ;;  %531 = vmatpush.msrb.mxu2 %v3733_v18 }
 0x145   :  { %554 = vmatpush.msra.mxu3 %v3770_v25 }
 0x146   :  { %532 = vmatpush.msrb.mxu2 %v3739_v13 }
 0x147   :  { %555 = vmatpush.msra.mxu3 %v3772_v26 }
 0x148   :  { %533 = vmatpush.msrb.mxu2 %v3708_v4 }
 0x149   :  { %556 = vmatpush.msra.mxu3 %v3733_v18 }
 0x14a   :  { %534 = vmatpush.msrb.mxu2 %v3713_v8 }
 0x14b   :  { %557 = vmatpush.msra.mxu3 %v3739_v13  ;;  %3175 = vmatmul.msk.f32.vlgmr.msrb.gmra.mxu2 %vm138_vm0, %v3697_v63 }
 0x14c   :  { %3177 = vmatmul.msk.f32.vlgmr.msra.gmra.mxu3 %vm138_vm0, %v3697_v63 }
 0x153   :  { %3176 = vmatmul.msk.f32.gmra.mxu2 %vm138_vm0, %v362_v15 }
 0x154   :  { %3178 = vmatmul.msk.f32.gmra.mxu3 %vm138_vm0, %v362_v15 }
 0x1a2   :  { %v398_v11 = vpop.f32.mrf.mxu0 }
 0x1a3   :  { %v399_v27 = vadd.f32 %v398_v11, %v3796_v20 }
 0x1a5   :  { %v565_v31 = vadd.f32 %v399_v27, %v3682_v55 }
 0x1a7   :  { %v581_v38 = vmax.f32 %v565_v31, 0.0 }
 0x1a8   :  { %v421_v14 = vpop.f32.mrf.mxu1 }
 0x1a9   :  { %v422_v33 = vadd.f32 %v421_v14, %v3796_v20 }
 0x1ab   :  { %v401_v29 = vpop.f32.mrf.mxu0  ;;  %v566_v40 = vadd.f32 %v422_v33, %v3665_v41 }
 0x1ac   :  { %v402_v30 = vadd.f32 %v401_v29, %v3799_v28 }
 0x1ad   :  { %v582_v49 = vmax.f32 %v566_v40, 0.0 }
 0x1ae   :  { %v573_v32 = vadd.f32 %v402_v30, %v3678_v53 }
 0x1b0   :  { %v589_v34 = vmax.f32 %v573_v32, 0.0  ;;  %v424_v35 = vpop.f32.mrf.mxu1 }
 0x1b1   :  { %v425_v37 = vadd.f32 %v424_v35, %v3799_v28 }
 0x1b2   :  { %623 = vmatpush.msrb.mxu0 %v589_v34 }
 0x1b3   :  { %v574_v43 = vadd.f32 %v425_v37, %v3660_v36  ;;  %v490_v47 = vpop.f32.mrf.mxu0  ;;  %v3859_v37 = vpop.permute.xlu1 %774 }
 0x1b4   :  { %624 = vmatpush.msrb.mxu0 %v581_v38  ;;  %v491_v53 = vadd.f32 %v490_v47, %v3796_v20 }
 0x1b5   :  { %v590_v48 = vmax.f32 %v574_v43, 0.0  ;;  %3179 = vmatmul.msk.f32.vlgmr.msrb.gmra.mxu0 %vm605_vm1, %v3809_v39 }
 0x1b6   :  { %v569_v55 = vadd.f32 %v491_v53, %v3673_v51 }
 0x1b7   :  { %643 = vmatpush.msra.mxu1 %v590_v48 }
 0x1b8   :  { %v585_v6 = vmax.f32 %v569_v55, 0.0 }
 0x1b9   :  { %v513_v50 = vpop.f32.mrf.mxu1  ;;  %644 = vmatpush.msra.mxu1 %v582_v49 }
 0x1ba   :  { %v467_v52 = vpop.f32.mrf.mxu3  ;;  %3180 = vmatmul.msk.f32.vlgmr.msra.gmra.mxu1 %vm605_vm1, %v3809_v39  ;;  %v514_v57 = vadd.f32 %v513_v50, %v3796_v20 }
 0x1bb   :  { %v493_v54 = vpop.f32.mrf.mxu0  ;;  %v468_v62 = vadd.f32 %v467_v52, %v3796_v20 }
 0x1bc   :  { %v494_v41 = vadd.f32 %v493_v54, %v3799_v28  ;;  %v570_v3 = vadd.f32 %v514_v57, %v3713_v8 }
 0x1bd   :  { %v568_v51 = vadd.f32 %v468_v62, %v3731_v45 }
 0x1be   :  { %v444_v36 = vpop.f32.mrf.mxu2  ;;  %v577_v59 = vadd.f32 %v494_v41, %v3667_v42  ;;  %v586_v8 = vmax.f32 %v570_v3, 0.0 }
 0x1bf   :  { %v445_v7 = vadd.f32 %v444_v36, %v3796_v20  ;;  %v584_v16 = vmax.f32 %v568_v51, 0.0 }
 0x1c0   :  { %v593_v63 = vmax.f32 %v577_v59, 0.0 }
 0x1c1   :  { %v516_v44 = vpop.f32.mrf.mxu1 }
 0x1c2   :  { %v517_v0 = vadd.f32 %v516_v44, %v3799_v28  ;;  %v470_v1 = vpop.f32.mrf.mxu3  ;;  %703 = vmatpush.msra.mxu0 %v593_v63  ;;  %v3893_v44 = vld [vmem:[%s5418_s4 + $0x10] sm:$0xff] }
 0x1c3   :  { %v471_v2 = vadd.f32 %v470_v1, %v3799_v28 }
 0x1c4   :  { %v578_v5 = vadd.f32 %v517_v0, %v3708_v4  ;;  %704 = vmatpush.msra.mxu0 %v585_v6  ;;  %v567_v4 = vadd.f32 %v445_v7, %v3687_v58 }
 0x1c5   :  { %v576_v42 = vadd.f32 %v471_v2, %v3727_v17  ;;  %3183 = vmatmul.msk.f32.vlgmr.msra.gmra.mxu0 %vm605_vm1, %v3809_v39 }
 0x1c6   :  { %v594_v61 = vmax.f32 %v578_v5, 0.0  ;;  %v447_v46 = vpop.f32.mrf.mxu2  ;;  %v583_v17 = vmax.f32 %v567_v4, 0.0 }
 0x1c7   :  { %v592_v9 = vmax.f32 %v576_v42, 0.0  ;;  %v448_v12 = vadd.f32 %v447_v46, %v3799_v28  ;;  %v3919_v42 = vld [vmem:[%s5418_s4 + $0x18] sm:$0xff] }
 0x1c8   :  { %723 = vmatpush.msrb.mxu1 %v594_v61 }
 0x1c9   :  { %v575_v15 = vadd.f32 %v448_v12, %v3684_v56  ;;  %683 = vmatpush.msrb.mxu3 %v592_v9 }
 0x1ca   :  { %724 = vmatpush.msrb.mxu1 %v586_v8 }
 0x1cb   :  { %v591_v60 = vmax.f32 %v575_v15, 0.0  ;;  %3184 = vmatmul.msk.f32.vlgmr.msrb.gmra.mxu1 %vm605_vm1, %v3809_v39  ;;  %684 = vmatpush.msrb.mxu3 %v584_v16 }
 0x1cc   :  { %3182 = vmatmul.msk.f32.vlgmr.msrb.gmra.mxu3 %vm605_vm1, %v3809_v39 }
 0x1cd   :  { %663 = vmatpush.msra.mxu2 %v591_v60 }
 0x1ce   :  { %v536_v45 = vpop.f32.mrf.mxu2 }
 0x1cf   :  { %v559_v19 = vpop.f32.mrf.mxu3  ;;  %664 = vmatpush.msra.mxu2 %v583_v17  ;;  %v537_v56 = vadd.f32 %v536_v45, %v3796_v20 }
 0x1d0   :  { %3181 = vmatmul.msk.f32.vlgmr.msra.gmra.mxu2 %vm605_vm1, %v3809_v39  ;;  %v560_v58 = vadd.f32 %v559_v19, %v3796_v20 }
 0x1d1   :  { %v571_v24 = vadd.f32 %v537_v56, %v3739_v13  ;;  %v602_v13 = vpop.permute.xlu2 %601 }
 0x1d2   :  { %v572_v14 = vadd.f32 %v560_v58, %v3772_v26  ;;  %v3855_v26 = vpop.permute.xlu0 %779 }
 0x1d3   :  { %v587_v31 = vmax.f32 %v571_v24, 0.0 }
 0x1d4   :  { %v588_v20 = vmax.f32 %v572_v14, 0.0 }
 0x1d6   :  { %v539_v10 = vpop.f32.mrf.mxu2 }
 0x1d7   :  { %v540_v21 = vadd.f32 %v539_v10, %v3799_v28  ;;  %v562_v22 = vpop.f32.mrf.mxu3 }
 0x1d8   :  { %v563_v23 = vadd.f32 %v562_v22, %v3799_v28  ;;  %v3853_v28 = vperm.slane %v602_v13, 0 }
 0x1d9   :  { %v579_v11 = vadd.f32 %v540_v21, %v3733_v18 }
 0x1da   :  { %v580_v27 = vadd.f32 %v563_v23, %v3770_v25  ;;  %v3869_v48 = vpop.permute.xlu0 %811 }
 0x1db   :  { %v595_v29 = vmax.f32 %v579_v11, 0.0 }
 0x1dc   :  { %v596_v30 = vmax.f32 %v580_v27, 0.0 }
 0x1dd   :  { %743 = vmatpush.msrb.mxu2 %v595_v29 }
 0x1de   :  { %763 = vmatpush.msra.mxu3 %v596_v30 }
 0x1df   :  { %744 = vmatpush.msrb.mxu2 %v587_v31 }
 0x1e0   :  { %764 = vmatpush.msra.mxu3 %v588_v20  ;;  %3185 = vmatmul.msk.f32.vlgmr.msrb.gmra.mxu2 %vm605_vm1, %v3809_v39 }
 0x1e1   :  { %3186 = vmatmul.msk.f32.vlgmr.msra.gmra.mxu3 %vm605_vm1, %v3809_v39  ;;  %v3863_v39 = vpop.permute.xlu2 %816 }
 0x232   :  { %v626_v18 = vpop.f32.mrf.mxu0 }
 0x233   :  { %v627_v25 = vadd.f32 %v626_v18, %v3853_v28 }
 0x235   :  { %v782_v34 = vperm.slane %v627_v25, 0 }
 0x237   :  { %v646_v32 = vpop.f32.mrf.mxu1  ;;  %v798_v43 = vmul.f32 %v782_v34, %v3855_v26  ;;  %v790_v49 = vmul.f32 %v782_v34, %v3859_v37 }
 0x238   :  { %v647_v33 = vadd.f32 %v646_v32, %v3853_v28  ;;  %v4028_v32 = vpop.permute.xlu1 %848 }
 0x239   :  { %v3877_v52 = vadd.f32 %v3863_v39, %v798_v43  ;;  %v3881_v54 = vadd.f32 %v3869_v48, %v790_v49 }
 0x23a   :  { %v783_v35 = vperm.slane %v647_v33, 0 }
 0x23c   :  { %v791_v38 = vmul.f32 %v783_v35, %v3859_v37  ;;  %v799_v40 = vmul.f32 %v783_v35, %v3855_v26 }
 0x23e   :  { %v3867_v47 = vadd.f32 %v3863_v39, %v799_v40  ;;  %v3873_v50 = vadd.f32 %v3869_v48, %v791_v38 }
 0x240   :  { %867 = vmatpush.msrb.mxu0 %v3867_v47 }
 0x242   :  { %868 = vmatpush.msrb.mxu0 %v3873_v50  ;;  %v706_v53 = vpop.f32.mrf.mxu0 }
 0x243   :  { %v707_v41 = vadd.f32 %v706_v53, %v3853_v28 }
 0x244   :  { %869 = vmatpush.msrb.mxu0 %v3877_v52 }
 0x245   :  { %v786_v36 = vperm.slane %v707_v41, 0 }
 0x246   :  { %870 = vmatpush.msrb.mxu0 %v3881_v54 }
 0x247   :  { %v794_v57 = vmul.f32 %v786_v36, %v3859_v37  ;;  %v802_v59 = vmul.f32 %v786_v36, %v3855_v26 }
 0x248   :  { %v726_v55 = vpop.f32.mrf.mxu1  ;;  %871 = vmatpush.msrb.mxu0 %v3877_v52 }
 0x249   :  { %v727_v62 = vadd.f32 %v726_v55, %v3853_v28  ;;  %v3896_v63 = vadd.f32 %v3863_v39, %v802_v59  ;;  %v3902_v1 = vadd.f32 %v3869_v48, %v794_v57 }
 0x24a   :  { %872 = vmatpush.msrb.mxu0 %v3881_v54 }
 0x24b   :  { %v787_v0 = vperm.slane %v727_v62, 0  ;;  %3195 = vmatmul.msk.f32.vlgmr.msrb.gmra.mxu0 %vm138_vm0, %v3893_v44  ;;  %936 = vmatpush.msrb.mxu3 %v3896_v63 }
 0x24d   :  { %v795_v2 = vmul.f32 %v787_v0, %v3859_v37  ;;  %v803_v3 = vmul.f32 %v787_v0, %v3855_v26  ;;  %937 = vmatpush.msrb.mxu3 %v3902_v1 }
 0x24f   :  { %v3908_v5 = vadd.f32 %v3863_v39, %v803_v3  ;;  %v686_v6 = vpop.f32.mrf.mxu3  ;;  %v3913_v7 = vadd.f32 %v3869_v48, %v795_v2 }
 0x250   :  { %v687_v51 = vadd.f32 %v686_v6, %v3853_v28 }
 0x251   :  { %959 = vmatpush.msra.mxu0 %v3908_v5 }
 0x252   :  { %v785_v61 = vperm.slane %v687_v51, 0 }
 0x253   :  { %960 = vmatpush.msra.mxu0 %v3913_v7  ;;  %v666_v46 = vpop.f32.mrf.mxu2 }
 0x254   :  { %v793_v9 = vmul.f32 %v785_v61, %v3859_v37  ;;  %v801_v12 = vmul.f32 %v785_v61, %v3855_v26  ;;  %v667_v8 = vadd.f32 %v666_v46, %v3853_v28  ;;  %3196 = vmatmul.msk.f32.gmra.mxu0 %vm138_vm0, %v3919_v42 }
 0x255   :  { %961 = vmatpush.msra.mxu0 %v3896_v63 }
 0x256   :  { %v3929_v4 = vadd.f32 %v3863_v39, %v801_v12  ;;  %v784_v15 = vperm.slane %v667_v8, 0  ;;  %v3933_v16 = vadd.f32 %v3869_v48, %v793_v9 }
 0x257   :  { %962 = vmatpush.msra.mxu0 %v3902_v1 }
 0x258   :  { %v792_v60 = vmul.f32 %v784_v15, %v3859_v37  ;;  %v800_v17 = vmul.f32 %v784_v15, %v3855_v26  ;;  %913 = vmatpush.msra.mxu2 %v3929_v4  ;;  %938 = vmatpush.msrb.mxu3 %v3929_v4 }
 0x259   :  { %963 = vmatpush.msra.mxu0 %v3929_v4 }
 0x25a   :  { %v3941_v45 = vadd.f32 %v3863_v39, %v800_v17  ;;  %914 = vmatpush.msra.mxu2 %v3933_v16  ;;  %939 = vmatpush.msrb.mxu3 %v3933_v16  ;;  %v3947_v19 = vadd.f32 %v3869_v48, %v792_v60 }
 0x25b   :  { %964 = vmatpush.msra.mxu0 %v3933_v16 }
 0x25c   :  { %3203 = vmatmul.msk.f32.vlgmr.msra.gmra.mxu0 %vm138_vm0, %v3893_v44  ;;  %890 = vmatpush.msra.mxu1 %v3941_v45 }
 0x25d   :  { %915 = vmatpush.msra.mxu2 %v3941_v45  ;;  %940 = vmatpush.msrb.mxu3 %v3941_v45 }
 0x25e   :  { %891 = vmatpush.msra.mxu1 %v3947_v19 }
 0x25f   :  { %916 = vmatpush.msra.mxu2 %v3947_v19  ;;  %941 = vmatpush.msrb.mxu3 %v3947_v19 }
 0x260   :  { %3201 = vmatmul.msk.f32.vlgmr.msrb.gmra.mxu3 %vm138_vm0, %v3893_v44  ;;  %892 = vmatpush.msra.mxu1 %v3867_v47 }
 0x261   :  { %917 = vmatpush.msra.mxu2 %v3867_v47 }
 0x262   :  { %893 = vmatpush.msra.mxu1 %v3873_v50 }
 0x263   :  { %918 = vmatpush.msra.mxu2 %v3873_v50  ;;  %v746_v56 = vpop.f32.mrf.mxu2 }
 0x264   :  { %v747_v58 = vadd.f32 %v746_v56, %v3853_v28  ;;  %v766_v10 = vpop.f32.mrf.mxu3  ;;  %3199 = vmatmul.msk.f32.vlgmr.msra.gmra.mxu2 %vm138_vm0, %v3893_v44  ;;  %3204 = vmatmul.msk.f32.gmra.mxu0 %vm138_vm0, %v3919_v42 }
 0x265   :  { %v767_v21 = vadd.f32 %v766_v10, %v3853_v28  ;;  %894 = vmatpush.msra.mxu1 %v3877_v52 }
 0x266   :  { %v788_v22 = vperm.slane %v747_v58, 0  ;;  %v3212_v58 = vld [vmem:[%s5419_s6 + $0x18] sm:$0xff] }
 0x267   :  { %v789_v23 = vperm.slane %v767_v21, 0  ;;  %895 = vmatpush.msra.mxu1 %v3881_v54 }
 0x268   :  { %v796_v24 = vmul.f32 %v788_v22, %v3859_v37  ;;  %v804_v11 = vmul.f32 %v788_v22, %v3855_v26  ;;  %3197 = vmatmul.msk.f32.vlgmr.msra.gmra.mxu1 %vm138_vm0, %v3893_v44  ;;  %3202 = vmatmul.msk.f32.gmra.mxu3 %vm138_vm0, %v3919_v42 }
 0x269   :  { %v797_v14 = vmul.f32 %v789_v23, %v3859_v37  ;;  %v805_v27 = vmul.f32 %v789_v23, %v3855_v26  ;;  %v4025_v26 = vpop.permute.xlu2 %843 }
 0x26a   :  { %v3980_v29 = vadd.f32 %v3863_v39, %v804_v11  ;;  %v3986_v31 = vadd.f32 %v3869_v48, %v796_v24 }
 0x26b   :  { %v3983_v30 = vadd.f32 %v3863_v39, %v805_v27  ;;  %v3992_v20 = vadd.f32 %v3869_v48, %v797_v14 }
 0x26c   :  { %3200 = vmatmul.msk.f32.gmra.mxu2 %vm138_vm0, %v3919_v42  ;;  %982 = vmatpush.msrb.mxu1 %v3980_v29 }
 0x26d   :  { %1005 = vmatpush.msrb.mxu2 %v3983_v30  ;;  %1028 = vmatpush.msra.mxu3 %v3983_v30 }
 0x26e   :  { %983 = vmatpush.msrb.mxu1 %v3986_v31 }
 0x26f   :  { %1006 = vmatpush.msrb.mxu2 %v3992_v20  ;;  %1029 = vmatpush.msra.mxu3 %v3992_v20 }
 0x270   :  { %3198 = vmatmul.msk.f32.gmra.mxu1 %vm138_vm0, %v3919_v42 }
 0x271   :  { %984 = vmatpush.msrb.mxu1 %v3908_v5  ;;  %1007 = vmatpush.msrb.mxu2 %v3980_v29 }
 0x272   :  { %1030 = vmatpush.msra.mxu3 %v3983_v30 }
 0x273   :  { %985 = vmatpush.msrb.mxu1 %v3913_v7  ;;  %1008 = vmatpush.msrb.mxu2 %v3986_v31 }
 0x274   :  { %1031 = vmatpush.msra.mxu3 %v3992_v20 }
 0x275   :  { %986 = vmatpush.msrb.mxu1 %v3896_v63  ;;  %1009 = vmatpush.msrb.mxu2 %v3908_v5 }
 0x276   :  { %1032 = vmatpush.msra.mxu3 %v3980_v29 }
 0x277   :  { %987 = vmatpush.msrb.mxu1 %v3902_v1  ;;  %1010 = vmatpush.msrb.mxu2 %v3913_v7 }
 0x278   :  { %1033 = vmatpush.msra.mxu3 %v3986_v31  ;;  %3205 = vmatmul.msk.f32.vlgmr.msrb.gmra.mxu1 %vm138_vm0, %v3893_v44 }
 0x279   :  { %3207 = vmatmul.msk.f32.vlgmr.msrb.gmra.mxu2 %vm138_vm0, %v3893_v44  ;;  %3209 = vmatmul.msk.f32.vlgmr.msra.gmra.mxu3 %vm138_vm0, %v3893_v44 }
 0x280   :  { %3206 = vmatmul.msk.f32.gmra.mxu1 %vm138_vm0, %v3919_v42 }
 0x281   :  { %3208 = vmatmul.msk.f32.gmra.mxu2 %vm138_vm0, %v3919_v42  ;;  %3210 = vmatmul.msk.f32.gmra.mxu3 %vm138_vm0, %v3919_v42 }
 0x2c8   :  { %v874_v13 = vpop.f32.mrf.mxu0 }
 0x2c9   :  { %v875_v0 = vadd.f32 %v874_v13, %v4025_v26 }
 0x2d1   :  { %v877_v18 = vpop.f32.mrf.mxu0 }
 0x2d2   :  { %v878_v55 = vadd.f32 %v877_v18, %v4028_v32 }
 0x2d4   :  { %v1049_v42 = vadd.f32 %v878_v55, %v3877_v52 }
 0x2d9   :  { %v966_v28 = vpop.f32.mrf.mxu0 }
 0x2da   :  { %v967_v25 = vadd.f32 %v966_v28, %v4025_v26 }
 0x2dc   :  { %v1045_v37 = vadd.f32 %v967_v25, %v3902_v1 }
 0x2de   :  { %v4035_v48 = vmax.f32 %v1045_v37, 0.0 }
 0x2e1   :  { %v969_v33 = vpop.f32.mrf.mxu0 }
 0x2e2   :  { %v970_v34 = vadd.f32 %v969_v33, %v4028_v32 }
 0x2e3   :  { %v943_v35 = vpop.f32.mrf.mxu3 }
 0x2e4   :  { %v1053_v38 = vadd.f32 %v970_v34, %v3896_v63  ;;  %v944_v49 = vadd.f32 %v943_v35, %v4025_v26  ;;  %v4173_v35 = vpop.permute.xlu1 %1081 }
 0x2e5   :  { %v897_v40 = vpop.f32.mrf.mxu1 }
 0x2e6   :  { %v4033_v39 = vmax.f32 %v1053_v38, 0.0  ;;  %v898_v41 = vadd.f32 %v897_v40, %v4025_v26  ;;  %v1044_v59 = vadd.f32 %v944_v49, %v3933_v16  ;;  %v4176_v38 = vpop.permute.xlu0 %1086 }
 0x2e7   :  { %v920_v43 = vpop.f32.mrf.mxu2 }
 0x2e8   :  { %1174 = vmatpush.msrb.mxu3 %v4033_v39  ;;  %v921_v62 = vadd.f32 %v920_v43, %v4025_v26  ;;  %v1042_v2 = vadd.f32 %v898_v41, %v3873_v50  ;;  %v4054_v61 = vmax.f32 %v1044_v59, 0.0  ;;  %v1041_v50 = vadd.f32 %v875_v0, %v3881_v54  ;;  %v4081_v54 = vld [vmem:[%s5419_s6 + $0x10] sm:$0xff] }
 0x2ea   :  { %1175 = vmatpush.msrb.mxu3 %v4035_v48  ;;  %v1043_v46 = vadd.f32 %v921_v62, %v3947_v19  ;;  %v4063_v8 = vmax.f32 %v1042_v2, 0.0  ;;  %v4083_v16 = vmax.f32 %v1041_v50, 0.0 }
 0x2eb   :  { %v946_v53 = vpop.f32.mrf.mxu3 }
 0x2ec   :  { %v947_v36 = vadd.f32 %v946_v53, %v4028_v32  ;;  %v4072_v15 = vmax.f32 %v1043_v46, 0.0 }
 0x2ed   :  { %v900_v57 = vpop.f32.mrf.mxu1 }
 0x2ee   :  { %v1052_v44 = vadd.f32 %v947_v36, %v3929_v4  ;;  %v901_v63 = vadd.f32 %v900_v57, %v4028_v32  ;;  %v4070_v4 = vmax.f32 %v1049_v42, 0.0 }
 0x2ef   :  { %v923_v1 = vpop.f32.mrf.mxu2 }
 0x2f0   :  { %v4049_v3 = vmax.f32 %v1052_v44, 0.0  ;;  %v1050_v6 = vadd.f32 %v901_v63, %v3867_v47  ;;  %v924_v51 = vadd.f32 %v923_v1, %v4028_v32 }
 0x2f2   :  { %v4057_v9 = vmax.f32 %v1050_v6, 0.0  ;;  %v1051_v12 = vadd.f32 %v924_v51, %v3941_v45  ;;  %1151 = vmatpush.msra.mxu2 %v4049_v3  ;;  %1176 = vmatpush.msrb.mxu3 %v4049_v3 }
 0x2f4   :  { %v4065_v47 = vmax.f32 %v1051_v12, 0.0  ;;  %1105 = vmatpush.msrb.mxu0 %v4057_v9  ;;  %1152 = vmatpush.msra.mxu2 %v4054_v61 }
 0x2f5   :  { %1177 = vmatpush.msrb.mxu3 %v4054_v61  ;;  %v989_v52 = vpop.f32.mrf.mxu1 }
 0x2f6   :  { %1106 = vmatpush.msrb.mxu0 %v4063_v8  ;;  %1128 = vmatpush.msra.mxu1 %v4065_v47  ;;  %v990_v60 = vadd.f32 %v989_v52, %v4025_v26 }
 0x2f7   :  { %1153 = vmatpush.msra.mxu2 %v4065_v47  ;;  %1178 = vmatpush.msrb.mxu3 %v4065_v47 }
 0x2f8   :  { %1107 = vmatpush.msrb.mxu0 %v4070_v4  ;;  %1129 = vmatpush.msra.mxu1 %v4072_v15  ;;  %v1046_v10 = vadd.f32 %v990_v60, %v3913_v7  ;;  %v4211_v60 = vld [vmem:[%s5421_s1] sm:$0x3f] }
 0x2f9   :  { %1154 = vmatpush.msra.mxu2 %v4072_v15  ;;  %1179 = vmatpush.msrb.mxu3 %v4072_v15 }
 0x2fa   :  { %3221 = vmatmul.msk.f32.vlgmr.msrb.gmra.mxu3 %vm138_vm0, %v4081_v54  ;;  %1108 = vmatpush.msrb.mxu0 %v4083_v16  ;;  %v4118_v11 = vmax.f32 %v1046_v10, 0.0 }
 0x2fb   :  { %1130 = vmatpush.msra.mxu1 %v4057_v9  ;;  %1155 = vmatpush.msra.mxu2 %v4057_v9 }
 0x2fc   :  { %v1012_v17 = vpop.f32.mrf.mxu2  ;;  %v1035_v45 = vpop.f32.mrf.mxu3  ;;  %1109 = vmatpush.msrb.mxu0 %v4070_v4 }
 0x2fd   :  { %1131 = vmatpush.msra.mxu1 %v4063_v8  ;;  %1156 = vmatpush.msra.mxu2 %v4063_v8  ;;  %v992_v19 = vpop.f32.mrf.mxu1  ;;  %v1013_v23 = vadd.f32 %v1012_v17, %v4025_v26  ;;  %v1036_v24 = vadd.f32 %v1035_v45, %v4025_v26 }
 0x2fe   :  { %v993_v56 = vadd.f32 %v992_v19, %v4028_v32  ;;  %3219 = vmatmul.msk.f32.vlgmr.msra.gmra.mxu2 %vm138_vm0, %v4081_v54  ;;  %1110 = vmatpush.msrb.mxu0 %v4083_v16 }
 0x2ff   :  { %1132 = vmatpush.msra.mxu1 %v4070_v4  ;;  %3215 = vmatmul.msk.f32.vlgmr.msrb.gmra.mxu0 %vm138_vm0, %v4081_v54  ;;  %v1047_v13 = vadd.f32 %v1013_v23, %v3986_v31  ;;  %v1048_v18 = vadd.f32 %v1036_v24, %v3992_v20 }
 0x300   :  { %v1054_v21 = vadd.f32 %v993_v56, %v3908_v5  ;;  %v1500_v56 = vperm.slane %v4211_v60, 1 }
 0x301   :  { %1133 = vmatpush.msra.mxu1 %v4083_v16  ;;  %v4139_v31 = vmax.f32 %v1048_v18, 0.0 }
 0x302   :  { %v4111_v22 = vmax.f32 %v1054_v21, 0.0  ;;  %3217 = vmatmul.msk.f32.vlgmr.msra.gmra.mxu1 %vm138_vm0, %v4081_v54  ;;  %3222 = vmatmul.msk.f32.gmra.mxu3 %vm138_vm0, %v3212_v58  ;;  %v4218_v21 = vpop.permute.xlu0 %1490 }
 0x304   :  { %v1015_v14 = vpop.f32.mrf.mxu2  ;;  %v1038_v27 = vpop.f32.mrf.mxu3  ;;  %1197 = vmatpush.msra.mxu0 %v4111_v22 }
 0x305   :  { %v1016_v5 = vadd.f32 %v1015_v14, %v4028_v32  ;;  %v1039_v7 = vadd.f32 %v1038_v27, %v4028_v32  ;;  %v4137_v32 = vmax.f32 %v1047_v13, 0.0  ;;  %v4223_v13 = vpop.permute.xlu1 %1533 }
 0x306   :  { %3220 = vmatmul.msk.f32.gmra.mxu2 %vm138_vm0, %v3212_v58  ;;  %1198 = vmatpush.msra.mxu0 %v4118_v11 }
 0x307   :  { %v1055_v28 = vadd.f32 %v1016_v5, %v3980_v29  ;;  %v1056_v26 = vadd.f32 %v1039_v7, %v3983_v30  ;;  %3216 = vmatmul.msk.f32.gmra.mxu0 %vm138_vm0, %v3212_v58  ;;  %v1499_v7 = vperm.slane %v4211_v60, 0 }
 0x308   :  { %1199 = vmatpush.msra.mxu0 %v4033_v39 }
 0x309   :  { %v4131_v25 = vmax.f32 %v1055_v28, 0.0  ;;  %v4133_v33 = vmax.f32 %v1056_v26, 0.0 }
 0x30a   :  { %3218 = vmatmul.msk.f32.gmra.mxu1 %vm138_vm0, %v3212_v58  ;;  %1200 = vmatpush.msra.mxu0 %v4035_v48 }
 0x30b   :  { %1220 = vmatpush.msrb.mxu1 %v4131_v25  ;;  %1243 = vmatpush.msrb.mxu2 %v4133_v33 }
 0x30c   :  { %1266 = vmatpush.msra.mxu3 %v4133_v33  ;;  %1201 = vmatpush.msra.mxu0 %v4049_v3 }
 0x30d   :  { %1221 = vmatpush.msrb.mxu1 %v4137_v32  ;;  %1244 = vmatpush.msrb.mxu2 %v4139_v31 }
 0x30e   :  { %1267 = vmatpush.msra.mxu3 %v4139_v31  ;;  %1202 = vmatpush.msra.mxu0 %v4054_v61 }
 0x30f   :  { %1222 = vmatpush.msrb.mxu1 %v4111_v22  ;;  %1245 = vmatpush.msrb.mxu2 %v4131_v25 }
 0x310   :  { %1268 = vmatpush.msra.mxu3 %v4133_v33  ;;  %3223 = vmatmul.msk.f32.vlgmr.msra.gmra.mxu0 %vm138_vm0, %v4081_v54 }
 0x311   :  { %1223 = vmatpush.msrb.mxu1 %v4118_v11  ;;  %1246 = vmatpush.msrb.mxu2 %v4137_v32 }
 0x312   :  { %1269 = vmatpush.msra.mxu3 %v4139_v31 }
 0x313   :  { %1224 = vmatpush.msrb.mxu1 %v4033_v39  ;;  %1247 = vmatpush.msrb.mxu2 %v4111_v22 }
 0x314   :  { %1270 = vmatpush.msra.mxu3 %v4131_v25 }
 0x315   :  { %1225 = vmatpush.msrb.mxu1 %v4035_v48  ;;  %1248 = vmatpush.msrb.mxu2 %v4118_v11 }
 0x316   :  { %1271 = vmatpush.msra.mxu3 %v4137_v32  ;;  %3225 = vmatmul.msk.f32.vlgmr.msrb.gmra.mxu1 %vm138_vm0, %v4081_v54 }
 0x317   :  { %3227 = vmatmul.msk.f32.vlgmr.msrb.gmra.mxu2 %vm138_vm0, %v4081_v54  ;;  %3229 = vmatmul.msk.f32.vlgmr.msra.gmra.mxu3 %vm138_vm0, %v4081_v54 }
 0x318   :  { %3224 = vmatmul.msk.f32.gmra.mxu0 %vm138_vm0, %v3212_v58 }
 0x31e   :  { %3226 = vmatmul.msk.f32.gmra.mxu1 %vm138_vm0, %v3212_v58 }
 0x31f   :  { %3228 = vmatmul.msk.f32.gmra.mxu2 %vm138_vm0, %v3212_v58  ;;  %3230 = vmatmul.msk.f32.gmra.mxu3 %vm138_vm0, %v3212_v58 }
 0x37c   :  { %v1112_v29 = vpop.f32.mrf.mxu0 }
 0x37d   :  { %v1181_v30 = vpop.f32.mrf.mxu3  ;;  %v1113_v37 = vadd.f32 %v1112_v29, %v4173_v35 }
 0x37e   :  { %v1182_v40 = vadd.f32 %v1181_v30, %v4173_v35 }
 0x37f   :  { %v1135_v20 = vpop.f32.mrf.mxu1  ;;  %v1279_v55 = vadd.f32 %v1113_v37, %v4083_v16 }
 0x380   :  { %v1136_v41 = vadd.f32 %v1135_v20, %v4173_v35  ;;  %v1282_v62 = vadd.f32 %v1182_v40, %v4054_v61 }
 0x381   :  { %v1158_v34 = vpop.f32.mrf.mxu2  ;;  %v1295_v12 = vmax.f32 %v1279_v55, 0.0 }
 0x382   :  { %v1159_v44 = vadd.f32 %v1158_v34, %v4173_v35  ;;  %v1280_v6 = vadd.f32 %v1136_v41, %v4063_v8  ;;  %v1298_v50 = vmax.f32 %v1282_v62, 0.0 }
 0x384   :  { %v1115_v43 = vpop.f32.mrf.mxu0  ;;  %v1281_v61 = vadd.f32 %v1159_v44, %v4072_v15  ;;  %v1296_v54 = vmax.f32 %v1280_v6, 0.0  ;;  %v4204_v15 = vpop.permute.xlu2 %1495 }
 0x385   :  { %v1116_v49 = vadd.f32 %v1115_v43, %v4176_v38  ;;  %v1184_v53 = vpop.f32.mrf.mxu3  ;;  %v1518_v5 = vmul.f32 %v1500_v56, %v4204_v15  ;;  %v1517_v37 = vmul.f32 %v1499_v7, %v4204_v15 }
 0x386   :  { %v1185_v36 = vadd.f32 %v1184_v53, %v4176_v38 }
 0x387   :  { %v1287_v57 = vadd.f32 %v1116_v49, %v4070_v4  ;;  %v1138_v59 = vpop.f32.mrf.mxu1  ;;  %v4233_v34 = vadd.f32 %v4223_v13, %v1518_v5  ;;  %v1511_v49 = vmul.f32 %v1499_v7, %v4218_v21  ;;  %v1557_v7 = vpop.permute.xlu1 %1556 }
 0x388   :  { %v1290_v63 = vadd.f32 %v1185_v36, %v4049_v3  ;;  %v1139_v0 = vadd.f32 %v1138_v59, %v4176_v38  ;;  %v4196_v3 = vld [vmem:[%s5420_s8 + $0x1] sm:$0x1] }
 0x389   :  { %v1303_v1 = vmax.f32 %v1287_v57, 0.0  ;;  %v1161_v2 = vpop.f32.mrf.mxu2  ;;  %v4248_v57 = vadd.f32 %v4223_v13, %v1517_v37 }
 0x38a   :  { %v1306_v51 = vmax.f32 %v1290_v63, 0.0  ;;  %v1288_v42 = vadd.f32 %v1139_v0, %v4057_v9  ;;  %v1162_v46 = vadd.f32 %v1161_v2, %v4176_v38  ;;  %v1504_v63 = vperm.slane %v4211_v60, 5 }
 0x38b   :  { %1338 = vmatpush.msrb.mxu0 %v1303_v1  ;;  %v1502_v1 = vperm.slane %v4211_v60, 3  ;;  %v1503_v2 = vperm.slane %v4211_v60, 4 }
 0x38c   :  { %v1304_v52 = vmax.f32 %v1288_v42, 0.0  ;;  %v1289_v4 = vadd.f32 %v1162_v46, %v4065_v47  ;;  %1398 = vmatpush.msrb.mxu3 %v1306_v51  ;;  %v1297_v47 = vmax.f32 %v1281_v61, 0.0  ;;  %v4228_v29 = vpop.permute.xlu2 %1528  ;;  %v3245_v61 = vld [vmem:[%s5418_s4 + $0x20] sm:$0xff] }
 0x38d   :  { %v1204_v8 = vpop.f32.mrf.mxu0  ;;  %1339 = vmatpush.msrb.mxu0 %v1295_v12 }
 0x38e   :  { %v1305_v9 = vmax.f32 %v1289_v4, 0.0  ;;  %1358 = vmatpush.msra.mxu1 %v1304_v52  ;;  %1399 = vmatpush.msrb.mxu3 %v1298_v50  ;;  %v1205_v17 = vadd.f32 %v1204_v8, %v4173_v35  ;;  %v1521_v52 = vmul.f32 %v1503_v2, %v4204_v15  ;;  %v1516_v4 = vmul.f32 %v1504_v63, %v4218_v21 }
 0x38f   :  { %3233 = vmatmul.msk.f32.vlgmr.msrb.gmra.mxu0 %vm605_vm1, %v4196_v3  ;;  %3236 = vmatmul.msk.f32.vlgmr.msrb.gmra.mxu3 %vm605_vm1, %v4196_v3  ;;  %v1514_v8 = vmul.f32 %v1502_v1, %v4218_v21 }
 0x390   :  { %1359 = vmatpush.msra.mxu1 %v1296_v54  ;;  %1378 = vmatpush.msra.mxu2 %v1305_v9  ;;  %v1283_v58 = vadd.f32 %v1205_v17, %v4035_v48  ;;  %v1501_v48 = vperm.slane %v4211_v60, 2  ;;  %v1515_v9 = vmul.f32 %v1503_v2, %v4218_v21 }
 0x391   :  { %3234 = vmatmul.msk.f32.vlgmr.msra.gmra.mxu1 %vm605_vm1, %v4196_v3  ;;  %v4308_v60 = vadd.f32 %v4228_v29, %v1514_v8 }
 0x392   :  { %1379 = vmatpush.msra.mxu2 %v1297_v47  ;;  %v1299_v28 = vmax.f32 %v1283_v58, 0.0  ;;  %v1513_v59 = vmul.f32 %v1501_v48, %v4218_v21  ;;  %v4313_v17 = vadd.f32 %v4228_v29, %v1515_v9 }
 0x393   :  { %v1227_v16 = vpop.f32.mrf.mxu1  ;;  %3235 = vmatmul.msk.f32.vlgmr.msra.gmra.mxu2 %vm605_vm1, %v4196_v3 }
 0x394   :  { %v1228_v23 = vadd.f32 %v1227_v16, %v4173_v35  ;;  %v4272_v46 = vadd.f32 %v4228_v29, %v1513_v59  ;;  %v4303_v16 = vadd.f32 %v4228_v29, %v1516_v4 }
 0x395   :  { %v1207_v45 = vpop.f32.mrf.mxu0 }
 0x396   :  { %v1208_v19 = vadd.f32 %v1207_v45, %v4176_v38  ;;  %v1284_v30 = vadd.f32 %v1228_v23, %v4118_v11  ;;  %v1519_v11 = vmul.f32 %v1501_v48, %v4204_v15 }
 0x398   :  { %v1291_v10 = vadd.f32 %v1208_v19, %v4033_v39  ;;  %v1512_v39 = vmul.f32 %v1500_v56, %v4218_v21  ;;  %v1300_v41 = vmax.f32 %v1284_v30, 0.0  ;;  %v4259_v0 = vadd.f32 %v4223_v13, %v1519_v11 }
 0x39a   :  { %v1307_v24 = vmax.f32 %v1291_v10, 0.0  ;;  %v1250_v14 = vpop.f32.mrf.mxu2  ;;  %v1273_v27 = vpop.f32.mrf.mxu3  ;;  %v4240_v43 = vadd.f32 %v4228_v29, %v1512_v39 }
 0x39b   :  { %v1230_v18 = vpop.f32.mrf.mxu1  ;;  %v1274_v53 = vadd.f32 %v1273_v27, %v4173_v35 }
 0x39c   :  { %v1231_v26 = vadd.f32 %v1230_v18, %v4176_v38  ;;  %1418 = vmatpush.msra.mxu0 %v1307_v24  ;;  %v1562_v18 = vpop.permute.xlu0 %1561 }
 0x39d   :  { %v1286_v51 = vadd.f32 %v1274_v53, %v4139_v31 }
 0x39e   :  { %v1292_v20 = vadd.f32 %v1231_v26, %v4111_v22  ;;  %1419 = vmatpush.msra.mxu0 %v1299_v28  ;;  %v1251_v22 = vadd.f32 %v1250_v14, %v4173_v35  ;;  %v4256_v35 = vadd.f32 %v4228_v29, %v1511_v49 }
 0x39f   :  { %3237 = vmatmul.msk.f32.vlgmr.msra.gmra.mxu0 %vm605_vm1, %v4196_v3  ;;  %v1302_v31 = vmax.f32 %v1286_v51, 0.0 }
 0x3a0   :  { %v1308_v40 = vmax.f32 %v1292_v20, 0.0  ;;  %1580 = vmatpush.msrb.mxu0 %v4233_v34  ;;  %v1285_v6 = vadd.f32 %v1251_v22, %v4137_v32  ;;  %v1522_v32 = vmul.f32 %v1504_v63, %v4204_v15 }
 0x3a2   :  { %v1253_v36 = vpop.f32.mrf.mxu2  ;;  %v1276_v55 = vpop.f32.mrf.mxu3  ;;  %1581 = vmatpush.msrb.mxu0 %v4240_v43  ;;  %1438 = vmatpush.msrb.mxu1 %v1308_v40  ;;  %v4287_v54 = vadd.f32 %v4223_v13, %v1522_v32 }
 0x3a3   :  { %v1254_v62 = vadd.f32 %v1253_v36, %v4176_v38  ;;  %v1277_v44 = vadd.f32 %v1276_v55, %v4176_v38 }
 0x3a4   :  { %1582 = vmatpush.msrb.mxu0 %v4248_v57  ;;  %1439 = vmatpush.msrb.mxu1 %v1300_v41 }
 0x3a5   :  { %v1293_v38 = vadd.f32 %v1254_v62, %v4131_v25  ;;  %v1294_v42 = vadd.f32 %v1277_v44, %v4133_v33  ;;  %3238 = vmatmul.msk.f32.vlgmr.msrb.gmra.mxu1 %vm605_vm1, %v4196_v3  ;;  %v1520_v25 = vmul.f32 %v1502_v1, %v4204_v15  ;;  %v1301_v33 = vmax.f32 %v1285_v6, 0.0 }
 0x3a6   :  { %1583 = vmatpush.msrb.mxu0 %v4256_v35  ;;  %1603 = vmatpush.msra.mxu1 %v4259_v0  ;;  %v4300_v15 = vadd.f32 %v4223_v13, %v1521_v52 }
 0x3a7   :  { %v1309_v12 = vmax.f32 %v1293_v38, 0.0  ;;  %v1310_v50 = vmax.f32 %v1294_v42, 0.0  ;;  %v4294_v47 = vadd.f32 %v4223_v13, %v1520_v25 }
 0x3a8   :  { %1584 = vmatpush.msrb.mxu0 %v4248_v57  ;;  %1604 = vmatpush.msra.mxu1 %v4272_v46 }
 0x3a9   :  { %1458 = vmatpush.msrb.mxu2 %v1309_v12  ;;  %1478 = vmatpush.msra.mxu3 %v1310_v50  ;;  %v3261_v12 = vld [vmem:[%s5419_s6 + $0x20] sm:$0xff] }
 0x3aa   :  { %1585 = vmatpush.msrb.mxu0 %v4256_v35  ;;  %1605 = vmatpush.msra.mxu1 %v4233_v34 }
 0x3ab   :  { %1459 = vmatpush.msrb.mxu2 %v1301_v33  ;;  %1479 = vmatpush.msra.mxu3 %v1302_v31 }
 0x3ac   :  { %3249 = vmatmul.msk.f32.vlgmr.msrb.gmra.mxu0 %vm138_vm0, %v3245_v61  ;;  %3239 = vmatmul.msk.f32.vlgmr.msrb.gmra.mxu2 %vm605_vm1, %v4196_v3 }
 0x3ad   :  { %1672 = vmatpush.msra.mxu0 %v4287_v54  ;;  %3240 = vmatmul.msk.f32.vlgmr.msra.gmra.mxu3 %vm605_vm1, %v4196_v3  ;;  %v3246_v3 = vld [vmem:[%s5418_s4 + $0x28] sm:$0xff] }
 0x3ae   :  { %1606 = vmatpush.msra.mxu1 %v4240_v43  ;;  %1626 = vmatpush.msra.mxu2 %v4294_v47 }
 0x3af   :  { %1649 = vmatpush.msrb.mxu3 %v4300_v15  ;;  %1673 = vmatpush.msra.mxu0 %v4303_v16 }
 0x3b0   :  { %1607 = vmatpush.msra.mxu1 %v4248_v57  ;;  %1627 = vmatpush.msra.mxu2 %v4308_v60 }
 0x3b1   :  { %1650 = vmatpush.msrb.mxu3 %v4313_v17  ;;  %1674 = vmatpush.msra.mxu0 %v4300_v15 }
 0x3b2   :  { %1608 = vmatpush.msra.mxu1 %v4256_v35  ;;  %1628 = vmatpush.msra.mxu2 %v4259_v0 }
 0x3b3   :  { %1651 = vmatpush.msrb.mxu3 %v4294_v47  ;;  %3251 = vmatmul.msk.f32.vlgmr.msra.gmra.mxu1 %vm138_vm0, %v3245_v61 }
 0x3b4   :  { %1675 = vmatpush.msra.mxu0 %v4313_v17  ;;  %1695 = vmatpush.msrb.mxu1 %v4287_v54 }
 0x3b5   :  { %1629 = vmatpush.msra.mxu2 %v4272_v46  ;;  %1652 = vmatpush.msrb.mxu3 %v4308_v60 }
 0x3b6   :  { %3250 = vmatmul.msk.f32.gmra.mxu0 %vm138_vm0, %v3246_v3  ;;  %1696 = vmatpush.msrb.mxu1 %v4303_v16 }
 0x3b7   :  { %1676 = vmatpush.msra.mxu0 %v4294_v47  ;;  %1630 = vmatpush.msra.mxu2 %v4233_v34 }
 0x3b8   :  { %1653 = vmatpush.msrb.mxu3 %v4259_v0  ;;  %1697 = vmatpush.msrb.mxu1 %v4287_v54 }
 0x3b9   :  { %1677 = vmatpush.msra.mxu0 %v4308_v60  ;;  %1631 = vmatpush.msra.mxu2 %v4240_v43 }
 0x3ba   :  { %1654 = vmatpush.msrb.mxu3 %v4272_v46  ;;  %3253 = vmatmul.msk.f32.vlgmr.msra.gmra.mxu2 %vm138_vm0, %v3245_v61 }
 0x3bb   :  { %3255 = vmatmul.msk.f32.vlgmr.msrb.gmra.mxu3 %vm138_vm0, %v3245_v61  ;;  %1698 = vmatpush.msrb.mxu1 %v4303_v16 }
 0x3bc   :  { %3252 = vmatmul.msk.f32.gmra.mxu1 %vm138_vm0, %v3246_v3 }
 0x3bd   :  { %1699 = vmatpush.msrb.mxu1 %v4300_v15 }
 0x3be   :  { %3257 = vmatmul.msk.f32.vlgmr.msra.gmra.mxu0 %vm138_vm0, %v3245_v61 }
 0x3bf   :  { %1700 = vmatpush.msrb.mxu1 %v4313_v17 }
 0x3c2   :  { %3254 = vmatmul.msk.f32.gmra.mxu2 %vm138_vm0, %v3246_v3 }
 0x3c3   :  { %3256 = vmatmul.msk.f32.gmra.mxu3 %vm138_vm0, %v3246_v3 }
 0x3c4   :  { %3259 = vmatmul.msk.f32.vlgmr.msrb.gmra.mxu1 %vm138_vm0, %v3245_v61 }
 0x3c6   :  { %3258 = vmatmul.msk.f32.gmra.mxu0 %vm138_vm0, %v3246_v3 }
 0x3cc   :  { %3260 = vmatmul.msk.f32.gmra.mxu1 %vm138_vm0, %v3246_v3 }
 0x40c   :  { %v4351_v45 = vpop.f32.mrf.mxu0 }
 0x40e   :  { %v4353_v19 = vpop.f32.mrf.mxu1 }
 0x412   :  { %v4361_v23 = vpop.f32.mrf.mxu3 }
 0x416   :  { %v4359_v21 = vpop.f32.mrf.mxu2 }
 0x41c   :  { %v4355_v56 = vpop.f32.mrf.mxu0 }
 0x422   :  { %v4357_v58 = vpop.f32.mrf.mxu1 }
 0x429   :  { %v1587_v10 = vpop.f32.mrf.mxu0 }
 0x42a   :  { %v1588_v29 = vadd.f32 %v1587_v10, %v1557_v7 }
 0x42c   :  { %v1708_v22 = vadd.f32 %v1588_v29, %v4256_v35 }
 0x42f   :  { %v4363_v27 = vpop.f32.mrf.mxu2 }
 0x430   :  { %v1610_v24 = vpop.f32.mrf.mxu1  ;;  %v4365_v5 = vpop.f32.mrf.mxu3 }
 0x431   :  { %v1611_v13 = vadd.f32 %v1610_v24, %v1557_v7  ;;  %v1746_v24 = vpop.permute.xlu2 %1745 }
 0x433   :  { %v1590_v14 = vpop.f32.mrf.mxu0  ;;  %v1709_v30 = vadd.f32 %v1611_v13, %v4240_v43 }
 0x434   :  { %v1591_v26 = vadd.f32 %v1590_v14, %v1562_v18 }
 0x435   :  { %v4373_v53 = vmax.f32 %v1709_v30, 0.0 }
 0x436   :  { %v1714_v40 = vadd.f32 %v1591_v26, %v4248_v57 }
 0x438   :  { %v4376_v36 = vmax.f32 %v1714_v40, 0.0 }
 0x439   :  { %v1613_v28 = vpop.f32.mrf.mxu1 }
 0x43a   :  { %v1614_v39 = vadd.f32 %v1613_v28, %v1562_v18 }
 0x43b   :  { %v1679_v48 = vpop.f32.mrf.mxu0 }
 0x43c   :  { %v1715_v20 = vadd.f32 %v1614_v39, %v4233_v34  ;;  %v1680_v55 = vadd.f32 %v1679_v48, %v1557_v7  ;;  %v4379_v34 = vmax.f32 %v1708_v22, 0.0  ;;  %v3277_v22 = vld [vmem:[%s5420_s8 + $0x2] sm:$0x1] }
 0x43d   :  { %v1633_v37 = vpop.f32.mrf.mxu2 }
 0x43e   :  { %v4370_v49 = vmax.f32 %v1715_v20, 0.0  ;;  %v1656_v11 = vpop.f32.mrf.mxu3  ;;  %v1634_v59 = vadd.f32 %v1633_v37, %v1557_v7  ;;  %v1712_v63 = vadd.f32 %v1680_v55, %v4313_v17  ;;  %v1741_v17 = vpop.permute.xlu0 %1740 }
 0x43f   :  { %v1657_v62 = vadd.f32 %v1656_v11, %v1557_v7 }
 0x440   :  { %1764 = vmatpush.msrb.mxu2 %v4370_v49  ;;  %v1710_v51 = vadd.f32 %v1634_v59, %v4272_v46  ;;  %v4395_v31 = vmax.f32 %v1712_v63, 0.0 }
 0x441   :  { %v1702_v41 = vpop.f32.mrf.mxu1  ;;  %v1711_v50 = vadd.f32 %v1657_v62, %v4308_v60 }
 0x442   :  { %1765 = vmatpush.msrb.mxu2 %v4373_v53  ;;  %v1703_v32 = vadd.f32 %v1702_v41, %v1557_v7  ;;  %v4404_v52 = vmax.f32 %v1710_v51, 0.0 }
 0x443   :  { %v1682_v43 = vpop.f32.mrf.mxu0  ;;  %v1723_v8 = vmax.f32 %v1711_v50, 0.0 }
 0x444   :  { %v1683_v57 = vadd.f32 %v1682_v43, %v1562_v18  ;;  %1766 = vmatpush.msrb.mxu2 %v4376_v36  ;;  %v1713_v9 = vadd.f32 %v1703_v32, %v4303_v16 }
 0x445   :  { %v1636_v44 = vpop.f32.mrf.mxu2 }
 0x446   :  { %v1718_v35 = vadd.f32 %v1683_v57, %v4300_v15  ;;  %v1637_v1 = vadd.f32 %v1636_v44, %v1562_v18  ;;  %v1659_v2 = vpop.f32.mrf.mxu3  ;;  %1767 = vmatpush.msrb.mxu2 %v4379_v34  ;;  %v3262_v15 = vld [vmem:[%s5419_s6 + $0x28] sm:$0xff] }
 0x447   :  { %v1660_v6 = vadd.f32 %v1659_v2, %v1562_v18 }
 0x448   :  { %v4386_v38 = vmax.f32 %v1718_v35, 0.0  ;;  %v1716_v42 = vadd.f32 %v1637_v1, %v4259_v0  ;;  %1768 = vmatpush.msrb.mxu2 %v4376_v36 }
 0x449   :  { %v1717_v25 = vadd.f32 %v1660_v6, %v4294_v47  ;;  %v1705_v33 = vpop.f32.mrf.mxu1 }
 0x44a   :  { %v4397_v61 = vmax.f32 %v1716_v42, 0.0  ;;  %v1706_v46 = vadd.f32 %v1705_v33, %v1562_v18  ;;  %1769 = vmatpush.msrb.mxu2 %v4379_v34  ;;  %1833 = vmatpush.msra.mxu1 %v4386_v38 }
 0x44b   :  { %v4401_v0 = vmax.f32 %v1717_v25, 0.0  ;;  %3265 = vmatmul.msk.f32.vlgmr.msrb.gmra.mxu2 %vm138_vm0, %v3261_v12 }
 0x44c   :  { %v1719_v4 = vadd.f32 %v1706_v46, %v4287_v54  ;;  %1787 = vmatpush.msra.mxu3 %v4397_v61  ;;  %1834 = vmatpush.msra.mxu1 %v4395_v31  ;;  %v4416_v54 = vmax.f32 %v1713_v9, 0.0  ;;  %v4472_v9 = vpop.permute.xlu2 %2059 }
 0x44d   :  { %1810 = vmatpush.msrb.mxu0 %v4401_v0 }
 0x44e   :  { %v4411_v47 = vmax.f32 %v1719_v4, 0.0  ;;  %1788 = vmatpush.msra.mxu3 %v4404_v52  ;;  %1835 = vmatpush.msra.mxu1 %v4401_v0 }
 0x44f   :  { %1811 = vmatpush.msrb.mxu0 %v1723_v8 }
 0x450   :  { %1789 = vmatpush.msra.mxu3 %v4370_v49  ;;  %1836 = vmatpush.msra.mxu1 %v1723_v8 }
 0x451   :  { %1812 = vmatpush.msrb.mxu0 %v4397_v61  ;;  %1856 = vmatpush.msra.mxu2 %v4411_v47 }
 0x452   :  { %1790 = vmatpush.msra.mxu3 %v4373_v53  ;;  %1837 = vmatpush.msra.mxu1 %v4397_v61 }
 0x453   :  { %1813 = vmatpush.msrb.mxu0 %v4404_v52  ;;  %1857 = vmatpush.msra.mxu2 %v4416_v54 }
 0x454   :  { %3266 = vmatmul.msk.f32.gmra.mxu2 %vm138_vm0, %v3262_v15  ;;  %1791 = vmatpush.msra.mxu3 %v4376_v36 }
 0x455   :  { %1814 = vmatpush.msrb.mxu0 %v4370_v49  ;;  %1838 = vmatpush.msra.mxu1 %v4404_v52 }
 0x456   :  { %1858 = vmatpush.msra.mxu2 %v4386_v38  ;;  %3271 = vmatmul.msk.f32.vlgmr.msra.gmra.mxu1 %vm138_vm0, %v3261_v12 }
 0x457   :  { %1792 = vmatpush.msra.mxu3 %v4379_v34  ;;  %1815 = vmatpush.msrb.mxu0 %v4373_v53 }
 0x458   :  { %1859 = vmatpush.msra.mxu2 %v4395_v31  ;;  %3267 = vmatmul.msk.f32.vlgmr.msra.gmra.mxu3 %vm138_vm0, %v3261_v12 }
 0x459   :  { %3269 = vmatmul.msk.f32.vlgmr.msrb.gmra.mxu0 %vm138_vm0, %v3261_v12  ;;  %1879 = vmatpush.msrb.mxu3 %v4411_v47 }
 0x45a   :  { %1860 = vmatpush.msra.mxu2 %v4401_v0 }
 0x45b   :  { %1880 = vmatpush.msrb.mxu3 %v4416_v54 }
 0x45c   :  { %1861 = vmatpush.msra.mxu2 %v1723_v8 }
 0x45d   :  { %3273 = vmatmul.msk.f32.vlgmr.msra.gmra.mxu2 %vm138_vm0, %v3261_v12  ;;  %1881 = vmatpush.msrb.mxu3 %v4411_v47 }
 0x45e   :  { %3272 = vmatmul.msk.f32.gmra.mxu1 %vm138_vm0, %v3262_v15 }
 0x45f   :  { %1882 = vmatpush.msrb.mxu3 %v4416_v54 }
 0x460   :  { %3268 = vmatmul.msk.f32.gmra.mxu3 %vm138_vm0, %v3262_v15 }
 0x461   :  { %3270 = vmatmul.msk.f32.gmra.mxu0 %vm138_vm0, %v3262_v15  ;;  %1883 = vmatpush.msrb.mxu3 %v4386_v38 }
 0x463   :  { %1884 = vmatpush.msrb.mxu3 %v4395_v31 }
 0x465   :  { %3274 = vmatmul.msk.f32.gmra.mxu2 %vm138_vm0, %v3262_v15 }
 0x468   :  { %3275 = vmatmul.msk.f32.vlgmr.msrb.gmra.mxu3 %vm138_vm0, %v3261_v12 }
 0x470   :  { %3276 = vmatmul.msk.f32.gmra.mxu3 %vm138_vm0, %v3262_v15 }
 0x4ce   :  { %v1771_v16 = vpop.f32.mrf.mxu2 }
 0x4cf   :  { %v1772_v3 = vadd.f32 %v1771_v16, %v1741_v17 }
 0x4d1   :  { %v1892_v13 = vadd.f32 %v1772_v3, %v4379_v34 }
 0x4d3   :  { %v1840_v60 = vpop.f32.mrf.mxu1  ;;  %v1904_v20 = vmax.f32 %v1892_v13, 0.0 }
 0x4d4   :  { %v1841_v18 = vadd.f32 %v1840_v60, %v1741_v17 }
 0x4d6   :  { %v1817_v10 = vpop.f32.mrf.mxu0  ;;  %v1895_v37 = vadd.f32 %v1841_v18, %v1723_v8 }
 0x4d7   :  { %v1774_v14 = vpop.f32.mrf.mxu2  ;;  %v1818_v30 = vadd.f32 %v1817_v10, %v1741_v17 }
 0x4d8   :  { %v1775_v7 = vadd.f32 %v1774_v14, %v1746_v24  ;;  %v1907_v59 = vmax.f32 %v1895_v37, 0.0 }
 0x4da   :  { %v1898_v28 = vadd.f32 %v1775_v7, %v4376_v36  ;;  %v1894_v36 = vadd.f32 %v1818_v30, %v4404_v52  ;;  %v2055_v7 = vpop.permute.xlu0 %2054 }
 0x4db   :  { %v1794_v26 = vpop.f32.mrf.mxu3  ;;  %v1843_v39 = vpop.f32.mrf.mxu1 }
 0x4dc   :  { %v1910_v48 = vmax.f32 %v1898_v28, 0.0  ;;  %v1844_v29 = vadd.f32 %v1843_v39, %v1746_v24  ;;  %v1795_v57 = vadd.f32 %v1794_v26, %v1741_v17  ;;  %v1906_v35 = vmax.f32 %v1894_v36, 0.0 }
 0x4de   :  { %v1901_v40 = vadd.f32 %v1844_v29, %v4401_v0  ;;  %v1820_v11 = vpop.f32.mrf.mxu0  ;;  %1943 = vmatpush.msra.mxu0 %v1910_v48  ;;  %v1893_v1 = vadd.f32 %v1795_v57, %v4373_v53 }
 0x4df   :  { %v1821_v41 = vadd.f32 %v1820_v11, %v1746_v24 }
 0x4e0   :  { %v1913_v55 = vmax.f32 %v1901_v40, 0.0  ;;  %v1863_v43 = vpop.f32.mrf.mxu2  ;;  %1944 = vmatpush.msra.mxu0 %v1904_v20  ;;  %v1905_v50 = vmax.f32 %v1893_v1, 0.0  ;;  %v2086_v40 = vpop.permute.xlu2 %2085 }
 0x4e1   :  { %v1900_v34 = vadd.f32 %v1821_v41, %v4397_v61  ;;  %3279 = vmatmul.msk.f32.vlgmr.msra.gmra.mxu0 %vm605_vm1, %v3277_v22  ;;  %v1864_v6 = vadd.f32 %v1863_v43, %v1741_v17 }
 0x4e2   :  { %2003 = vmatpush.msra.mxu3 %v1913_v55 }
 0x4e3   :  { %v1912_v62 = vmax.f32 %v1900_v34, 0.0  ;;  %v1797_v44 = vpop.f32.mrf.mxu3  ;;  %v1896_v32 = vadd.f32 %v1864_v6, %v4395_v31 }
 0x4e4   :  { %v1798_v63 = vadd.f32 %v1797_v44, %v1746_v24  ;;  %2004 = vmatpush.msra.mxu3 %v1907_v59 }
 0x4e5   :  { %1983 = vmatpush.msrb.mxu2 %v1912_v62  ;;  %3282 = vmatmul.msk.f32.vlgmr.msra.gmra.mxu3 %vm605_vm1, %v3277_v22  ;;  %v1908_v53 = vmax.f32 %v1896_v32, 0.0 }
 0x4e6   :  { %v1899_v2 = vadd.f32 %v1798_v63, %v4370_v49 }
 0x4e7   :  { %1984 = vmatpush.msrb.mxu2 %v1906_v35 }
 0x4e8   :  { %v1911_v51 = vmax.f32 %v1899_v2, 0.0  ;;  %v1866_v42 = vpop.f32.mrf.mxu2  ;;  %3281 = vmatmul.msk.f32.vlgmr.msrb.gmra.mxu2 %vm605_vm1, %v3277_v22 }
 0x4e9   :  { %v1867_v12 = vadd.f32 %v1866_v42, %v1746_v24 }
 0x4ea   :  { %1963 = vmatpush.msrb.mxu1 %v1911_v51 }
 0x4eb   :  { %v1902_v25 = vadd.f32 %v1867_v12, %v4386_v38  ;;  %v1886_v33 = vpop.f32.mrf.mxu3  ;;  %v1923_v38 = vpop.permute.xlu1 %1922  ;;  %v3289_v12 = vld [vmem:[%s5418_s4 + $0x30] sm:$0xff] }
 0x4ec   :  { %1964 = vmatpush.msrb.mxu1 %v1905_v50  ;;  %v1887_v49 = vadd.f32 %v1886_v33, %v1741_v17  ;;  %v1925_v16 = vperm.slane %v1923_v38, 0  ;;  %v2119_v38 = vpop.permute.xlu0 %2118 }
 0x4ed   :  { %v1914_v61 = vmax.f32 %v1902_v25, 0.0  ;;  %3280 = vmatmul.msk.f32.vlgmr.msrb.gmra.mxu1 %vm605_vm1, %v3277_v22 }
 0x4ee   :  { %v1897_v52 = vadd.f32 %v1887_v49, %v4416_v54 }
 0x4ef   :  { %2023 = vmatpush.msrb.mxu0 %v1914_v61 }
 0x4f0   :  { %v1909_v8 = vmax.f32 %v1897_v52, 0.0 }
 0x4f1   :  { %2024 = vmatpush.msrb.mxu0 %v1908_v53  ;;  %v3290_v53 = vld [vmem:[%s5418_s4 + $0x38] sm:$0xff] }
 0x4f2   :  { %3283 = vmatmul.msk.f32.vlgmr.msrb.gmra.mxu0 %vm605_vm1, %v3277_v22 }
 0x4f3   :  { %v1889_v46 = vpop.f32.mrf.mxu3  ;;  %v2091_v39 = vpop.permute.xlu1 %2090 }
 0x4f4   :  { %v1890_v0 = vadd.f32 %v1889_v46, %v1746_v24 }
 0x4f6   :  { %v1903_v4 = vadd.f32 %v1890_v0, %v4411_v47 }
 0x4f8   :  { %v1915_v31 = vmax.f32 %v1903_v4, 0.0 }
 0x4fa   :  { %2043 = vmatpush.msra.mxu1 %v1915_v31 }
 0x4fb   :  { %v2114_v52 = vpop.permute.xlu1 %2113 }
 0x4fc   :  { %2044 = vmatpush.msra.mxu1 %v1909_v8 }
 0x4fd   :  { %3284 = vmatmul.msk.f32.vlgmr.msra.gmra.mxu1 %vm605_vm1, %v3277_v22 }
 0x55e   :  { %v1946_v15 = vpop.f32.mrf.mxu0 }
 0x55f   :  { %v1947_v17 = vadd.f32 %v1946_v15, %v1925_v16 }
 0x561   :  { %v2062_v13 = vperm.slane %v1947_v17, 0 }
 0x563   :  { %v2074_v55 = vmul.f32 %v2062_v13, %v4472_v9  ;;  %v2068_v57 = vmul.f32 %v2062_v13, %v2055_v7 }
 0x565   :  { %v4495_v1 = vadd.f32 %v2091_v39, %v2074_v55  ;;  %v4502_v6 = vadd.f32 %v2086_v40, %v2068_v57 }
 0x568   :  { %v2006_v60 = vpop.f32.mrf.mxu3 }
 0x569   :  { %v2007_v3 = vadd.f32 %v2006_v60, %v1925_v16 }
 0x56a   :  { %v1966_v10 = vpop.f32.mrf.mxu1 }
 0x56b   :  { %v2065_v24 = vperm.slane %v2007_v3, 0  ;;  %v1967_v14 = vadd.f32 %v1966_v10, %v1925_v16  ;;  %v1986_v54 = vpop.f32.mrf.mxu2 }
 0x56c   :  { %v1987_v47 = vadd.f32 %v1986_v54, %v1925_v16 }
 0x56d   :  { %v2071_v18 = vmul.f32 %v2065_v24, %v2055_v7  ;;  %v2077_v28 = vmul.f32 %v2065_v24, %v4472_v9  ;;  %v2063_v26 = vperm.slane %v1967_v14, 0 }
 0x56e   :  { %v2064_v48 = vperm.slane %v1987_v47, 0 }
 0x56f   :  { %v4475_v29 = vadd.f32 %v2091_v39, %v2077_v28  ;;  %v2069_v30 = vmul.f32 %v2063_v26, %v2055_v7  ;;  %v2075_v20 = vmul.f32 %v2063_v26, %v4472_v9  ;;  %v2026_v37 = vpop.f32.mrf.mxu0  ;;  %v4480_v43 = vadd.f32 %v2086_v40, %v2071_v18 }
 0x570   :  { %v2070_v11 = vmul.f32 %v2064_v48, %v2055_v7  ;;  %v2076_v22 = vmul.f32 %v2064_v48, %v4472_v9  ;;  %v2027_v41 = vadd.f32 %v2026_v37, %v1925_v16 }
 0x571   :  { %v4482_v36 = vadd.f32 %v2091_v39, %v2075_v20  ;;  %2183 = vmatpush.msra.mxu0 %v4475_v29  ;;  %v4487_v62 = vadd.f32 %v2086_v40, %v2069_v30 }
 0x572   :  { %v4485_v34 = vadd.f32 %v2091_v39, %v2076_v22  ;;  %v2066_v59 = vperm.slane %v2027_v41, 0  ;;  %v4491_v44 = vadd.f32 %v2086_v40, %v2070_v11 }
 0x573   :  { %2137 = vmatpush.msra.mxu2 %v4482_v36  ;;  %2184 = vmatpush.msra.mxu0 %v4480_v43 }
 0x574   :  { %v2072_v63 = vmul.f32 %v2066_v59, %v2055_v7  ;;  %v2078_v35 = vmul.f32 %v2066_v59, %v4472_v9  ;;  %2160 = vmatpush.msrb.mxu3 %v4485_v34 }
 0x575   :  { %2138 = vmatpush.msra.mxu2 %v4487_v62  ;;  %2185 = vmatpush.msra.mxu0 %v4485_v34 }
 0x576   :  { %v4499_v2 = vadd.f32 %v2091_v39, %v2078_v35  ;;  %2161 = vmatpush.msrb.mxu3 %v4491_v44  ;;  %v4506_v51 = vadd.f32 %v2086_v40, %v2072_v63 }
 0x577   :  { %2139 = vmatpush.msra.mxu2 %v4495_v1  ;;  %2186 = vmatpush.msra.mxu0 %v4491_v44 }
 0x578   :  { %2162 = vmatpush.msrb.mxu3 %v4482_v36  ;;  %2206 = vmatpush.msrb.mxu1 %v4499_v2 }
 0x579   :  { %2140 = vmatpush.msra.mxu2 %v4502_v6  ;;  %2187 = vmatpush.msra.mxu0 %v4482_v36 }
 0x57a   :  { %2163 = vmatpush.msrb.mxu3 %v4487_v62  ;;  %2207 = vmatpush.msrb.mxu1 %v4506_v51  ;;  %v2046_v42 = vpop.f32.mrf.mxu1 }
 0x57b   :  { %v2047_v50 = vadd.f32 %v2046_v42, %v1925_v16  ;;  %2141 = vmatpush.msra.mxu2 %v4495_v1  ;;  %2188 = vmatpush.msra.mxu0 %v4487_v62 }
 0x57c   :  { %2164 = vmatpush.msrb.mxu3 %v4495_v1  ;;  %2208 = vmatpush.msrb.mxu1 %v4475_v29 }
 0x57d   :  { %v2067_v32 = vperm.slane %v2047_v50, 0  ;;  %3297 = vmatmul.msk.f32.vlgmr.msra.gmra.mxu0 %vm138_vm0, %v3289_v12  ;;  %2142 = vmatpush.msra.mxu2 %v4502_v6 }
 0x57e   :  { %2165 = vmatpush.msrb.mxu3 %v4502_v6  ;;  %2209 = vmatpush.msrb.mxu1 %v4480_v43 }
 0x57f   :  { %v2073_v25 = vmul.f32 %v2067_v32, %v2055_v7  ;;  %v2079_v33 = vmul.f32 %v2067_v32, %v4472_v9  ;;  %3293 = vmatmul.msk.f32.vlgmr.msra.gmra.mxu2 %vm138_vm0, %v3289_v12  ;;  %3295 = vmatmul.msk.f32.vlgmr.msrb.gmra.mxu3 %vm138_vm0, %v3289_v12 }
 0x580   :  { %2210 = vmatpush.msrb.mxu1 %v4485_v34 }
 0x581   :  { %v4529_v61 = vadd.f32 %v2091_v39, %v2079_v33  ;;  %v4535_v49 = vadd.f32 %v2086_v40, %v2073_v25 }
 0x582   :  { %2211 = vmatpush.msrb.mxu1 %v4491_v44 }
 0x583   :  { %3299 = vmatmul.msk.f32.vlgmr.msrb.gmra.mxu1 %vm138_vm0, %v3289_v12  ;;  %2229 = vmatpush.msrb.mxu2 %v4529_v61 }
 0x584   :  { %2252 = vmatpush.msra.mxu3 %v4529_v61 }
 0x585   :  { %3298 = vmatmul.msk.f32.gmra.mxu0 %vm138_vm0, %v3290_v53  ;;  %2230 = vmatpush.msrb.mxu2 %v4535_v49 }
 0x586   :  { %2253 = vmatpush.msra.mxu3 %v4535_v49 }
 0x587   :  { %3294 = vmatmul.msk.f32.gmra.mxu2 %vm138_vm0, %v3290_v53  ;;  %3296 = vmatmul.msk.f32.gmra.mxu3 %vm138_vm0, %v3290_v53 }
 0x588   :  { %2231 = vmatpush.msrb.mxu2 %v4499_v2  ;;  %2254 = vmatpush.msra.mxu3 %v4529_v61 }
 0x58a   :  { %2232 = vmatpush.msrb.mxu2 %v4506_v51  ;;  %2255 = vmatpush.msra.mxu3 %v4535_v49 }
 0x58b   :  { %3300 = vmatmul.msk.f32.gmra.mxu1 %vm138_vm0, %v3290_v53 }
 0x58c   :  { %2233 = vmatpush.msrb.mxu2 %v4475_v29  ;;  %2256 = vmatpush.msra.mxu3 %v4499_v2 }
 0x58e   :  { %2234 = vmatpush.msrb.mxu2 %v4480_v43  ;;  %2257 = vmatpush.msra.mxu3 %v4506_v51 }
 0x58f   :  { %3301 = vmatmul.msk.f32.vlgmr.msrb.gmra.mxu2 %vm138_vm0, %v3289_v12  ;;  %3303 = vmatmul.msk.f32.vlgmr.msra.gmra.mxu3 %vm138_vm0, %v3289_v12  ;;  %v3306_v12 = vld [vmem:[%s5419_s6 + $0x38] sm:$0xff] }
 0x597   :  { %3302 = vmatmul.msk.f32.gmra.mxu2 %vm138_vm0, %v3290_v53  ;;  %3304 = vmatmul.msk.f32.gmra.mxu3 %vm138_vm0, %v3290_v53  ;;  %v4648_v53 = vpop.permute.xlu0 %2297 }
 0x5fa   :  { %v2190_v46 = vpop.f32.mrf.mxu0 }
 0x5fb   :  { %v2191_v4 = vadd.f32 %v2190_v46, %v2114_v52  ;;  %v4651_v46 = vpop.permute.xlu2 %2302 }
 0x5fd   :  { %v2267_v16 = vadd.f32 %v2191_v4, %v4491_v44 }
 0x5ff   :  { %v4562_v54 = vmax.f32 %v2267_v16, 0.0 }
 0x600   :  { %v2213_v0 = vpop.f32.mrf.mxu1 }
 0x601   :  { %v2214_v17 = vadd.f32 %v2213_v0, %v2114_v52 }
 0x602   :  { %v2144_v31 = vpop.f32.mrf.mxu2  ;;  %v2167_v8 = vpop.f32.mrf.mxu3 }
 0x603   :  { %v2193_v9 = vpop.f32.mrf.mxu0  ;;  %v2168_v24 = vadd.f32 %v2167_v8, %v2114_v52  ;;  %v2268_v26 = vadd.f32 %v2214_v17, %v4480_v43  ;;  %v2145_v39 = vadd.f32 %v2144_v31, %v2114_v52  ;;  %v4661_v17 = vld [vmem:[%s5420_s8 + $0x3] sm:$0x1] }
 0x604   :  { %v2194_v15 = vadd.f32 %v2193_v9, %v2119_v38 }
 0x605   :  { %v2266_v48 = vadd.f32 %v2168_v24, %v4487_v62  ;;  %v2265_v11 = vadd.f32 %v2145_v39, %v4502_v6  ;;  %v2765_v39 = vld [vmem:[%s5422_s11 + $0xf8] sm:$0xff] }
 0x606   :  { %v2273_v60 = vadd.f32 %v2194_v15, %v4485_v34  ;;  %v3305_v34 = vld [vmem:[%s5419_s6 + $0x30] sm:$0xff] }
 0x607   :  { %v4579_v22 = vmax.f32 %v2266_v48, 0.0  ;;  %v2764_v48 = vld [vmem:[%s5422_s11 + $0xf0] sm:$0xff] }
 0x608   :  { %v4560_v3 = vmax.f32 %v2273_v60, 0.0  ;;  %v2216_v10 = vpop.f32.mrf.mxu1 }
 0x609   :  { %v2217_v14 = vadd.f32 %v2216_v10, %v2119_v38 }
 0x60a   :  { %2344 = vmatpush.msra.mxu1 %v4560_v3  ;;  %v2147_v7 = vpop.f32.mrf.mxu2  ;;  %v2170_v47 = vpop.f32.mrf.mxu3 }
 0x60b   :  { %v2274_v13 = vadd.f32 %v2217_v14, %v4475_v29  ;;  %v2148_v18 = vadd.f32 %v2147_v7, %v2119_v38  ;;  %v2171_v28 = vadd.f32 %v2170_v47, %v2119_v38  ;;  %v4576_v29 = vmax.f32 %v2268_v26, 0.0 }
 0x60c   :  { %2345 = vmatpush.msra.mxu1 %v4562_v54 }
 0x60d   :  { %v4569_v30 = vmax.f32 %v2274_v13, 0.0  ;;  %v2272_v20 = vadd.f32 %v2171_v28, %v4482_v36  ;;  %v2271_v37 = vadd.f32 %v2148_v18, %v4495_v1  ;;  %v4589_v36 = vmax.f32 %v2265_v11, 0.0  ;;  %v2749_v11 = vld [vmem:[%s5422_s11 + $0x78] sm:$0xff] }
 0x60f   :  { %v4573_v40 = vmax.f32 %v2272_v20, 0.0  ;;  %2367 = vmatpush.msra.mxu2 %v4569_v30  ;;  %v4584_v43 = vmax.f32 %v2271_v37, 0.0 }
 0x611   :  { %2321 = vmatpush.msrb.mxu0 %v4573_v40  ;;  %2346 = vmatpush.msra.mxu1 %v4573_v40 }
 0x612   :  { %2368 = vmatpush.msra.mxu2 %v4576_v29  ;;  %v2236_v41 = vpop.f32.mrf.mxu2  ;;  %v2259_v55 = vpop.f32.mrf.mxu3 }
 0x613   :  { %2322 = vmatpush.msrb.mxu0 %v4579_v22  ;;  %2347 = vmatpush.msra.mxu1 %v4579_v22  ;;  %v2237_v59 = vadd.f32 %v2236_v41, %v2114_v52  ;;  %v2260_v57 = vadd.f32 %v2259_v55, %v2114_v52  ;;  %v2748_v55 = vld [vmem:[%s5422_s11 + $0x70] sm:$0xff] }
 0x614   :  { %2369 = vmatpush.msra.mxu2 %v4560_v3 }
 0x615   :  { %2323 = vmatpush.msrb.mxu0 %v4584_v43  ;;  %2348 = vmatpush.msra.mxu1 %v4584_v43  ;;  %v2269_v1 = vadd.f32 %v2237_v59, %v4506_v51  ;;  %v2270_v50 = vadd.f32 %v2260_v57, %v4535_v49  ;;  %v2760_v59 = vld [vmem:[%s5422_s11 + $0xd0] sm:$0xff] }
 0x616   :  { %2370 = vmatpush.msra.mxu2 %v4562_v54 }
 0x617   :  { %2324 = vmatpush.msrb.mxu0 %v4589_v36  ;;  %2349 = vmatpush.msra.mxu1 %v4589_v36  ;;  %v4618_v33 = vmax.f32 %v2269_v1, 0.0 }
 0x618   :  { %2371 = vmatpush.msra.mxu2 %v4573_v40  ;;  %3311 = vmatmul.msk.f32.vlgmr.msra.gmra.mxu1 %vm138_vm0, %v3305_v34 }
 0x619   :  { %2325 = vmatpush.msrb.mxu0 %v4584_v43 }
 0x61a   :  { %2372 = vmatpush.msra.mxu2 %v4579_v22  ;;  %v2239_v62 = vpop.f32.mrf.mxu2  ;;  %v2262_v44 = vpop.f32.mrf.mxu3 }
 0x61b   :  { %v2240_v63 = vadd.f32 %v2239_v62, %v2119_v38  ;;  %v2263_v35 = vadd.f32 %v2262_v44, %v2119_v38  ;;  %3313 = vmatmul.msk.f32.vlgmr.msra.gmra.mxu2 %vm138_vm0, %v3305_v34  ;;  %2326 = vmatpush.msrb.mxu0 %v4589_v36  ;;  %v2746_v44 = vld [vmem:[%s5422_s11 + $0x60] sm:$0xff] }
 0x61c   :  { %3309 = vmatmul.msk.f32.vlgmr.msrb.gmra.mxu0 %vm138_vm0, %v3305_v34 }
 0x61d   :  { %v2275_v6 = vadd.f32 %v2240_v63, %v4499_v2  ;;  %v2276_v42 = vadd.f32 %v2263_v35, %v4529_v61  ;;  %v4622_v2 = vmax.f32 %v2270_v50, 0.0  ;;  %v2759_v63 = vld [vmem:[%s5422_s11 + $0xc8] sm:$0xff] }
 0x61f   :  { %v4613_v32 = vmax.f32 %v2275_v6, 0.0  ;;  %v4615_v25 = vmax.f32 %v2276_v42, 0.0  ;;  %v2745_v42 = vld [vmem:[%s5422_s11 + $0x58] sm:$0xff] }
 0x620   :  { %3312 = vmatmul.msk.f32.gmra.mxu1 %vm138_vm0, %v3306_v12 }
 0x621   :  { %2390 = vmatpush.msrb.mxu3 %v4613_v32  ;;  %2413 = vmatpush.msra.mxu0 %v4615_v25 }
 0x622   :  { %2436 = vmatpush.msrb.mxu1 %v4615_v25 }
 0x623   :  { %3314 = vmatmul.msk.f32.gmra.mxu2 %vm138_vm0, %v3306_v12  ;;  %2391 = vmatpush.msrb.mxu3 %v4618_v33 }
 0x624   :  { %2414 = vmatpush.msra.mxu0 %v4622_v2  ;;  %2437 = vmatpush.msrb.mxu1 %v4622_v2 }
 0x625   :  { %3310 = vmatmul.msk.f32.gmra.mxu0 %vm138_vm0, %v3306_v12  ;;  %2392 = vmatpush.msrb.mxu3 %v4569_v30 }
 0x626   :  { %2415 = vmatpush.msra.mxu0 %v4613_v32  ;;  %2438 = vmatpush.msrb.mxu1 %v4615_v25 }
 0x627   :  { %2393 = vmatpush.msrb.mxu3 %v4576_v29 }
 0x628   :  { %2416 = vmatpush.msra.mxu0 %v4618_v33  ;;  %2439 = vmatpush.msrb.mxu1 %v4622_v2 }
 0x629   :  { %2394 = vmatpush.msrb.mxu3 %v4560_v3 }
 0x62a   :  { %2417 = vmatpush.msra.mxu0 %v4569_v30  ;;  %2440 = vmatpush.msrb.mxu1 %v4613_v32 }
 0x62b   :  { %2395 = vmatpush.msrb.mxu3 %v4562_v54 }
 0x62c   :  { %2418 = vmatpush.msra.mxu0 %v4576_v29  ;;  %2441 = vmatpush.msrb.mxu1 %v4618_v33 }
 0x62d   :  { %3315 = vmatmul.msk.f32.vlgmr.msrb.gmra.mxu3 %vm138_vm0, %v3305_v34  ;;  %3317 = vmatmul.msk.f32.vlgmr.msra.gmra.mxu0 %vm138_vm0, %v3305_v34 }
 0x62e   :  { %3319 = vmatmul.msk.f32.vlgmr.msrb.gmra.mxu1 %vm138_vm0, %v3305_v34  ;;  %v2747_v34 = vld [vmem:[%s5422_s11 + $0x68] sm:$0xff] }
 0x62f   :  { %2850 = vmatpush.msra.mxu1 %v2765_v39  ;;  %v2795_v39 = vld [vmem:[%s5422_s11 + $0x1e8] sm:$0xff] }
 0x631   :  { %2851 = vmatpush.msra.mxu1 %v2764_v48  ;;  %v2780_v48 = vld [vmem:[%s5422_s11 + $0x170] sm:$0xff] }
 0x635   :  { %3316 = vmatmul.msk.f32.gmra.mxu3 %vm138_vm0, %v3306_v12  ;;  %3318 = vmatmul.msk.f32.gmra.mxu0 %vm138_vm0, %v3306_v12 }
 0x636   :  { %3320 = vmatmul.msk.f32.gmra.mxu1 %vm138_vm0, %v3306_v12  ;;  %v2758_v12 = vld [vmem:[%s5422_s11 + $0xc0] sm:$0xff] }
 0x695   :  { %v2351_v51 = vpop.f32.mrf.mxu1 }
 0x696   :  { %v2352_v49 = vadd.f32 %v2351_v51, %v4648_v53 }
 0x698   :  { %v2450_v31 = vadd.f32 %v2352_v49, %v4579_v22  ;;  %v2762_v22 = vld [vmem:[%s5422_s11 + $0xe0] sm:$0xff] }
 0x699   :  { %v2328_v61 = vpop.f32.mrf.mxu0 }
 0x69a   :  { %v2329_v38 = vadd.f32 %v2328_v61, %v4648_v53  ;;  %v2462_v60 = vmax.f32 %v2450_v31, 0.0 }
 0x69c   :  { %v2449_v10 = vadd.f32 %v2329_v38, %v4589_v36 }
 0x69d   :  { %v2354_v0 = vpop.f32.mrf.mxu1 }
 0x69e   :  { %v2355_v52 = vadd.f32 %v2354_v0, %v4651_v46  ;;  %v2374_v4 = vpop.f32.mrf.mxu2  ;;  %v2461_v18 = vmax.f32 %v2449_v10, 0.0  ;;  %v2797_v10 = vld [vmem:[%s5422_s11 + $0x1f8] sm:$0xff] }
 0x69f   :  { %v2375_v24 = vadd.f32 %v2374_v4, %v4648_v53  ;;  %v2743_v4 = vld [vmem:[%s5422_s11 + $0x48] sm:$0xff] }
 0x6a0   :  { %v2456_v8 = vadd.f32 %v2355_v52, %v4573_v40 }
 0x6a1   :  { %v2451_v28 = vadd.f32 %v2375_v24, %v4562_v54  ;;  %v2740_v24 = vld [vmem:[%s5422_s11 + $0x30] sm:$0xff] }
 0x6a2   :  { %v2468_v9 = vmax.f32 %v2456_v8, 0.0  ;;  %v2331_v15 = vpop.f32.mrf.mxu0 }
 0x6a3   :  { %v2332_v16 = vadd.f32 %v2331_v15, %v4651_v46  ;;  %v2463_v54 = vmax.f32 %v2451_v28, 0.0  ;;  %v2752_v28 = vld [vmem:[%s5422_s11 + $0x90] sm:$0xff] }
 0x6a4   :  { %2520 = vmatpush.msra.mxu3 %v2468_v9  ;;  %v2742_v9 = vld [vmem:[%s5422_s11 + $0x40] sm:$0xff] }
 0x6a5   :  { %v2455_v14 = vadd.f32 %v2332_v16, %v4584_v43  ;;  %v2761_v43 = vld [vmem:[%s5422_s11 + $0xd8] sm:$0xff] }
 0x6a6   :  { %v2377_v7 = vpop.f32.mrf.mxu2  ;;  %2521 = vmatpush.msra.mxu3 %v2462_v60 }
 0x6a7   :  { %v2467_v47 = vmax.f32 %v2455_v14, 0.0  ;;  %v2378_v13 = vadd.f32 %v2377_v7, %v4651_v46  ;;  %3324 = vmatmul.msk.f32.vlgmr.msra.gmra.mxu3 %vm605_vm1, %v4661_v17  ;;  %v2796_v7 = vld [vmem:[%s5422_s11 + $0x1f0] sm:$0xff] }
 0x6a9   :  { %v2457_v26 = vadd.f32 %v2378_v13, %v4560_v3  ;;  %2500 = vmatpush.msrb.mxu2 %v2467_v47  ;;  %v2763_v3 = vld [vmem:[%s5422_s11 + $0xe8] sm:$0xff] }
 0x6aa   :  { %v2420_v40 = vpop.f32.mrf.mxu0  ;;  %2852 = vmatpush.msra.mxu1 %v2763_v3  ;;  %v2739_v47 = vld [vmem:[%s5422_s11 + $0x28] sm:$0xff]  ;;  %v2750_v3 = vld [vmem:[%s5422_s11 + $0x80] sm:$0xff] }
 0x6ab   :  { %v2469_v20 = vmax.f32 %v2457_v26, 0.0  ;;  %v2443_v37 = vpop.f32.mrf.mxu1  ;;  %2501 = vmatpush.msrb.mxu2 %v2461_v18  ;;  %v2421_v31 = vadd.f32 %v2420_v40, %v4648_v53  ;;  %v2781_v18 = vld [vmem:[%s5422_s11 + $0x178] sm:$0xff]  ;;  %v2738_v26 = vld [vmem:[%s5422_s11 + $0x20] sm:$0xff] }
 0x6ac   :  { %3323 = vmatmul.msk.f32.vlgmr.msrb.gmra.mxu2 %vm605_vm1, %v4661_v17  ;;  %2853 = vmatpush.msra.mxu1 %v2762_v22  ;;  %v2444_v36 = vadd.f32 %v2443_v37, %v4648_v53  ;;  %v2737_v37 = vld [vmem:[%s5422_s11 + $0x18] sm:$0xff]  ;;  %v2794_v40 = vld [vmem:[%s5422_s11 + $0x1e0] sm:$0xff] }
 0x6ad   :  { %2540 = vmatpush.msrb.mxu0 %v2469_v20  ;;  %v2751_v20 = vld [vmem:[%s5422_s11 + $0x88] sm:$0xff]  ;;  %v2829_v22 = vld [vmem:[%s5422_s11 + $0x2f8] sm:$0xff] }
 0x6ae   :  { %2854 = vmatpush.msra.mxu1 %v2761_v43  ;;  %v2454_v35 = vadd.f32 %v2444_v36, %v4622_v2  ;;  %v2744_v2 = vld [vmem:[%s5422_s11 + $0x50] sm:$0xff]  ;;  %v2735_v43 = vld [vmem:[%s5422_s11 + $0x8] sm:$0xff] }
 0x6af   :  { %2541 = vmatpush.msrb.mxu0 %v2463_v54  ;;  %v2779_v54 = vld [vmem:[%s5422_s11 + $0x168] sm:$0xff]  ;;  %v2828_v36 = vld [vmem:[%s5422_s11 + $0x2f0] sm:$0xff] }
 0x6b0   :  { %v2397_v41 = vpop.f32.mrf.mxu3  ;;  %3325 = vmatmul.msk.f32.vlgmr.msrb.gmra.mxu0 %vm605_vm1, %v4661_v17  ;;  %2855 = vmatpush.msra.mxu1 %v2760_v59  ;;  %v2466_v52 = vmax.f32 %v2454_v35, 0.0  ;;  %v2734_v59 = vld [vmem:[%s5422_s11] sm:$0xff]  ;;  %v2812_v35 = vld [vmem:[%s5422_s11 + $0x270] sm:$0xff] }
 0x6b1   :  { %2830 = vmatpush.msra.mxu0 %v2749_v11  ;;  %v2398_v50 = vadd.f32 %v2397_v41, %v4648_v53  ;;  %v2453_v53 = vadd.f32 %v2421_v31, %v4618_v33  ;;  %v2753_v33 = vld [vmem:[%s5422_s11 + $0x98] sm:$0xff]  ;;  %v2736_v11 = vld [vmem:[%s5422_s11 + $0x10] sm:$0xff] }
 0x6b2   :  { %v2423_v1 = vpop.f32.mrf.mxu0  ;;  %2856 = vmatpush.msra.mxu1 %v2759_v63  ;;  %v2793_v41 = vld [vmem:[%s5422_s11 + $0x1d8] sm:$0xff]  ;;  %v2791_v63 = vld [vmem:[%s5422_s11 + $0x1c8] sm:$0xff]  ;;  %v2772_v31 = vld [vmem:[%s5422_s11 + $0x130] sm:$0xff] }
 0x6b3   :  { %v2446_v57 = vpop.f32.mrf.mxu1  ;;  %2831 = vmatpush.msra.mxu0 %v2748_v55  ;;  %v2424_v49 = vadd.f32 %v2423_v1, %v4651_v46  ;;  %v2452_v8 = vadd.f32 %v2398_v50, %v4576_v29  ;;  %v2741_v29 = vld [vmem:[%s5422_s11 + $0x38] sm:$0xff]  ;;  %v2465_v13 = vmax.f32 %v2453_v53, 0.0  ;;  %v2778_v55 = vld [vmem:[%s5422_s11 + $0x160] sm:$0xff] }
 0x6b4   :  { %v2447_v62 = vadd.f32 %v2446_v57, %v4651_v46  ;;  %2857 = vmatpush.msra.mxu1 %v2758_v12  ;;  %v2813_v57 = vld [vmem:[%s5422_s11 + $0x278] sm:$0xff]  ;;  %v2826_v1 = vld [vmem:[%s5422_s11 + $0x2e0] sm:$0xff]  ;;  %v2811_v12 = vld [vmem:[%s5422_s11 + $0x268] sm:$0xff] }
 0x6b5   :  { %2832 = vmatpush.msra.mxu0 %v2747_v34  ;;  %v2459_v15 = vadd.f32 %v2424_v49, %v4613_v32  ;;  %v2464_v60 = vmax.f32 %v2452_v8, 0.0  ;;  %v2754_v32 = vld [vmem:[%s5422_s11 + $0xa0] sm:$0xff]  ;;  %v2792_v34 = vld [vmem:[%s5422_s11 + $0x1d0] sm:$0xff]  ;;  %v2825_v50 = vld [vmem:[%s5422_s11 + $0x2d8] sm:$0xff] }
 0x6b6   :  { %v2460_v6 = vadd.f32 %v2447_v62, %v4615_v25  ;;  %v2757_v25 = vld [vmem:[%s5422_s11 + $0xb8] sm:$0xff]  ;;  %v2827_v62 = vld [vmem:[%s5422_s11 + $0x2e8] sm:$0xff] }
 0x6b7   :  { %2833 = vmatpush.msra.mxu0 %v2746_v44  ;;  %2858 = vmatpush.msra.mxu1 %v2757_v25  ;;  %v2471_v14 = vmax.f32 %v2459_v15, 0.0  ;;  %v2776_v44 = vld [vmem:[%s5422_s11 + $0x150] sm:$0xff]  ;;  %v2773_v49 = vld [vmem:[%s5422_s11 + $0x138] sm:$0xff]  ;;  %v2787_v8 = vld [vmem:[%s5422_s11 + $0x1a8] sm:$0xff] }
 0x6b8   :  { %v2472_v51 = vmax.f32 %v2460_v6, 0.0  ;;  %v2400_v61 = vpop.f32.mrf.mxu3  ;;  %v2775_v6 = vld [vmem:[%s5422_s11 + $0x148] sm:$0xff]  ;;  %v2824_v25 = vld [vmem:[%s5422_s11 + $0x2d0] sm:$0xff]  ;;  %v2786_v15 = vld [vmem:[%s5422_s11 + $0x1a0] sm:$0xff] }
 0x6b9   :  { %v2401_v0 = vadd.f32 %v2400_v61, %v4651_v46  ;;  %2834 = vmatpush.msra.mxu0 %v2745_v42  ;;  %v2756_v46 = vld [vmem:[%s5422_s11 + $0xb0] sm:$0xff]  ;;  %v2790_v42 = vld [vmem:[%s5422_s11 + $0x1c0] sm:$0xff]  ;;  %v2789_v61 = vld [vmem:[%s5422_s11 + $0x1b8] sm:$0xff] }
 0x6ba   :  { %2600 = vmatpush.msrb.mxu3 %v2472_v51  ;;  %2859 = vmatpush.msra.mxu1 %v2756_v46  ;;  %v2774_v51 = vld [vmem:[%s5422_s11 + $0x140] sm:$0xff]  ;;  %v2785_v53 = vld [vmem:[%s5422_s11 + $0x198] sm:$0xff] }
 0x6bb   :  { %v2458_v38 = vadd.f32 %v2401_v0, %v4569_v30  ;;  %2835 = vmatpush.msra.mxu0 %v2744_v2  ;;  %v2755_v30 = vld [vmem:[%s5422_s11 + $0xa8] sm:$0xff]  ;;  %v2810_v2 = vld [vmem:[%s5422_s11 + $0x260] sm:$0xff]  ;;  %v2788_v0 = vld [vmem:[%s5422_s11 + $0x1b0] sm:$0xff] }
 0x6bc   :  { %2601 = vmatpush.msrb.mxu3 %v2466_v52  ;;  %2860 = vmatpush.msra.mxu1 %v2755_v30  ;;  %v2809_v52 = vld [vmem:[%s5422_s11 + $0x258] sm:$0xff]  ;;  %v2822_v46 = vld [vmem:[%s5422_s11 + $0x2c0] sm:$0xff] }
 0x6bd   :  { %v2470_v16 = vmax.f32 %v2458_v38, 0.0  ;;  %3328 = vmatmul.msk.f32.vlgmr.msrb.gmra.mxu3 %vm605_vm1, %v4661_v17  ;;  %2836 = vmatpush.msra.mxu0 %v2743_v4  ;;  %v2823_v4 = vld [vmem:[%s5422_s11 + $0x2c8] sm:$0xff]  ;;  %v2808_v38 = vld [vmem:[%s5422_s11 + $0x250] sm:$0xff]  ;;  %v2821_v30 = vld [vmem:[%s5422_s11 + $0x2b8] sm:$0xff] }
 0x6be   :  { %2890 = vmatpush.msra.mxu3 %v2797_v10  ;;  %2861 = vmatpush.msra.mxu1 %v2754_v32  ;;  %v2820_v32 = vld [vmem:[%s5422_s11 + $0x2b0] sm:$0xff]  ;;  %v2769_v10 = vld [vmem:[%s5422_s11 + $0x118] sm:$0xff] }
 0x6bf   :  { %2560 = vmatpush.msra.mxu2 %v2470_v16  ;;  %2837 = vmatpush.msra.mxu0 %v2742_v9  ;;  %v2771_v9 = vld [vmem:[%s5422_s11 + $0x128] sm:$0xff] }
 0x6c0   :  { %2862 = vmatpush.msra.mxu1 %v2753_v33  ;;  %2891 = vmatpush.msra.mxu3 %v2796_v7  ;;  %v2807_v16 = vld [vmem:[%s5422_s11 + $0x248] sm:$0xff]  ;;  %v2768_v7 = vld [vmem:[%s5422_s11 + $0x110] sm:$0xff] }
 0x6c1   :  { %2561 = vmatpush.msra.mxu2 %v2464_v60  ;;  %2838 = vmatpush.msra.mxu0 %v2741_v29  ;;  %v2770_v29 = vld [vmem:[%s5422_s11 + $0x120] sm:$0xff]  ;;  %v2819_v33 = vld [vmem:[%s5422_s11 + $0x2a8] sm:$0xff] }
 0x6c2   :  { %3326 = vmatmul.msk.f32.vlgmr.msra.gmra.mxu2 %vm605_vm1, %v4661_v17  ;;  %2863 = vmatpush.msra.mxu1 %v2752_v28  ;;  %v2806_v60 = vld [vmem:[%s5422_s11 + $0x240] sm:$0xff]  ;;  %v2767_v28 = vld [vmem:[%s5422_s11 + $0x108] sm:$0xff] }
 0x6c3   :  { %2580 = vmatpush.msrb.mxu2 %v2471_v14  ;;  %2839 = vmatpush.msra.mxu0 %v2740_v24  ;;  %v2784_v24 = vld [vmem:[%s5422_s11 + $0x190] sm:$0xff]  ;;  %v2805_v14 = vld [vmem:[%s5422_s11 + $0x238] sm:$0xff] }
 0x6c4   :  { %2892 = vmatpush.msra.mxu3 %v2795_v39  ;;  %2864 = vmatpush.msra.mxu1 %v2751_v20  ;;  %v2803_v39 = vld [vmem:[%s5422_s11 + $0x228] sm:$0xff]  ;;  %v2766_v20 = vld [vmem:[%s5422_s11 + $0x100] sm:$0xff] }
 0x6c5   :  { %2581 = vmatpush.msrb.mxu2 %v2465_v13  ;;  %2840 = vmatpush.msra.mxu0 %v2739_v47  ;;  %v2783_v47 = vld [vmem:[%s5422_s11 + $0x188] sm:$0xff]  ;;  %v2804_v13 = vld [vmem:[%s5422_s11 + $0x230] sm:$0xff] }
 0x6c6   :  { %2893 = vmatpush.msra.mxu3 %v2794_v40  ;;  %2865 = vmatpush.msra.mxu1 %v2750_v3  ;;  %v2621_v40 = vld [vmem:[%s5423_s10 + $0x78] sm:$0xff]  ;;  %v2802_v3 = vld [vmem:[%s5422_s11 + $0x220] sm:$0xff] }
 0x6c7   :  { %2870 = vmatpush.msra.mxu2 %v2781_v18  ;;  %2841 = vmatpush.msra.mxu0 %v2738_v26  ;;  %v2818_v18 = vld [vmem:[%s5422_s11 + $0x2a0] sm:$0xff] }
 0x6c8   :  { %2930 = vmatpush.msrb.mxu1 %v2829_v22  ;;  %2894 = vmatpush.msra.mxu3 %v2793_v41  ;;  %v2782_v26 = vld [vmem:[%s5422_s11 + $0x180] sm:$0xff]  ;;  %v2619_v22 = vld [vmem:[%s5423_s10 + $0x68] sm:$0xff] }
 0x6c9   :  { %2871 = vmatpush.msra.mxu2 %v2780_v48  ;;  %2842 = vmatpush.msra.mxu0 %v2737_v37  ;;  %v2817_v48 = vld [vmem:[%s5422_s11 + $0x298] sm:$0xff]  ;;  %v2618_v41 = vld [vmem:[%s5423_s10 + $0x60] sm:$0xff] }
 0x6ca   :  { %3327 = vmatmul.msk.f32.vlgmr.msrb.gmra.mxu2 %vm605_vm1, %v4661_v17  ;;  %v2777_v17 = vld [vmem:[%s5422_s11 + $0x158] sm:$0xff]  ;;  %2931 = vmatpush.msrb.mxu1 %v2828_v36  ;;  %v2615_v36 = vld [vmem:[%s5423_s10 + $0x48] sm:$0xff] }
 0x6cb   :  { %2872 = vmatpush.msra.mxu2 %v2779_v54  ;;  %2843 = vmatpush.msra.mxu0 %v2736_v11  ;;  %v2637_v37 = vld [vmem:[%s5423_s10 + $0xf8] sm:$0xff]  ;;  %v2816_v54 = vld [vmem:[%s5422_s11 + $0x290] sm:$0xff] }
 0x6cc   :  { %2895 = vmatpush.msra.mxu3 %v2792_v34  ;;  %2932 = vmatpush.msrb.mxu1 %v2827_v62  ;;  %v2620_v11 = vld [vmem:[%s5423_s10 + $0x70] sm:$0xff]  ;;  %v2614_v34 = vld [vmem:[%s5423_s10 + $0x40] sm:$0xff] }
 0x6cd   :  { %2873 = vmatpush.msra.mxu2 %v2778_v55  ;;  %2844 = vmatpush.msra.mxu0 %v2735_v43  ;;  %v2617_v55 = vld [vmem:[%s5423_s10 + $0x58] sm:$0xff]  ;;  %v2616_v43 = vld [vmem:[%s5423_s10 + $0x50] sm:$0xff]  ;;  %v2610_v62 = vld [vmem:[%s5423_s10 + $0x20] sm:$0xff] }
 0x6ce   :  { %2896 = vmatpush.msra.mxu3 %v2791_v63  ;;  %2933 = vmatpush.msrb.mxu1 %v2826_v1  ;;  %v2801_v63 = vld [vmem:[%s5422_s11 + $0x218] sm:$0xff]  ;;  %v2608_v1 = vld [vmem:[%s5423_s10 + $0x10] sm:$0xff] }
 0x6cf   :  { %2874 = vmatpush.msra.mxu2 %v2777_v17  ;;  %2845 = vmatpush.msra.mxu0 %v2734_v59  ;;  %v2613_v17 = vld [vmem:[%s5423_s10 + $0x38] sm:$0xff]  ;;  %v2612_v59 = vld [vmem:[%s5423_s10 + $0x30] sm:$0xff] }
 0x6d0   :  { %2897 = vmatpush.msra.mxu3 %v2790_v42  ;;  %2934 = vmatpush.msrb.mxu1 %v2825_v50  ;;  %v2800_v42 = vld [vmem:[%s5422_s11 + $0x210] sm:$0xff]  ;;  %v2607_v50 = vld [vmem:[%s5423_s10 + $0x8] sm:$0xff] }
 0x6d1   :  { %2910 = vmatpush.msrb.mxu0 %v2813_v57  ;;  %2875 = vmatpush.msra.mxu2 %v2776_v44  ;;  %v2611_v57 = vld [vmem:[%s5423_s10 + $0x28] sm:$0xff]  ;;  %v2609_v44 = vld [vmem:[%s5423_s10 + $0x18] sm:$0xff] }
 0x6d2   :  { %2898 = vmatpush.msra.mxu3 %v2789_v61  ;;  %2935 = vmatpush.msrb.mxu1 %v2824_v25  ;;  %v2799_v61 = vld [vmem:[%s5422_s11 + $0x208] sm:$0xff]  ;;  %v2634_v25 = vld [vmem:[%s5423_s10 + $0xe0] sm:$0xff] }
 0x6d3   :  { %2911 = vmatpush.msrb.mxu0 %v2812_v35  ;;  %2876 = vmatpush.msra.mxu2 %v2775_v6  ;;  %v2815_v35 = vld [vmem:[%s5422_s11 + $0x288] sm:$0xff]  ;;  %v2636_v6 = vld [vmem:[%s5423_s10 + $0xf0] sm:$0xff] }
 0x6d4   :  { %2899 = vmatpush.msra.mxu3 %v2788_v0  ;;  %2936 = vmatpush.msrb.mxu1 %v2823_v4  ;;  %v2633_v0 = vld [vmem:[%s5423_s10 + $0xd8] sm:$0xff]  ;;  %v2631_v4 = vld [vmem:[%s5423_s10 + $0xc8] sm:$0xff] }
 0x6d5   :  { %2912 = vmatpush.msrb.mxu0 %v2811_v12  ;;  %2877 = vmatpush.msra.mxu2 %v2774_v51  ;;  %v2814_v12 = vld [vmem:[%s5422_s11 + $0x280] sm:$0xff]  ;;  %v2635_v51 = vld [vmem:[%s5423_s10 + $0xe8] sm:$0xff] }
 0x6d6   :  { %2900 = vmatpush.msra.mxu3 %v2787_v8  ;;  %2937 = vmatpush.msrb.mxu1 %v2822_v46  ;;  %v2629_v8 = vld [vmem:[%s5423_s10 + $0xb8] sm:$0xff]  ;;  %v2627_v46 = vld [vmem:[%s5423_s10 + $0xa8] sm:$0xff] }
 0x6d7   :  { %2913 = vmatpush.msrb.mxu0 %v2810_v2  ;;  %2878 = vmatpush.msra.mxu2 %v2773_v49  ;;  %v2606_v2 = vld [vmem:[%s5423_s10] sm:$0xff] }
 0x6d8   :  { %2901 = vmatpush.msra.mxu3 %v2786_v15  ;;  %2938 = vmatpush.msrb.mxu1 %v2821_v30  ;;  %v2798_v49 = vld [vmem:[%s5422_s11 + $0x200] sm:$0xff]  ;;  %v2625_v15 = vld [vmem:[%s5423_s10 + $0x98] sm:$0xff]  ;;  %v2480_v30 = vpop.permute.xlu1 %2479 }
 0x6d9   :  { %2914 = vmatpush.msrb.mxu0 %v2809_v52  ;;  %2879 = vmatpush.msra.mxu2 %v2772_v31  ;;  %v2632_v52 = vld [vmem:[%s5423_s10 + $0xd0] sm:$0xff]  ;;  %v2630_v31 = vld [vmem:[%s5423_s10 + $0xc0] sm:$0xff] }
 0x6da   :  { %2902 = vmatpush.msra.mxu3 %v2785_v53  ;;  %2939 = vmatpush.msrb.mxu1 %v2820_v32  ;;  %v2622_v53 = vld [vmem:[%s5423_s10 + $0x80] sm:$0xff] }
 0x6db   :  { %2915 = vmatpush.msrb.mxu0 %v2808_v38  ;;  %2880 = vmatpush.msra.mxu2 %v2771_v9  ;;  %v2628_v38 = vld [vmem:[%s5423_s10 + $0xb0] sm:$0xff]  ;;  %v2626_v9 = vld [vmem:[%s5423_s10 + $0xa0] sm:$0xff] }
 0x6dc   :  { %2903 = vmatpush.msra.mxu3 %v2784_v24  ;;  %2940 = vmatpush.msrb.mxu1 %v2819_v33  ;;  %v2669_v24 = vld [vmem:[%s5423_s10 + $0x1f8] sm:$0xff]  ;;  %v2668_v33 = vld [vmem:[%s5423_s10 + $0x1f0] sm:$0xff] }
 0x6dd   :  { %2916 = vmatpush.msrb.mxu0 %v2807_v16  ;;  %2881 = vmatpush.msra.mxu2 %v2770_v29  ;;  %v2624_v16 = vld [vmem:[%s5423_s10 + $0x90] sm:$0xff]  ;;  %v2623_v29 = vld [vmem:[%s5423_s10 + $0x88] sm:$0xff] }
 0x6de   :  { %2904 = vmatpush.msra.mxu3 %v2783_v47  ;;  %2941 = vmatpush.msrb.mxu1 %v2818_v18  ;;  %v2685_v47 = vld [vmem:[%s5423_s10 + $0x278] sm:$0xff]  ;;  %v2667_v18 = vld [vmem:[%s5423_s10 + $0x1e8] sm:$0xff] }
 0x6df   :  { %2917 = vmatpush.msrb.mxu0 %v2806_v60  ;;  %2882 = vmatpush.msra.mxu2 %v2769_v10  ;;  %v5077_v60 = vperm.slane %v2480_v30, 0  ;;  %v2641_v30 = vld [vmem:[%s5423_s10 + $0x118] sm:$0xff] }
 0x6e0   :  { %2905 = vmatpush.msra.mxu3 %v2782_v26  ;;  %2942 = vmatpush.msrb.mxu1 %v2817_v48  ;;  %v2653_v26 = vld [vmem:[%s5423_s10 + $0x178] sm:$0xff]  ;;  %v1318_v48 = vpop.permute.xlu2 %1317 }
 0x6e1   :  { %2918 = vmatpush.msrb.mxu0 %v2805_v14  ;;  %2883 = vmatpush.msra.mxu2 %v2768_v7 }
 0x6e2   :  { %2970 = vmatpush.msrb.mxu3 %v2637_v37  ;;  %2943 = vmatpush.msrb.mxu1 %v2816_v54  ;;  %v2652_v37 = vld [vmem:[%s5423_s10 + $0x170] sm:$0xff]  ;;  %v5112_v54 = vperm.slane %v1318_v48, 0 }
 0x6e3   :  { %2919 = vmatpush.msrb.mxu0 %v2804_v13  ;;  %2884 = vmatpush.msra.mxu2 %v2767_v28  ;;  %v2732_v48 = vld [vmem:[%s5423_s10 + $0x3f0] sm:$0xff] }
 0x6e4   :  { %2944 = vmatpush.msrb.mxu1 %v2815_v35  ;;  %2971 = vmatpush.msrb.mxu3 %v2636_v6  ;;  %v2678_v35 = vld [vmem:[%s5423_s10 + $0x240] sm:$0xff] }
 0x6e5   :  { %2920 = vmatpush.msrb.mxu0 %v2803_v39  ;;  %2885 = vmatpush.msra.mxu2 %v2766_v20  ;;  %v2684_v39 = vld [vmem:[%s5423_s10 + $0x270] sm:$0xff]  ;;  %v2666_v20 = vld [vmem:[%s5423_s10 + $0x1e0] sm:$0xff] }
 0x6e6   :  { %2945 = vmatpush.msrb.mxu1 %v2814_v12  ;;  %2972 = vmatpush.msrb.mxu3 %v2635_v51  ;;  %v2646_v6 = vld [vmem:[%s5423_s10 + $0x140] sm:$0xff]  ;;  %v2659_v12 = vld [vmem:[%s5423_s10 + $0x1a8] sm:$0xff]  ;;  %v2645_v51 = vld [vmem:[%s5423_s10 + $0x138] sm:$0xff] }
 0x6e7   :  { %2950 = vmatpush.msrb.mxu2 %v2621_v40  ;;  %2921 = vmatpush.msrb.mxu0 %v2802_v3  ;;  %v2683_v40 = vld [vmem:[%s5423_s10 + $0x268] sm:$0xff]  ;;  %v2665_v3 = vld [vmem:[%s5423_s10 + $0x1d8] sm:$0xff] }
 0x6e8   :  { %2973 = vmatpush.msrb.mxu3 %v2634_v25  ;;  %v2658_v25 = vld [vmem:[%s5423_s10 + $0x1a0] sm:$0xff] }
 0x6e9   :  { %2951 = vmatpush.msrb.mxu2 %v2620_v11  ;;  %2922 = vmatpush.msrb.mxu0 %v2801_v63  ;;  %v2651_v11 = vld [vmem:[%s5423_s10 + $0x168] sm:$0xff] }
 0x6ea   :  { %2974 = vmatpush.msrb.mxu3 %v2633_v0  ;;  %v2647_v63 = vld [vmem:[%s5423_s10 + $0x148] sm:$0xff] }
 0x6eb   :  { %2952 = vmatpush.msrb.mxu2 %v2619_v22  ;;  %2923 = vmatpush.msrb.mxu0 %v2800_v42  ;;  %v2682_v22 = vld [vmem:[%s5423_s10 + $0x260] sm:$0xff]  ;;  %v2677_v42 = vld [vmem:[%s5423_s10 + $0x238] sm:$0xff]  ;;  %v2675_v0 = vld [vmem:[%s5423_s10 + $0x228] sm:$0xff] }
 0x6ec   :  { %2975 = vmatpush.msrb.mxu3 %v2632_v52  ;;  %v2657_v52 = vld [vmem:[%s5423_s10 + $0x198] sm:$0xff] }
 0x6ed   :  { %2953 = vmatpush.msrb.mxu2 %v2618_v41  ;;  %2924 = vmatpush.msrb.mxu0 %v2799_v61  ;;  %v2664_v41 = vld [vmem:[%s5423_s10 + $0x1d0] sm:$0xff] }
 0x6ee   :  { %2976 = vmatpush.msrb.mxu3 %v2631_v4  ;;  %v2643_v4 = vld [vmem:[%s5423_s10 + $0x128] sm:$0xff] }
 0x6ef   :  { %2954 = vmatpush.msrb.mxu2 %v2617_v55  ;;  %2925 = vmatpush.msrb.mxu0 %v2798_v49  ;;  %v1342_v55 = vadd.f32 %v4351_v45, %v5112_v54  ;;  %v2649_v45 = vld [vmem:[%s5423_s10 + $0x158] sm:$0xff]  ;;  %v2644_v49 = vld [vmem:[%s5423_s10 + $0x130] sm:$0xff] }
 0x6f0   :  { %2977 = vmatpush.msrb.mxu3 %v2630_v31 }
 0x6f1   :  { %2955 = vmatpush.msrb.mxu2 %v2616_v43  ;;  %v2650_v43 = vld [vmem:[%s5423_s10 + $0x160] sm:$0xff] }
 0x6f2   :  { %2978 = vmatpush.msrb.mxu3 %v2629_v8  ;;  %v2674_v8 = vld [vmem:[%s5423_s10 + $0x220] sm:$0xff] }
 0x6f3   :  { %2956 = vmatpush.msrb.mxu2 %v2615_v36  ;;  %v2681_v36 = vld [vmem:[%s5423_s10 + $0x258] sm:$0xff] }
 0x6f4   :  { %2979 = vmatpush.msrb.mxu3 %v2628_v38 }
 0x6f5   :  { %2957 = vmatpush.msrb.mxu2 %v2614_v34  ;;  %v2663_v34 = vld [vmem:[%s5423_s10 + $0x1c8] sm:$0xff] }
 0x6f6   :  { %2980 = vmatpush.msrb.mxu3 %v2627_v46  ;;  %v2642_v46 = vld [vmem:[%s5423_s10 + $0x120] sm:$0xff] }
 0x6f7   :  { %2958 = vmatpush.msrb.mxu2 %v2613_v17  ;;  %v2680_v17 = vld [vmem:[%s5423_s10 + $0x250] sm:$0xff] }
 0x6f8   :  { %2981 = vmatpush.msrb.mxu3 %v2626_v9  ;;  %v2656_v9 = vld [vmem:[%s5423_s10 + $0x190] sm:$0xff] }
 0x6f9   :  { %2959 = vmatpush.msrb.mxu2 %v2612_v59  ;;  %v2662_v59 = vld [vmem:[%s5423_s10 + $0x1c0] sm:$0xff] }
 0x6fa   :  { %2982 = vmatpush.msrb.mxu3 %v2625_v15  ;;  %v2673_v15 = vld [vmem:[%s5423_s10 + $0x218] sm:$0xff] }
 0x6fb   :  { %2960 = vmatpush.msrb.mxu2 %v2611_v57  ;;  %v2648_v57 = vld [vmem:[%s5423_s10 + $0x150] sm:$0xff] }
 0x6fc   :  { %2983 = vmatpush.msrb.mxu3 %v2624_v16  ;;  %v2701_v16 = vld [vmem:[%s5423_s10 + $0x2f8] sm:$0xff] }
 0x6fd   :  { %2961 = vmatpush.msrb.mxu2 %v2610_v62  ;;  %v2679_v62 = vld [vmem:[%s5423_s10 + $0x248] sm:$0xff] }
 0x6fe   :  { %2984 = vmatpush.msrb.mxu3 %v2623_v29  ;;  %v2655_v29 = vld [vmem:[%s5423_s10 + $0x188] sm:$0xff] }
 0x6ff   :  { %2962 = vmatpush.msrb.mxu2 %v2609_v44  ;;  %v2661_v44 = vld [vmem:[%s5423_s10 + $0x1b8] sm:$0xff] }
 0x700   :  { %2985 = vmatpush.msrb.mxu3 %v2622_v53  ;;  %v2672_v53 = vld [vmem:[%s5423_s10 + $0x210] sm:$0xff] }
 0x701   :  { %2963 = vmatpush.msrb.mxu2 %v2608_v1  ;;  %v2660_v1 = vld [vmem:[%s5423_s10 + $0x1b0] sm:$0xff] }
 0x703   :  { %2964 = vmatpush.msrb.mxu2 %v2607_v50 }
 0x705   :  { %2965 = vmatpush.msrb.mxu2 %v2606_v2  ;;  %v2676_v2 = vld [vmem:[%s5423_s10 + $0x230] sm:$0xff] }
 0x72a   :  { %v2523_v32 = vpop.f32.mrf.mxu3 }
 0x72b   :  { %v2524_v10 = vadd.f32 %v2523_v32, %v5077_v60  ;;  %v2700_v32 = vld [vmem:[%s5423_s10 + $0x2f0] sm:$0xff] }
 0x72d   :  { %v2543_v14 = vpop.f32.mrf.mxu0  ;;  %2866 = vmatmul.f32.vlgmr.msra.gmra.mxu1 %v2524_v10  ;;  %v2640_v10 = vld [vmem:[%s5423_s10 + $0x110] sm:$0xff] }
 0x72e   :  { %v2544_v7 = vadd.f32 %v2543_v14, %v5077_v60  ;;  %3010 = vmatpush.msra.mxu1 %v2669_v24  ;;  %v2654_v24 = vld [vmem:[%s5423_s10 + $0x180] sm:$0xff]  ;;  %v2671_v14 = vld [vmem:[%s5423_s10 + $0x208] sm:$0xff] }
 0x72f   :  { %v2503_v13 = vpop.f32.mrf.mxu2 }
 0x730   :  { %v2504_v28 = vadd.f32 %v2503_v13, %v5077_v60  ;;  %2886 = vmatmul.f32.vlgmr.msra.gmra.mxu2 %v2544_v7  ;;  %3011 = vmatpush.msra.mxu1 %v2668_v33  ;;  %v2699_v33 = vld [vmem:[%s5423_s10 + $0x2e8] sm:$0xff] }
 0x731   :  { %3030 = vmatpush.msra.mxu2 %v2685_v47  ;;  %v2639_v7 = vld [vmem:[%s5423_s10 + $0x108] sm:$0xff]  ;;  %v1402_v47 = vadd.f32 %v4361_v23, %v5112_v54  ;;  %v1422_v23 = vadd.f32 %v4355_v56, %v5112_v54  ;;  %v2697_v56 = vld [vmem:[%s5423_s10 + $0x2d8] sm:$0xff] }
 0x732   :  { %2846 = vmatmul.f32.vlgmr.msra.gmra.mxu0 %v2504_v28  ;;  %3012 = vmatpush.msra.mxu1 %v2667_v18  ;;  %v2733_v18 = vld [vmem:[%s5423_s10 + $0x3f8] sm:$0xff]  ;;  %v2670_v28 = vld [vmem:[%s5423_s10 + $0x200] sm:$0xff] }
 0x733   :  { %2990 = vmatpush.msra.mxu0 %v2653_v26  ;;  %3031 = vmatpush.msra.mxu2 %v2684_v39  ;;  %v2698_v39 = vld [vmem:[%s5423_s10 + $0x2e0] sm:$0xff] }
 0x734   :  { %3013 = vmatpush.msra.mxu1 %v2666_v20  ;;  %v2638_v20 = vld [vmem:[%s5423_s10 + $0x100] sm:$0xff] }
 0x735   :  { %2991 = vmatpush.msra.mxu0 %v2652_v37  ;;  %3032 = vmatpush.msra.mxu2 %v2683_v40  ;;  %v2717_v37 = vld [vmem:[%s5423_s10 + $0x378] sm:$0xff]  ;;  %v2731_v40 = vld [vmem:[%s5423_s10 + $0x3e8] sm:$0xff] }
 0x736   :  { %3014 = vmatpush.msra.mxu1 %v2665_v3  ;;  %v2716_v3 = vld [vmem:[%s5423_s10 + $0x370] sm:$0xff] }
 0x737   :  { %2992 = vmatpush.msra.mxu0 %v2651_v11  ;;  %3033 = vmatpush.msra.mxu2 %v2682_v22  ;;  %v2730_v11 = vld [vmem:[%s5423_s10 + $0x3e0] sm:$0xff]  ;;  %v2695_v22 = vld [vmem:[%s5423_s10 + $0x2c8] sm:$0xff] }
 0x738   :  { %2966 = vmatmul.f32.vlgmr.msrb.gmra.mxu2 %v1342_v55  ;;  %3015 = vmatpush.msra.mxu1 %v2664_v41  ;;  %v2715_v41 = vld [vmem:[%s5423_s10 + $0x368] sm:$0xff]  ;;  %v2729_v55 = vld [vmem:[%s5423_s10 + $0x3d8] sm:$0xff] }
 0x739   :  { %2993 = vmatpush.msra.mxu0 %v2650_v43  ;;  %3034 = vmatpush.msra.mxu2 %v2681_v36  ;;  %v2694_v43 = vld [vmem:[%s5423_s10 + $0x2c0] sm:$0xff] }
 0x73a   :  { %3016 = vmatpush.msra.mxu1 %v2663_v34  ;;  %v2714_v36 = vld [vmem:[%s5423_s10 + $0x360] sm:$0xff]  ;;  %v2728_v34 = vld [vmem:[%s5423_s10 + $0x3d0] sm:$0xff] }
 0x73b   :  { %2994 = vmatpush.msra.mxu0 %v2649_v45  ;;  %3035 = vmatpush.msra.mxu2 %v2680_v17  ;;  %v1382_v45 = vadd.f32 %v4359_v21, %v5112_v54  ;;  %v2693_v17 = vld [vmem:[%s5423_s10 + $0x2b8] sm:$0xff]  ;;  %v2692_v21 = vld [vmem:[%s5423_s10 + $0x2b0] sm:$0xff] }
 0x73c   :  { %3017 = vmatpush.msra.mxu1 %v2662_v59  ;;  %v2713_v59 = vld [vmem:[%s5423_s10 + $0x358] sm:$0xff] }
 0x73d   :  { %2995 = vmatpush.msra.mxu0 %v2648_v57  ;;  %3036 = vmatpush.msra.mxu2 %v2679_v62  ;;  %v2727_v57 = vld [vmem:[%s5423_s10 + $0x3c8] sm:$0xff]  ;;  %v2712_v62 = vld [vmem:[%s5423_s10 + $0x350] sm:$0xff] }
 0x73e   :  { %3018 = vmatpush.msra.mxu1 %v2661_v44  ;;  %v2726_v44 = vld [vmem:[%s5423_s10 + $0x3c0] sm:$0xff] }
 0x73f   :  { %2996 = vmatpush.msra.mxu0 %v2647_v63  ;;  %3037 = vmatpush.msra.mxu2 %v2678_v35  ;;  %v2691_v63 = vld [vmem:[%s5423_s10 + $0x2a8] sm:$0xff] }
 0x740   :  { %v2603_v50 = vpop.f32.mrf.mxu3  ;;  %3019 = vmatpush.msra.mxu1 %v2660_v1  ;;  %v2711_v35 = vld [vmem:[%s5423_s10 + $0x348] sm:$0xff]  ;;  %v2725_v1 = vld [vmem:[%s5423_s10 + $0x3b8] sm:$0xff] }
 0x741   :  { %v2604_v61 = vadd.f32 %v2603_v50, %v5077_v60  ;;  %2997 = vmatpush.msra.mxu0 %v2646_v6  ;;  %3038 = vmatpush.msra.mxu2 %v2677_v42  ;;  %v2690_v6 = vld [vmem:[%s5423_s10 + $0x2a0] sm:$0xff]  ;;  %v2689_v50 = vld [vmem:[%s5423_s10 + $0x298] sm:$0xff] }
 0x742   :  { %3020 = vmatpush.msra.mxu1 %v2659_v12  ;;  %v2710_v42 = vld [vmem:[%s5423_s10 + $0x340] sm:$0xff]  ;;  %v2724_v12 = vld [vmem:[%s5423_s10 + $0x3b0] sm:$0xff] }
 0x743   :  { %2946 = vmatmul.f32.vlgmr.msrb.gmra.mxu1 %v2604_v61  ;;  %2998 = vmatpush.msra.mxu0 %v2645_v51  ;;  %v2709_v51 = vld [vmem:[%s5423_s10 + $0x338] sm:$0xff]  ;;  %v2723_v61 = vld [vmem:[%s5423_s10 + $0x3a8] sm:$0xff] }
 0x744   :  { %3039 = vmatpush.msra.mxu2 %v2676_v2  ;;  %3021 = vmatpush.msra.mxu1 %v2658_v25  ;;  %v2688_v2 = vld [vmem:[%s5423_s10 + $0x290] sm:$0xff] }
 0x745   :  { %2999 = vmatpush.msra.mxu0 %v2644_v49  ;;  %v2563_v31 = vpop.f32.mrf.mxu2  ;;  %v2708_v25 = vld [vmem:[%s5423_s10 + $0x330] sm:$0xff]  ;;  %v2722_v49 = vld [vmem:[%s5423_s10 + $0x3a0] sm:$0xff] }
 0x746   :  { %3040 = vmatpush.msra.mxu2 %v2675_v0  ;;  %v2564_v38 = vadd.f32 %v2563_v31, %v5077_v60  ;;  %3022 = vmatpush.msra.mxu1 %v2657_v52  ;;  %v2687_v0 = vld [vmem:[%s5423_s10 + $0x288] sm:$0xff]  ;;  %v2686_v31 = vld [vmem:[%s5423_s10 + $0x280] sm:$0xff] }
 0x747   :  { %3000 = vmatpush.msra.mxu0 %v2643_v4  ;;  %v2707_v52 = vld [vmem:[%s5423_s10 + $0x328] sm:$0xff]  ;;  %v2721_v4 = vld [vmem:[%s5423_s10 + $0x398] sm:$0xff] }
 0x748   :  { %3041 = vmatpush.msra.mxu2 %v2674_v8  ;;  %2906 = vmatmul.f32.vlgmr.msra.gmra.mxu3 %v2564_v38  ;;  %v2706_v8 = vld [vmem:[%s5423_s10 + $0x320] sm:$0xff]  ;;  %v2720_v38 = vld [vmem:[%s5423_s10 + $0x390] sm:$0xff] }
 0x749   :  { %3001 = vmatpush.msra.mxu0 %v2642_v46  ;;  %3023 = vmatpush.msra.mxu1 %v2656_v9  ;;  %v1442_v46 = vadd.f32 %v4357_v58, %v5112_v54  ;;  %v2705_v9 = vld [vmem:[%s5423_s10 + $0x318] sm:$0xff]  ;;  %v2718_v58 = vld [vmem:[%s5423_s10 + $0x380] sm:$0xff] }
 0x74a   :  { %3042 = vmatpush.msra.mxu2 %v2673_v15  ;;  %3050 = vmatpush.msra.mxu3 %v2701_v16  ;;  %v2719_v15 = vld [vmem:[%s5423_s10 + $0x388] sm:$0xff]  ;;  %v2704_v16 = vld [vmem:[%s5423_s10 + $0x310] sm:$0xff] }
 0x74b   :  { %3002 = vmatpush.msra.mxu0 %v2641_v30  ;;  %3024 = vmatpush.msra.mxu1 %v2655_v29  ;;  %v2703_v30 = vld [vmem:[%s5423_s10 + $0x308] sm:$0xff]  ;;  %v1482_v29 = vadd.f32 %v4365_v5, %v5112_v54 }
 0x74c   :  { %3043 = vmatpush.msra.mxu2 %v2672_v53  ;;  %3051 = vmatpush.msra.mxu3 %v2700_v32  ;;  %v2702_v53 = vld [vmem:[%s5423_s10 + $0x300] sm:$0xff]  ;;  %v1462_v32 = vadd.f32 %v4363_v27, %v5112_v54 }
 0x74d   :  { %3003 = vmatpush.msra.mxu0 %v2640_v10  ;;  %3025 = vmatpush.msra.mxu1 %v2654_v24  ;;  %v2583_v13 = vpop.f32.mrf.mxu2 }
 0x74e   :  { %3044 = vmatpush.msra.mxu2 %v2671_v14  ;;  %3052 = vmatpush.msra.mxu3 %v2699_v33  ;;  %v2584_v26 = vadd.f32 %v2583_v13, %v5077_v60  ;;  %v1362_v60 = vadd.f32 %v4353_v19, %v5112_v54  ;;  %v2696_v19 = vld [vmem:[%s5423_s10 + $0x2d0] sm:$0xff]  ;;  %v3114_v54 = vld [vmem:[%s5424_s13 + $0x8] sm:$0xff] }
 0x74f   :  { %3026 = vmatmul.f32.vlgmr.msra.gmra.mxu1 %v1402_v47  ;;  %3004 = vmatpush.msra.mxu0 %v2639_v7 }
 0x750   :  { %3090 = vmatpush.msrb.mxu1 %v2733_v18  ;;  %3045 = vmatpush.msra.mxu2 %v2670_v28  ;;  %v3116_v18 = vld [vmem:[%s5424_s13 + $0x18] sm:$0xff]  ;;  %v3115_v28 = vld [vmem:[%s5424_s13 + $0x10] sm:$0xff] }
 0x751   :  { %3053 = vmatpush.msra.mxu3 %v2698_v39  ;;  %3046 = vmatmul.f32.vlgmr.msra.gmra.mxu2 %v1422_v23 }
 0x752   :  { %3091 = vmatpush.msrb.mxu1 %v2732_v48  ;;  %2926 = vmatmul.f32.vlgmr.msrb.gmra.mxu0 %v2584_v26  ;;  %v3113_v26 = vld [vmem:[%s5424_s13] sm:$0xff] }
 0x753   :  { %2986 = vmatmul.f32.vlgmr.msrb.gmra.mxu3 %v1362_v60  ;;  %3005 = vmatpush.msra.mxu0 %v2638_v20 }
 0x754   :  { %3054 = vmatpush.msra.mxu3 %v2697_v56  ;;  %3092 = vmatpush.msrb.mxu1 %v2731_v40 }
 0x755   :  { %3070 = vmatpush.msrb.mxu0 %v2717_v37  ;;  %3134 = vmatpush.msrb.mxu2 %v3116_v18 }
 0x756   :  { %3055 = vmatpush.msra.mxu3 %v2696_v19  ;;  %3093 = vmatpush.msrb.mxu1 %v2730_v11 }
 0x757   :  { %3071 = vmatpush.msrb.mxu0 %v2716_v3  ;;  %3135 = vmatpush.msrb.mxu2 %v3115_v28 }
 0x758   :  { %3056 = vmatpush.msra.mxu3 %v2695_v22  ;;  %3094 = vmatpush.msrb.mxu1 %v2729_v55 }
 0x759   :  { %3072 = vmatpush.msrb.mxu0 %v2715_v41  ;;  %3136 = vmatpush.msrb.mxu2 %v3114_v54 }
 0x75a   :  { %3057 = vmatpush.msra.mxu3 %v2694_v43  ;;  %3095 = vmatpush.msrb.mxu1 %v2728_v34 }
 0x75b   :  { %3073 = vmatpush.msrb.mxu0 %v2714_v36  ;;  %3137 = vmatpush.msrb.mxu2 %v3113_v26 }
 0x75c   :  { %3006 = vmatmul.f32.vlgmr.msra.gmra.mxu0 %v1382_v45  ;;  %3058 = vmatpush.msra.mxu3 %v2693_v17  ;;  %v3110_v45 = vld [vmem:[%s5425_s12] sm:$0x1] }
 0x75d   :  { %3074 = vmatpush.msrb.mxu0 %v2713_v59  ;;  %3096 = vmatpush.msrb.mxu1 %v2727_v57 }
 0x75e   :  { %3059 = vmatpush.msra.mxu3 %v2692_v21  ;;  %v3117_v21 = vld [vmem:[%s5426_s14] sm:$0x1] }
 0x75f   :  { %3075 = vmatpush.msrb.mxu0 %v2712_v62  ;;  %3097 = vmatpush.msrb.mxu1 %v2726_v44 }
 0x760   :  { %3060 = vmatpush.msra.mxu3 %v2691_v63 }
 0x761   :  { %3076 = vmatpush.msrb.mxu0 %v2711_v35  ;;  %3098 = vmatpush.msrb.mxu1 %v2725_v1 }
 0x762   :  { %3061 = vmatpush.msra.mxu3 %v2690_v6 }
 0x763   :  { %3077 = vmatpush.msrb.mxu0 %v2710_v42  ;;  %3099 = vmatpush.msrb.mxu1 %v2724_v12 }
 0x764   :  { %3062 = vmatpush.msra.mxu3 %v2689_v50 }
 0x765   :  { %3078 = vmatpush.msrb.mxu0 %v2709_v51  ;;  %3100 = vmatpush.msrb.mxu1 %v2723_v61 }
 0x766   :  { %3063 = vmatpush.msra.mxu3 %v2688_v2 }
 0x767   :  { %3079 = vmatpush.msrb.mxu0 %v2708_v25  ;;  %3101 = vmatpush.msrb.mxu1 %v2722_v49 }
 0x768   :  { %3064 = vmatpush.msra.mxu3 %v2687_v0 }
 0x769   :  { %3080 = vmatpush.msrb.mxu0 %v2707_v52  ;;  %3102 = vmatpush.msrb.mxu1 %v2721_v4 }
 0x76a   :  { %3065 = vmatpush.msra.mxu3 %v2686_v31 }
 0x76b   :  { %3081 = vmatpush.msrb.mxu0 %v2706_v8  ;;  %3066 = vmatmul.f32.vlgmr.msra.gmra.mxu3 %v1442_v46 }
 0x76c   :  { %3103 = vmatpush.msrb.mxu1 %v2720_v38 }
 0x76d   :  { %3082 = vmatpush.msrb.mxu0 %v2705_v9 }
 0x76e   :  { %3104 = vmatpush.msrb.mxu1 %v2719_v15 }
 0x76f   :  { %3083 = vmatpush.msrb.mxu0 %v2704_v16 }
 0x770   :  { %3105 = vmatpush.msrb.mxu1 %v2718_v58 }
 0x771   :  { %3106 = vmatmul.f32.vlgmr.msrb.gmra.mxu1 %v1482_v29  ;;  %3084 = vmatpush.msrb.mxu0 %v2703_v30 }
 0x773   :  { %3085 = vmatpush.msrb.mxu0 %v2702_v53 }
 0x774   :  { %3086 = vmatmul.f32.vlgmr.msrb.gmra.mxu0 %v1462_v32 }
 0x7aa   :  { %v2867_v24 = vpop.f32.mrf.mxu1 }
 0x7af   :  { %v2847_v10 = vpop.f32.mrf.mxu0 }
 0x7b0   :  { %v2868_v33 = vadd.f32 %v2867_v24, %v2847_v10 }
 0x7b3   :  { %v2887_v14 = vpop.f32.mrf.mxu2 }
 0x7b4   :  { %v2888_v47 = vadd.f32 %v2887_v14, %v2868_v33 }
 0x7bb   :  { %v2967_v48 = vpop.f32.mrf.mxu2 }
 0x7c0   :  { %v2947_v39 = vpop.f32.mrf.mxu1 }
 0x7cb   :  { %v2907_v7 = vpop.f32.mrf.mxu3 }
 0x7cc   :  { %v2908_v5 = vadd.f32 %v2907_v7, %v2888_v47  ;;  %v3027_v19 = vpop.f32.mrf.mxu1 }
 0x7cf   :  { %v2927_v13 = vpop.f32.mrf.mxu0 }
 0x7d0   :  { %v2928_v27 = vadd.f32 %v2927_v13, %v2908_v5 }
 0x7d2   :  { %v2948_v23 = vadd.f32 %v2947_v39, %v2928_v27 }
 0x7d4   :  { %v2968_v20 = vadd.f32 %v2967_v48, %v2948_v23  ;;  %v3047_v11 = vpop.f32.mrf.mxu2 }
 0x7d6   :  { %v2987_v60 = vpop.f32.mrf.mxu3 }
 0x7d7   :  { %v2988_v56 = vadd.f32 %v2987_v60, %v2968_v20 }
 0x7d9   :  { %v3007_v37 = vpop.f32.mrf.mxu0 }
 0x7da   :  { %v3008_v40 = vadd.f32 %v3007_v37, %v2988_v56 }
 0x7dc   :  { %v3028_v3 = vadd.f32 %v3027_v19, %v3008_v40 }
 0x7de   :  { %v3048_v22 = vadd.f32 %v3047_v11, %v3028_v3 }
 0x7ee   :  { %v3067_v41 = vpop.f32.mrf.mxu3  ;;  %v3107_v34 = vpop.f32.mrf.mxu1 }
 0x7ef   :  { %v3068_v55 = vadd.f32 %v3067_v41, %v3048_v22 }
 0x7f1   :  { %v3087_v43 = vpop.f32.mrf.mxu0 }
 0x7f2   :  { %v3088_v36 = vadd.f32 %v3087_v43, %v3068_v55 }
 0x7f4   :  { %v3108_v17 = vadd.f32 %v3107_v34, %v3088_v36 }
 0x7f6   :  { %v3111_v59 = vadd.f32 %v3110_v45, %v3108_v17 }
 0x7f8   :  { %v3112_v57 = vmax.f32 %v3111_v59, 0.0 }
 0x7fa   :  { %3329 = vmatmul.msk.f32.vlgmr.msrb.gmra.mxu2 %vm3118_vm2, %v3112_v57 }
 0x87d   :  { %v3139_v62 = vpop.f32.mrf.mxu2 }
 0x87e   :  { %v3140_v44 = vadd.f32 %v3139_v62, %v3117_v21 }
 0x880   :  { %3142 = vst [vmem:[%s5427_s15] sm:$0x1] %v3140_v44 }

</bundles_post_ra>
